<compile_context>
chip_gen: v7x
topology: tpu7x:2x2x1
jax: 0.10.0
libtpu: 0.0.40
codegen_flags: <defaults>
</compile_context>

<pallas_src>
import math
import numpy as np
import jax
import jax.numpy as jnp
from jax.experimental import pallas as pl
from jax.experimental.pallas import tpu as pltpu


# ---------------------------------------------------------------------------
# Clenshaw-Curtis weights / nodes (matches UMNN compute_cc_weights exactly)
# ---------------------------------------------------------------------------
def _cc_weights_steps(nb_steps: int):
    n = nb_steps
    lam = np.arange(0, n + 1, 1).reshape(-1, 1).astype(np.float64)
    lam = np.cos((lam @ lam.T) * math.pi / n)
    lam[:, 0] = 0.5
    lam[:, -1] = 0.5 * lam[:, -1]
    lam = lam * 2.0 / n
    W = np.arange(0, n + 1, 1).reshape(-1, 1)
    W[np.isin(W, np.arange(1, n + 1, 2))] = 0
    W = 2.0 / (1.0 - W.astype(np.float64) ** 2)
    W[0] = 1.0
    W[np.isin(np.arange(0, n + 1, 1), np.arange(1, n + 1, 2))] = 0.0
    cc_weights = (lam.T @ W).astype(np.float32).reshape(-1)              # (n+1,)
    steps = np.cos(np.arange(0, n + 1, 1) * math.pi / n).astype(np.float32)
    return cc_weights, steps


# ---------------------------------------------------------------------------
# Pallas kernel: one batch tile per grid step.
#   s_ref  : (1, 1, N)        inner quadrature points, flat & lane-dense,
#                             N = TB * K_pad, row b occupies lanes [b*K_pad,(b+1)*K_pad)
#   wq_ref : (TB, K_pad)      folded double-quadrature weights (0 on padding)
#   hs_ref : (TB, Dh+1)       conditioning features + constant-1 col (batch on sublanes)
#   hl_ref : (1, Dh+1, TB)    same, transposed (batch on lanes) + constant-1 row
#   weights: VMEM-resident (constant index maps); W2^T is bf16.
# ---------------------------------------------------------------------------
def _inc_concave_kernel(s_ref, wq_ref, hs_ref, hl_ref,
                        w1s_ref, l1_ref, w2t_ref, b2_ref, w3t_ref, b3_ref,
                        n1a_ref, v2_ref, c2_ref, v3_ref, c3_ref,
                        out_ref):
    f32 = jnp.float32
    TB, K_pad = wq_ref.shape                 # static block shape

    # --- integrand layer 1 ---------------------------------------------------
    # z1[:, b*K+k] = relu( w1s * s[b,k] + (W1h @ h_b + b1) )
    s_row = s_ref[0]                                                    # (1, N)
    # rank-1 s-term as an MXU outer product (moved off the VPU)
    sw = jnp.dot(w1s_ref[...], s_row, preferred_element_type=f32)       # (H1, N)
    # per-row h-term (bias folded via the ones row of hl): one tiny matmul/tile
    hterm = jnp.dot(l1_ref[...], hl_ref[0], preferred_element_type=f32)  # (H1, TB)
    # segment-broadcast the h-term over each row's K_pad lanes; relu; cast the
    # layer-2 operand straight to bf16.  All slices are static & 128-aligned.
    parts = []
    for b in range(TB):
        blk = sw[:, b * K_pad:(b + 1) * K_pad] + hterm[:, b:b + 1]
        parts.append(jnp.maximum(blk, 0.0).astype(jnp.bfloat16))
    z1 = jnp.concatenate(parts, axis=1)                                 # (H1, N) bf16

    # --- layer 2: ONE lane-dense bf16 MXU matmul, f32 accumulate -------------
    z2 = jnp.maximum(
        jnp.dot(w2t_ref[...], z1, preferred_element_type=f32) + b2_ref[...], 0.0)   # (H2, N)

    # --- layer 3 on the MXU: (1, H2) @ (H2, N) --------------------------------
    z3 = jnp.dot(w3t_ref[...], z2, preferred_element_type=f32) + b3_ref[...]        # (1, N)

    # ELU(z) + 1 == max(z, 0) + exp(min(z, 0))   (exp on EUP, no select)
    f = jnp.maximum(z3, 0.0) + jnp.exp(jnp.minimum(z3, 0.0))            # (1, N)

    # --- folded double Clenshaw-Curtis quadrature ----------------------------
    # restack the per-row lane segments onto sublanes, then one weighted
    # lane-reduce against the dense (TB, K_pad) weight tile.
    F = jnp.concatenate([f[:, b * K_pad:(b + 1) * K_pad] for b in range(TB)], axis=0)
    q = jnp.sum(wq_ref[...] * F, axis=1, keepdims=True)                 # (TB, 1)

    # --- IncConcaveNN.net(h) -> offset / scaling (once per tile) -------------
    o = jnp.maximum(jnp.dot(hs_ref[...], n1a_ref[...], preferred_element_type=f32), 0.0)  # (TB,H1)
    o = jnp.maximum(jnp.dot(o, v2_ref[...], preferred_element_type=f32) + c2_ref[...], 0.0)  # (TB,H2)
    heads = jnp.dot(o, v3_ref[...], preferred_element_type=f32) + c3_ref[...]       # (TB, 2)
    offset = heads[:, 0:1]
    scaling = jnp.exp(heads[:, 1:2])

    out_ref[...] = scaling * q + offset                                 # (TB, 1)


# ---------------------------------------------------------------------------
# Wrapper: build quadrature grids / folded weights (glue), call the kernel.
# ---------------------------------------------------------------------------
def inc_concave_forward(x, h, params, nb_steps, block_b=16):
    (w1, b1, w2, b2, w3, b3, v1, c1, v2, c2, v3, c3) = params
    x = x.astype(jnp.float32)
    h = h.astype(jnp.float32)
    B = x.shape[0]
    Dh = h.shape[1]
    H1 = w1.shape[1]
    H2 = w2.shape[1]
    n1 = nb_steps + 1
    K = n1 * n1

    ccw_np, steps_np = _cc_weights_steps(nb_steps)
    ccw = jnp.asarray(ccw_np)
    steps = jnp.asarray(steps_np)

    # outer quadrature points t[b,i] on [0, x_b]; batch-global upper limit T
    t = x * (steps[None, :] + 1.0) * 0.5                                # (B, n1)
    T = jnp.max(t) + 10.0
    # inner quadrature points s[b,i,j] on [t[b,i], T]
    s = t[:, :, None] + (T - t[:, :, None]) * (steps[None, None, :] + 1.0) * 0.5
    # folded weight: ccw_i * ccw_j * (T - t[b,i])/2 * x_b/2
    wq = (ccw[None, :, None] * ccw[None, None, :]
          * ((T - t)[:, :, None] * 0.5) * (x[:, :, None] * 0.5))        # (B, n1, n1)

    # --- padding: K to a lane multiple of 128 (zero quadrature weight there),
    #     batch to the tile size.  Padded rows are sliced off after the call.
    block_b = max(8, ((block_b + 7) // 8) * 8)
    K_pad = ((K + 127) // 128) * 128
    B_pad = ((B + block_b - 1) // block_b) * block_b
    n_tiles = B_pad // block_b
    N = block_b * K_pad

    s2 = jnp.zeros((B_pad, K_pad), jnp.float32).at[:B, :K].set(s.reshape(B, K))
    wq2 = jnp.zeros((B_pad, K_pad), jnp.float32).at[:B, :K].set(wq.reshape(B, K))
    s_flat = s2.reshape(n_tiles, 1, N)                                  # lane-dense per tile

    # h with an appended constant-1 feature so first-layer biases fold into matmuls
    hs_aug = (jnp.zeros((B_pad, Dh + 1), jnp.float32)
              .at[:B, :Dh].set(h).at[:, Dh].set(1.0))                   # (B_pad, Dh+1)
    hl_aug = jnp.transpose(hs_aug.reshape(n_tiles, block_b, Dh + 1), (0, 2, 1))  # (n_tiles, Dh+1, TB)

    # --- weight prep (biases folded where free; layer-2 operand in bf16) -----
    w1s_col = w1[0:1, :].T                                       # (H1, 1)   s-coefficient
    L1 = jnp.concatenate([w1[1:, :].T, b1.reshape(1, H1).T], axis=1)   # (H1, Dh+1)  [W1h^T | b1]
    W2T = w2.T.astype(jnp.bfloat16)                              # (H2, H1)  bf16 MXU operand
    b2c = b2.reshape(1, H2).T                                    # (H2, 1)
    w3T = w3.T                                                   # (1, H2)
    b3c = b3.reshape(1, 1)                                       # (1, 1)
    N1a = jnp.concatenate([v1, c1.reshape(1, H1)], axis=0)       # (Dh+1, H1) [V1 ; c1]
    weights = (w1s_col, L1, W2T, b2c, w3T, b3c,
               N1a, v2, c2.reshape(1, H2), v3, c3.reshape(1, 2))

    def const_spec(arr):
        nd = arr.ndim
        return pl.BlockSpec(arr.shape, lambda i, nd=nd: (0,) * nd)

    # Per-tile VMEM estimate: sw(f32) + z1(bf16) + z2(f32) + small flats +
    # double-buffered streamed inputs + headroom.  Scoped defaults are
    # 16 MiB (v5e) / 32 MiB (v6e, v7x), so set the limit explicitly whenever
    # the estimate gets close; cap at 64 MiB (v7x physical VMEM per core).
    est = (4 * H1 * N + 2 * H1 * N + 4 * H2 * N + 4 * 4 * N
           + 2 * 4 * (N + block_b * K_pad + 2 * block_b * (Dh + 1))
           + (2 << 20))
    compiler_kwargs = dict(dimension_semantics=("parallel",))
    if est > (12 << 20):
        compiler_kwargs["vmem_limit_bytes"] = int(min(est * 8 // 5, 64 << 20))

    out = pl.pallas_call(
        _inc_concave_kernel,
        out_shape=jax.ShapeDtypeStruct((B_pad, 1), jnp.float32),
        grid=(n_tiles,),
        in_specs=[
            pl.BlockSpec((1, 1, N), lambda i: (i, 0, 0)),               # s (flat, lane-dense)
            pl.BlockSpec((block_b, K_pad), lambda i: (i, 0)),           # folded quad weights
            pl.BlockSpec((block_b, Dh + 1), lambda i: (i, 0)),          # h (batch on sublanes)
            pl.BlockSpec((1, Dh + 1, block_b), lambda i: (i, 0, 0)),    # h (batch on lanes)
        ] + [const_spec(a) for a in weights],
        out_specs=pl.BlockSpec((block_b, 1), lambda i: (i, 0)),
        compiler_params=pltpu.CompilerParams(**compiler_kwargs),
    )(s_flat, wq2, hs_aug, hl_aug, *weights)

    return out[:B]


# ---------------------------------------------------------------------------
# Pure-JAX reference (mirrors the torch code structure) for a correctness check
# ---------------------------------------------------------------------------
def reference_forward(x, h, params, nb_steps):
    (w1, b1, w2, b2, w3, b3, v1, c1, v2, c2, v3, c3) = params
    ccw_np, steps_np = _cc_weights_steps(nb_steps)
    ccw = jnp.asarray(ccw_np)
    steps = jnp.asarray(steps_np)

    def integrand(xs, hs):                       # PostiveIntegrandNN
        z = jnp.concatenate([xs, hs], axis=1)
        z = jnp.maximum(z @ w1 + b1, 0.0)
        z = jnp.maximum(z @ w2 + b2, 0.0)
        z = z @ w3 + b3
        return jnp.where(z > 0, z, jnp.expm1(jnp.minimum(z, 0.0))) + 1.0

    def integrate(x0, xT, fn, hh):               # UMNN integrate()
        X = x0[:, None, :] + (xT - x0)[:, None, :] * (steps[None, :, None] + 1.0) / 2.0
        Nn, S, D = X.shape
        Xf = X.reshape(Nn * S, D)
        Hf = jnp.broadcast_to(hh[:, None, :], (Nn, S, hh.shape[1])).reshape(Nn * S, -1)
        dz = fn(Xf, Hf).reshape(Nn, S, -1)
        dz = dz * ccw[None, :, None]
        return dz.sum(1) * (xT - x0) / 2.0

    def inner_umnn(xs, hs):                      # InnerUMNN.forward
        xmax = jnp.max(xs) + 10.0
        xfinal = jnp.zeros_like(xs) + xmax
        return integrate(xs, xfinal, integrand, hs)

    o = jnp.maximum(h @ v1 + c1, 0.0)
    o = jnp.maximum(o @ v2 + c2, 0.0)
    o = o @ v3 + c3
    offset = o[:, 0:1]
    scaling = jnp.exp(o[:, 1:2])
    x0 = jnp.zeros_like(x)
    outer = integrate(x0, x, inner_umnn, h)
    return scaling * outer + offset


# ---------------------------------------------------------------------------
# Deterministic parameter init (PyTorch-Linear-style uniform bounds)
# ---------------------------------------------------------------------------
def init_params(key, in_d, hidden):
    H1, H2 = hidden

    def lin(k, fan_in, fan_out):
        bound = 1.0 / math.sqrt(fan_in)
        kw, kb = jax.random.split(k)
        W = jax.random.uniform(kw, (fan_in, fan_out), jnp.float32, -bound, bound)
        b = jax.random.uniform(kb, (1, fan_out), jnp.float32, -bound, bound)
        return W, b

    ks = jax.random.split(key, 6)
    w1, b1 = lin(ks[0], in_d, H1)        # PostiveIntegrandNN: in_d -> H1
    w2, b2 = lin(ks[1], H1, H2)          #                    H1  -> H2
    w3, b3 = lin(ks[2], H2, 1)           #                    H2  -> 1
    v1, c1 = lin(ks[3], in_d - 1, H1)    # IncConcaveNN.net:  in_d-1 -> H1
    v2, c2 = lin(ks[4], H1, H2)          #                    H1  -> H2
    v3, c3 = lin(ks[5], H2, 2)           #                    H2  -> 2
    return (w1, b1, w2, b2, w3, b3, v1, c1, v2, c2, v3, c3)


if __name__ == "__main__":
    in_d = 4            # integrand input dim (x is 1-d, h is in_d-1 = 3)
    hidden = [32, 32]
    nb_steps = 16       # Clenshaw-Curtis steps (module default is 50; kept small)
    B = 32              # two batch tiles of 16 -> grid of 2 (exercises the pipeline)

    key = jax.random.PRNGKey(0)
    kx, kh, kp = jax.random.split(key, 3)
    x = jax.random.uniform(kx, (B, 1), jnp.float32, 0.0, 2.0)
    h = jax.random.normal(kh, (B, in_d - 1), jnp.float32)
    params = init_params(kp, in_d, hidden)

    out = inc_concave_forward(x, h, params, nb_steps, block_b=16)
    out = jax.block_until_ready(out)

    ref = jax.block_until_ready(reference_forward(x, h, params, nb_steps))
    assert out.shape == (B, 1)
    # tolerance loosened slightly vs pure-f32 because layer-2 matmul operands
    # are bf16 (accumulation stays f32)
    np.testing.assert_allclose(np.asarray(out), np.asarray(ref), rtol=2e-2, atol=2e-2)

    print("KERNEL_OK")
</pallas_src>

<mosaic_0001>
module attributes {stable_mosaic.version = 11 : i64} {
  func.func @_inc_concave_kernel(%arg0: i32, %arg1: memref<1x1x6144xf32, #tpu.memory_space<vmem>>, %arg2: memref<16x384xf32, #tpu.memory_space<vmem>>, %arg3: memref<16x4xf32, #tpu.memory_space<vmem>>, %arg4: memref<1x4x16xf32, #tpu.memory_space<vmem>>, %arg5: memref<32x1xf32, #tpu.memory_space<vmem>>, %arg6: memref<32x4xf32, #tpu.memory_space<vmem>>, %arg7: memref<32x32xbf16, #tpu.memory_space<vmem>>, %arg8: memref<32x1xf32, #tpu.memory_space<vmem>>, %arg9: memref<1x32xf32, #tpu.memory_space<vmem>>, %arg10: memref<1x1xf32, #tpu.memory_space<vmem>>, %arg11: memref<4x32xf32, #tpu.memory_space<vmem>>, %arg12: memref<32x32xf32, #tpu.memory_space<vmem>>, %arg13: memref<1x32xf32, #tpu.memory_space<vmem>>, %arg14: memref<32x2xf32, #tpu.memory_space<vmem>>, %arg15: memref<1x2xf32, #tpu.memory_space<vmem>>, %arg16: memref<16x1xf32, #tpu.memory_space<vmem>>) attributes {dimension_semantics = [#tpu.dimension_semantics<parallel>], iteration_bounds = array<i64: 2>, scalar_prefetch = 0 : i64, scratch_operands = 0 : i64, tpu.core_type = #tpu.core_type<tc>, window_params = [{transform_indices = @transform_0, window_bounds = array<i64: 1, 1, 6144>}, {transform_indices = @transform_1, window_bounds = array<i64: 16, 384>}, {transform_indices = @transform_2, window_bounds = array<i64: 16, 4>}, {transform_indices = @transform_3, window_bounds = array<i64: 1, 4, 16>}, {pipeline_mode = #tpu.pipeline_mode<synchronous>, transform_indices = @transform_4, window_bounds = array<i64: 32, 1>}, {pipeline_mode = #tpu.pipeline_mode<synchronous>, transform_indices = @transform_5, window_bounds = array<i64: 32, 4>}, {pipeline_mode = #tpu.pipeline_mode<synchronous>, transform_indices = @transform_6, window_bounds = array<i64: 32, 32>}, {pipeline_mode = #tpu.pipeline_mode<synchronous>, transform_indices = @transform_7, window_bounds = array<i64: 32, 1>}, {pipeline_mode = #tpu.pipeline_mode<synchronous>, transform_indices = @transform_8, window_bounds = array<i64: 1, 32>}, {pipeline_mode = #tpu.pipeline_mode<synchronous>, transform_indices = @transform_9, window_bounds = array<i64: 1, 1>}, {pipeline_mode = #tpu.pipeline_mode<synchronous>, transform_indices = @transform_10, window_bounds = array<i64: 4, 32>}, {pipeline_mode = #tpu.pipeline_mode<synchronous>, transform_indices = @transform_11, window_bounds = array<i64: 32, 32>}, {pipeline_mode = #tpu.pipeline_mode<synchronous>, transform_indices = @transform_12, window_bounds = array<i64: 1, 32>}, {pipeline_mode = #tpu.pipeline_mode<synchronous>, transform_indices = @transform_13, window_bounds = array<i64: 32, 2>}, {pipeline_mode = #tpu.pipeline_mode<synchronous>, transform_indices = @transform_14, window_bounds = array<i64: 1, 2>}, {transform_indices = @transform_15, window_bounds = array<i64: 16, 1>}]} {
    %c0 = arith.constant 0 : index
    %c0_0 = arith.constant 0 : index
    %c0_1 = arith.constant 0 : index
    %0 = vector.load %arg1[%c0, %c0_0, %c0_1] : memref<1x1x6144xf32, #tpu.memory_space<vmem>>, vector<1x1x6144xf32>
    %1 = vector.shape_cast %0 : vector<1x1x6144xf32> to vector<1x6144xf32>
    %c0_2 = arith.constant 0 : index
    %c0_3 = arith.constant 0 : index
    %2 = vector.load %arg5[%c0_2, %c0_3] : memref<32x1xf32, #tpu.memory_space<vmem>>, vector<32x1xf32>
    %cst = arith.constant dense<0.000000e+00> : vector<32x6144xf32>
    %3 = tpu.matmul %2, %1, %cst {dimension_numbers = #tpu.dot_dimension_numbers<[1], [0], [0], [1], [0, 0, 1, 1], [], []>} : vector<32x1xf32>, vector<1x6144xf32>, vector<32x6144xf32> -> vector<32x6144xf32>
    %c0_4 = arith.constant 0 : index
    %c0_5 = arith.constant 0 : index
    %4 = vector.load %arg6[%c0_4, %c0_5] : memref<32x4xf32, #tpu.memory_space<vmem>>, vector<32x4xf32>
    %c0_6 = arith.constant 0 : index
    %c0_7 = arith.constant 0 : index
    %c0_8 = arith.constant 0 : index
    %5 = vector.load %arg4[%c0_6, %c0_7, %c0_8] : memref<1x4x16xf32, #tpu.memory_space<vmem>>, vector<1x4x16xf32>
    %6 = vector.shape_cast %5 : vector<1x4x16xf32> to vector<4x16xf32>
    %cst_9 = arith.constant dense<0.000000e+00> : vector<32x16xf32>
    %7 = tpu.matmul %4, %6, %cst_9 {dimension_numbers = #tpu.dot_dimension_numbers<[1], [0], [0], [1], [0, 0, 1, 1], [], []>} : vector<32x4xf32>, vector<4x16xf32>, vector<32x16xf32> -> vector<32x16xf32>
    %8 = vector.extract_strided_slice %3 {offsets = [0, 0], sizes = [32, 384], strides = [1, 1]} : vector<32x6144xf32> to vector<32x384xf32>
    %9 = vector.extract_strided_slice %7 {offsets = [0, 0], sizes = [32, 1], strides = [1, 1]} : vector<32x16xf32> to vector<32x1xf32>
    %10 = vector.broadcast %9 : vector<32x1xf32> to vector<32x384xf32>
    %11 = arith.addf %8, %10 : vector<32x384xf32>
    %cst_10 = arith.constant 0.000000e+00 : f32
    %12 = vector.broadcast %cst_10 : f32 to vector<32x384xf32>
    %13 = arith.maximumf %11, %12 : vector<32x384xf32>
    %14 = arith.truncf %13 : vector<32x384xf32> to vector<32x384xbf16>
    %15 = vector.extract_strided_slice %3 {offsets = [0, 384], sizes = [32, 384], strides = [1, 1]} : vector<32x6144xf32> to vector<32x384xf32>
    %16 = vector.extract_strided_slice %7 {offsets = [0, 1], sizes = [32, 1], strides = [1, 1]} : vector<32x16xf32> to vector<32x1xf32>
    %17 = vector.broadcast %16 : vector<32x1xf32> to vector<32x384xf32>
    %18 = arith.addf %15, %17 : vector<32x384xf32>
    %cst_11 = arith.constant 0.000000e+00 : f32
    %19 = vector.broadcast %cst_11 : f32 to vector<32x384xf32>
    %20 = arith.maximumf %18, %19 : vector<32x384xf32>
    %21 = arith.truncf %20 : vector<32x384xf32> to vector<32x384xbf16>
    %22 = vector.extract_strided_slice %3 {offsets = [0, 768], sizes = [32, 384], strides = [1, 1]} : vector<32x6144xf32> to vector<32x384xf32>
    %23 = vector.extract_strided_slice %7 {offsets = [0, 2], sizes = [32, 1], strides = [1, 1]} : vector<32x16xf32> to vector<32x1xf32>
    %24 = vector.broadcast %23 : vector<32x1xf32> to vector<32x384xf32>
    %25 = arith.addf %22, %24 : vector<32x384xf32>
    %cst_12 = arith.constant 0.000000e+00 : f32
    %26 = vector.broadcast %cst_12 : f32 to vector<32x384xf32>
    %27 = arith.maximumf %25, %26 : vector<32x384xf32>
    %28 = arith.truncf %27 : vector<32x384xf32> to vector<32x384xbf16>
    %29 = vector.extract_strided_slice %3 {offsets = [0, 1152], sizes = [32, 384], strides = [1, 1]} : vector<32x6144xf32> to vector<32x384xf32>
    %30 = vector.extract_strided_slice %7 {offsets = [0, 3], sizes = [32, 1], strides = [1, 1]} : vector<32x16xf32> to vector<32x1xf32>
    %31 = vector.broadcast %30 : vector<32x1xf32> to vector<32x384xf32>
    %32 = arith.addf %29, %31 : vector<32x384xf32>
    %cst_13 = arith.constant 0.000000e+00 : f32
    %33 = vector.broadcast %cst_13 : f32 to vector<32x384xf32>
    %34 = arith.maximumf %32, %33 : vector<32x384xf32>
    %35 = arith.truncf %34 : vector<32x384xf32> to vector<32x384xbf16>
    %36 = vector.extract_strided_slice %3 {offsets = [0, 1536], sizes = [32, 384], strides = [1, 1]} : vector<32x6144xf32> to vector<32x384xf32>
    %37 = vector.extract_strided_slice %7 {offsets = [0, 4], sizes = [32, 1], strides = [1, 1]} : vector<32x16xf32> to vector<32x1xf32>
    %38 = vector.broadcast %37 : vector<32x1xf32> to vector<32x384xf32>
    %39 = arith.addf %36, %38 : vector<32x384xf32>
    %cst_14 = arith.constant 0.000000e+00 : f32
    %40 = vector.broadcast %cst_14 : f32 to vector<32x384xf32>
    %41 = arith.maximumf %39, %40 : vector<32x384xf32>
    %42 = arith.truncf %41 : vector<32x384xf32> to vector<32x384xbf16>
    %43 = vector.extract_strided_slice %3 {offsets = [0, 1920], sizes = [32, 384], strides = [1, 1]} : vector<32x6144xf32> to vector<32x384xf32>
    %44 = vector.extract_strided_slice %7 {offsets = [0, 5], sizes = [32, 1], strides = [1, 1]} : vector<32x16xf32> to vector<32x1xf32>
    %45 = vector.broadcast %44 : vector<32x1xf32> to vector<32x384xf32>
    %46 = arith.addf %43, %45 : vector<32x384xf32>
    %cst_15 = arith.constant 0.000000e+00 : f32
    %47 = vector.broadcast %cst_15 : f32 to vector<32x384xf32>
    %48 = arith.maximumf %46, %47 : vector<32x384xf32>
    %49 = arith.truncf %48 : vector<32x384xf32> to vector<32x384xbf16>
    %50 = vector.extract_strided_slice %3 {offsets = [0, 2304], sizes = [32, 384], strides = [1, 1]} : vector<32x6144xf32> to vector<32x384xf32>
    %51 = vector.extract_strided_slice %7 {offsets = [0, 6], sizes = [32, 1], strides = [1, 1]} : vector<32x16xf32> to vector<32x1xf32>
    %52 = vector.broadcast %51 : vector<32x1xf32> to vector<32x384xf32>
    %53 = arith.addf %50, %52 : vector<32x384xf32>
    %cst_16 = arith.constant 0.000000e+00 : f32
    %54 = vector.broadcast %cst_16 : f32 to vector<32x384xf32>
    %55 = arith.maximumf %53, %54 : vector<32x384xf32>
    %56 = arith.truncf %55 : vector<32x384xf32> to vector<32x384xbf16>
    %57 = vector.extract_strided_slice %3 {offsets = [0, 2688], sizes = [32, 384], strides = [1, 1]} : vector<32x6144xf32> to vector<32x384xf32>
    %58 = vector.extract_strided_slice %7 {offsets = [0, 7], sizes = [32, 1], strides = [1, 1]} : vector<32x16xf32> to vector<32x1xf32>
    %59 = vector.broadcast %58 : vector<32x1xf32> to vector<32x384xf32>
    %60 = arith.addf %57, %59 : vector<32x384xf32>
    %cst_17 = arith.constant 0.000000e+00 : f32
    %61 = vector.broadcast %cst_17 : f32 to vector<32x384xf32>
    %62 = arith.maximumf %60, %61 : vector<32x384xf32>
    %63 = arith.truncf %62 : vector<32x384xf32> to vector<32x384xbf16>
    %64 = vector.extract_strided_slice %3 {offsets = [0, 3072], sizes = [32, 384], strides = [1, 1]} : vector<32x6144xf32> to vector<32x384xf32>
    %65 = vector.extract_strided_slice %7 {offsets = [0, 8], sizes = [32, 1], strides = [1, 1]} : vector<32x16xf32> to vector<32x1xf32>
    %66 = vector.broadcast %65 : vector<32x1xf32> to vector<32x384xf32>
    %67 = arith.addf %64, %66 : vector<32x384xf32>
    %cst_18 = arith.constant 0.000000e+00 : f32
    %68 = vector.broadcast %cst_18 : f32 to vector<32x384xf32>
    %69 = arith.maximumf %67, %68 : vector<32x384xf32>
    %70 = arith.truncf %69 : vector<32x384xf32> to vector<32x384xbf16>
    %71 = vector.extract_strided_slice %3 {offsets = [0, 3456], sizes = [32, 384], strides = [1, 1]} : vector<32x6144xf32> to vector<32x384xf32>
    %72 = vector.extract_strided_slice %7 {offsets = [0, 9], sizes = [32, 1], strides = [1, 1]} : vector<32x16xf32> to vector<32x1xf32>
    %73 = vector.broadcast %72 : vector<32x1xf32> to vector<32x384xf32>
    %74 = arith.addf %71, %73 : vector<32x384xf32>
    %cst_19 = arith.constant 0.000000e+00 : f32
    %75 = vector.broadcast %cst_19 : f32 to vector<32x384xf32>
    %76 = arith.maximumf %74, %75 : vector<32x384xf32>
    %77 = arith.truncf %76 : vector<32x384xf32> to vector<32x384xbf16>
    %78 = vector.extract_strided_slice %3 {offsets = [0, 3840], sizes = [32, 384], strides = [1, 1]} : vector<32x6144xf32> to vector<32x384xf32>
    %79 = vector.extract_strided_slice %7 {offsets = [0, 10], sizes = [32, 1], strides = [1, 1]} : vector<32x16xf32> to vector<32x1xf32>
    %80 = vector.broadcast %79 : vector<32x1xf32> to vector<32x384xf32>
    %81 = arith.addf %78, %80 : vector<32x384xf32>
    %cst_20 = arith.constant 0.000000e+00 : f32
    %82 = vector.broadcast %cst_20 : f32 to vector<32x384xf32>
    %83 = arith.maximumf %81, %82 : vector<32x384xf32>
    %84 = arith.truncf %83 : vector<32x384xf32> to vector<32x384xbf16>
    %85 = vector.extract_strided_slice %3 {offsets = [0, 4224], sizes = [32, 384], strides = [1, 1]} : vector<32x6144xf32> to vector<32x384xf32>
    %86 = vector.extract_strided_slice %7 {offsets = [0, 11], sizes = [32, 1], strides = [1, 1]} : vector<32x16xf32> to vector<32x1xf32>
    %87 = vector.broadcast %86 : vector<32x1xf32> to vector<32x384xf32>
    %88 = arith.addf %85, %87 : vector<32x384xf32>
    %cst_21 = arith.constant 0.000000e+00 : f32
    %89 = vector.broadcast %cst_21 : f32 to vector<32x384xf32>
    %90 = arith.maximumf %88, %89 : vector<32x384xf32>
    %91 = arith.truncf %90 : vector<32x384xf32> to vector<32x384xbf16>
    %92 = vector.extract_strided_slice %3 {offsets = [0, 4608], sizes = [32, 384], strides = [1, 1]} : vector<32x6144xf32> to vector<32x384xf32>
    %93 = vector.extract_strided_slice %7 {offsets = [0, 12], sizes = [32, 1], strides = [1, 1]} : vector<32x16xf32> to vector<32x1xf32>
    %94 = vector.broadcast %93 : vector<32x1xf32> to vector<32x384xf32>
    %95 = arith.addf %92, %94 : vector<32x384xf32>
    %cst_22 = arith.constant 0.000000e+00 : f32
    %96 = vector.broadcast %cst_22 : f32 to vector<32x384xf32>
    %97 = arith.maximumf %95, %96 : vector<32x384xf32>
    %98 = arith.truncf %97 : vector<32x384xf32> to vector<32x384xbf16>
    %99 = vector.extract_strided_slice %3 {offsets = [0, 4992], sizes = [32, 384], strides = [1, 1]} : vector<32x6144xf32> to vector<32x384xf32>
    %100 = vector.extract_strided_slice %7 {offsets = [0, 13], sizes = [32, 1], strides = [1, 1]} : vector<32x16xf32> to vector<32x1xf32>
    %101 = vector.broadcast %100 : vector<32x1xf32> to vector<32x384xf32>
    %102 = arith.addf %99, %101 : vector<32x384xf32>
    %cst_23 = arith.constant 0.000000e+00 : f32
    %103 = vector.broadcast %cst_23 : f32 to vector<32x384xf32>
    %104 = arith.maximumf %102, %103 : vector<32x384xf32>
    %105 = arith.truncf %104 : vector<32x384xf32> to vector<32x384xbf16>
    %106 = vector.extract_strided_slice %3 {offsets = [0, 5376], sizes = [32, 384], strides = [1, 1]} : vector<32x6144xf32> to vector<32x384xf32>
    %107 = vector.extract_strided_slice %7 {offsets = [0, 14], sizes = [32, 1], strides = [1, 1]} : vector<32x16xf32> to vector<32x1xf32>
    %108 = vector.broadcast %107 : vector<32x1xf32> to vector<32x384xf32>
    %109 = arith.addf %106, %108 : vector<32x384xf32>
    %cst_24 = arith.constant 0.000000e+00 : f32
    %110 = vector.broadcast %cst_24 : f32 to vector<32x384xf32>
    %111 = arith.maximumf %109, %110 : vector<32x384xf32>
    %112 = arith.truncf %111 : vector<32x384xf32> to vector<32x384xbf16>
    %113 = vector.extract_strided_slice %3 {offsets = [0, 5760], sizes = [32, 384], strides = [1, 1]} : vector<32x6144xf32> to vector<32x384xf32>
    %114 = vector.extract_strided_slice %7 {offsets = [0, 15], sizes = [32, 1], strides = [1, 1]} : vector<32x16xf32> to vector<32x1xf32>
    %115 = vector.broadcast %114 : vector<32x1xf32> to vector<32x384xf32>
    %116 = arith.addf %113, %115 : vector<32x384xf32>
    %cst_25 = arith.constant 0.000000e+00 : f32
    %117 = vector.broadcast %cst_25 : f32 to vector<32x384xf32>
    %118 = arith.maximumf %116, %117 : vector<32x384xf32>
    %119 = arith.truncf %118 : vector<32x384xf32> to vector<32x384xbf16>
    %120 = tpu.concatenate %14, %21, %28, %35, %42, %49, %56, %63, %70, %77, %84, %91, %98, %105, %112, %119 in 1 : vector<32x384xbf16>, vector<32x384xbf16>, vector<32x384xbf16>, vector<32x384xbf16>, vector<32x384xbf16>, vector<32x384xbf16>, vector<32x384xbf16>, vector<32x384xbf16>, vector<32x384xbf16>, vector<32x384xbf16>, vector<32x384xbf16>, vector<32x384xbf16>, vector<32x384xbf16>, vector<32x384xbf16>, vector<32x384xbf16>, vector<32x384xbf16> -> vector<32x6144xbf16>
    %c0_26 = arith.constant 0 : index
    %c0_27 = arith.constant 0 : index
    %121 = vector.load %arg7[%c0_26, %c0_27] : memref<32x32xbf16, #tpu.memory_space<vmem>>, vector<32x32xbf16>
    %cst_28 = arith.constant dense<0.000000e+00> : vector<32x6144xf32>
    %122 = tpu.matmul %121, %120, %cst_28 {dimension_numbers = #tpu.dot_dimension_numbers<[1], [0], [0], [1], [0, 0, 1, 1], [], []>} : vector<32x32xbf16>, vector<32x6144xbf16>, vector<32x6144xf32> -> vector<32x6144xf32>
    %c0_29 = arith.constant 0 : index
    %c0_30 = arith.constant 0 : index
    %123 = vector.load %arg8[%c0_29, %c0_30] : memref<32x1xf32, #tpu.memory_space<vmem>>, vector<32x1xf32>
    %124 = vector.broadcast %123 : vector<32x1xf32> to vector<32x6144xf32>
    %125 = arith.addf %122, %124 : vector<32x6144xf32>
    %cst_31 = arith.constant 0.000000e+00 : f32
    %126 = vector.broadcast %cst_31 : f32 to vector<32x6144xf32>
    %127 = arith.maximumf %125, %126 : vector<32x6144xf32>
    %c0_32 = arith.constant 0 : index
    %c0_33 = arith.constant 0 : index
    %128 = vector.load %arg9[%c0_32, %c0_33] : memref<1x32xf32, #tpu.memory_space<vmem>>, vector<1x32xf32>
    %cst_34 = arith.constant dense<0.000000e+00> : vector<1x6144xf32>
    %129 = tpu.matmul %128, %127, %cst_34 {dimension_numbers = #tpu.dot_dimension_numbers<[1], [0], [0], [1], [0, 0, 1, 1], [], []>} : vector<1x32xf32>, vector<32x6144xf32>, vector<1x6144xf32> -> vector<1x6144xf32>
    %c0_35 = arith.constant 0 : index
    %c0_36 = arith.constant 0 : index
    %130 = vector.load %arg10[%c0_35, %c0_36] : memref<1x1xf32, #tpu.memory_space<vmem>>, vector<1x1xf32>
    %131 = vector.broadcast %130 : vector<1x1xf32> to vector<1x6144xf32>
    %132 = arith.addf %129, %131 : vector<1x6144xf32>
    %cst_37 = arith.constant 0.000000e+00 : f32
    %133 = vector.broadcast %cst_37 : f32 to vector<1x6144xf32>
    %134 = arith.maximumf %132, %133 : vector<1x6144xf32>
    %cst_38 = arith.constant 0.000000e+00 : f32
    %135 = vector.broadcast %cst_38 : f32 to vector<1x6144xf32>
    %136 = arith.minimumf %132, %135 : vector<1x6144xf32>
    %137 = math.exp %136 : vector<1x6144xf32>
    %138 = arith.addf %134, %137 : vector<1x6144xf32>
    %139 = vector.extract_strided_slice %138 {offsets = [0, 0], sizes = [1, 384], strides = [1, 1]} : vector<1x6144xf32> to vector<1x384xf32>
    %140 = vector.extract_strided_slice %138 {offsets = [0, 384], sizes = [1, 384], strides = [1, 1]} : vector<1x6144xf32> to vector<1x384xf32>
    %141 = vector.extract_strided_slice %138 {offsets = [0, 768], sizes = [1, 384], strides = [1, 1]} : vector<1x6144xf32> to vector<1x384xf32>
    %142 = vector.extract_strided_slice %138 {offsets = [0, 1152], sizes = [1, 384], strides = [1, 1]} : vector<1x6144xf32> to vector<1x384xf32>
    %143 = vector.extract_strided_slice %138 {offsets = [0, 1536], sizes = [1, 384], strides = [1, 1]} : vector<1x6144xf32> to vector<1x384xf32>
    %144 = vector.extract_strided_slice %138 {offsets = [0, 1920], sizes = [1, 384], strides = [1, 1]} : vector<1x6144xf32> to vector<1x384xf32>
    %145 = vector.extract_strided_slice %138 {offsets = [0, 2304], sizes = [1, 384], strides = [1, 1]} : vector<1x6144xf32> to vector<1x384xf32>
    %146 = vector.extract_strided_slice %138 {offsets = [0, 2688], sizes = [1, 384], strides = [1, 1]} : vector<1x6144xf32> to vector<1x384xf32>
    %147 = vector.extract_strided_slice %138 {offsets = [0, 3072], sizes = [1, 384], strides = [1, 1]} : vector<1x6144xf32> to vector<1x384xf32>
    %148 = vector.extract_strided_slice %138 {offsets = [0, 3456], sizes = [1, 384], strides = [1, 1]} : vector<1x6144xf32> to vector<1x384xf32>
    %149 = vector.extract_strided_slice %138 {offsets = [0, 3840], sizes = [1, 384], strides = [1, 1]} : vector<1x6144xf32> to vector<1x384xf32>
    %150 = vector.extract_strided_slice %138 {offsets = [0, 4224], sizes = [1, 384], strides = [1, 1]} : vector<1x6144xf32> to vector<1x384xf32>
    %151 = vector.extract_strided_slice %138 {offsets = [0, 4608], sizes = [1, 384], strides = [1, 1]} : vector<1x6144xf32> to vector<1x384xf32>
    %152 = vector.extract_strided_slice %138 {offsets = [0, 4992], sizes = [1, 384], strides = [1, 1]} : vector<1x6144xf32> to vector<1x384xf32>
    %153 = vector.extract_strided_slice %138 {offsets = [0, 5376], sizes = [1, 384], strides = [1, 1]} : vector<1x6144xf32> to vector<1x384xf32>
    %154 = vector.extract_strided_slice %138 {offsets = [0, 5760], sizes = [1, 384], strides = [1, 1]} : vector<1x6144xf32> to vector<1x384xf32>
    %155 = tpu.concatenate %139, %140, %141, %142, %143, %144, %145, %146, %147, %148, %149, %150, %151, %152, %153, %154 in 0 : vector<1x384xf32>, vector<1x384xf32>, vector<1x384xf32>, vector<1x384xf32>, vector<1x384xf32>, vector<1x384xf32>, vector<1x384xf32>, vector<1x384xf32>, vector<1x384xf32>, vector<1x384xf32>, vector<1x384xf32>, vector<1x384xf32>, vector<1x384xf32>, vector<1x384xf32>, vector<1x384xf32>, vector<1x384xf32> -> vector<16x384xf32>
    %c0_39 = arith.constant 0 : index
    %c0_40 = arith.constant 0 : index
    %156 = vector.load %arg2[%c0_39, %c0_40] : memref<16x384xf32, #tpu.memory_space<vmem>>, vector<16x384xf32>
    %157 = arith.mulf %156, %155 : vector<16x384xf32>
    %cst_41 = arith.constant dense<0.000000e+00> : vector<16xf32>
    %158 = vector.multi_reduction <add>, %157, %cst_41 [1] : vector<16x384xf32> to vector<16xf32>
    %159 = vector.shape_cast %158 : vector<16xf32> to vector<16x1xf32>
    %c0_42 = arith.constant 0 : index
    %c0_43 = arith.constant 0 : index
    %160 = vector.load %arg3[%c0_42, %c0_43] : memref<16x4xf32, #tpu.memory_space<vmem>>, vector<16x4xf32>
    %c0_44 = arith.constant 0 : index
    %c0_45 = arith.constant 0 : index
    %161 = vector.load %arg11[%c0_44, %c0_45] : memref<4x32xf32, #tpu.memory_space<vmem>>, vector<4x32xf32>
    %cst_46 = arith.constant dense<0.000000e+00> : vector<16x32xf32>
    %162 = tpu.matmul %160, %161, %cst_46 {dimension_numbers = #tpu.dot_dimension_numbers<[1], [0], [0], [1], [0, 0, 1, 1], [], []>} : vector<16x4xf32>, vector<4x32xf32>, vector<16x32xf32> -> vector<16x32xf32>
    %cst_47 = arith.constant 0.000000e+00 : f32
    %163 = vector.broadcast %cst_47 : f32 to vector<16x32xf32>
    %164 = arith.maximumf %162, %163 : vector<16x32xf32>
    %c0_48 = arith.constant 0 : index
    %c0_49 = arith.constant 0 : index
    %165 = vector.load %arg12[%c0_48, %c0_49] : memref<32x32xf32, #tpu.memory_space<vmem>>, vector<32x32xf32>
    %cst_50 = arith.constant dense<0.000000e+00> : vector<16x32xf32>
    %166 = tpu.matmul %164, %165, %cst_50 {dimension_numbers = #tpu.dot_dimension_numbers<[1], [0], [0], [1], [0, 0, 1, 1], [], []>} : vector<16x32xf32>, vector<32x32xf32>, vector<16x32xf32> -> vector<16x32xf32>
    %c0_51 = arith.constant 0 : index
    %c0_52 = arith.constant 0 : index
    %167 = vector.load %arg13[%c0_51, %c0_52] : memref<1x32xf32, #tpu.memory_space<vmem>>, vector<1x32xf32>
    %168 = vector.broadcast %167 : vector<1x32xf32> to vector<16x32xf32>
    %169 = arith.addf %166, %168 : vector<16x32xf32>
    %cst_53 = arith.constant 0.000000e+00 : f32
    %170 = vector.broadcast %cst_53 : f32 to vector<16x32xf32>
    %171 = arith.maximumf %169, %170 : vector<16x32xf32>
    %c0_54 = arith.constant 0 : index
    %c0_55 = arith.constant 0 : index
    %172 = vector.load %arg14[%c0_54, %c0_55] : memref<32x2xf32, #tpu.memory_space<vmem>>, vector<32x2xf32>
    %cst_56 = arith.constant dense<0.000000e+00> : vector<16x2xf32>
    %173 = tpu.matmul %171, %172, %cst_56 {dimension_numbers = #tpu.dot_dimension_numbers<[1], [0], [0], [1], [0, 0, 1, 1], [], []>} : vector<16x32xf32>, vector<32x2xf32>, vector<16x2xf32> -> vector<16x2xf32>
    %c0_57 = arith.constant 0 : index
    %c0_58 = arith.constant 0 : index
    %174 = vector.load %arg15[%c0_57, %c0_58] : memref<1x2xf32, #tpu.memory_space<vmem>>, vector<1x2xf32>
    %175 = vector.broadcast %174 : vector<1x2xf32> to vector<16x2xf32>
    %176 = arith.addf %173, %175 : vector<16x2xf32>
    %177 = vector.extract_strided_slice %176 {offsets = [0, 0], sizes = [16, 1], strides = [1, 1]} : vector<16x2xf32> to vector<16x1xf32>
    %178 = vector.extract_strided_slice %176 {offsets = [0, 1], sizes = [16, 1], strides = [1, 1]} : vector<16x2xf32> to vector<16x1xf32>
    %179 = math.exp %178 : vector<16x1xf32>
    %180 = arith.mulf %179, %159 : vector<16x1xf32>
    %181 = arith.addf %180, %177 : vector<16x1xf32>
    %c0_59 = arith.constant 0 : index
    %c0_60 = arith.constant 0 : index
    %182 = vector.load %arg16[%c0_59, %c0_60] : memref<16x1xf32, #tpu.memory_space<vmem>>, vector<16x1xf32>
    tpu.vector_store %arg16[%c0_59, %c0_60], %181 {strides = array<i32>} : memref<16x1xf32, #tpu.memory_space<vmem>>, vector<16x1xf32>,
    return
  }
  func.func @transform_0(%arg0: i32) -> (i32, i32, i32) {
    %c0_i32 = arith.constant 0 : i32
    %c0_i32_0 = arith.constant 0 : i32
    %c0_i32_1 = arith.constant 0 : i32
    return %arg0, %c0_i32, %c0_i32_0 : i32, i32, i32
  }
  func.func @transform_1(%arg0: i32) -> (i32, i32) {
    %c0_i32 = arith.constant 0 : i32
    %c0_i32_0 = arith.constant 0 : i32
    return %arg0, %c0_i32 : i32, i32
  }
  func.func @transform_2(%arg0: i32) -> (i32, i32) {
    %c0_i32 = arith.constant 0 : i32
    %c0_i32_0 = arith.constant 0 : i32
    return %arg0, %c0_i32 : i32, i32
  }
  func.func @transform_3(%arg0: i32) -> (i32, i32, i32) {
    %c0_i32 = arith.constant 0 : i32
    %c0_i32_0 = arith.constant 0 : i32
    %c0_i32_1 = arith.constant 0 : i32
    return %arg0, %c0_i32, %c0_i32_0 : i32, i32, i32
  }
  func.func @transform_4(%arg0: i32) -> (i32, i32) {
    %c0_i32 = arith.constant 0 : i32
    %c0_i32_0 = arith.constant 0 : i32
    %c0_i32_1 = arith.constant 0 : i32
    return %c0_i32, %c0_i32_0 : i32, i32
  }
  func.func @transform_5(%arg0: i32) -> (i32, i32) {
    %c0_i32 = arith.constant 0 : i32
    %c0_i32_0 = arith.constant 0 : i32
    %c0_i32_1 = arith.constant 0 : i32
    return %c0_i32, %c0_i32_0 : i32, i32
  }
  func.func @transform_6(%arg0: i32) -> (i32, i32) {
    %c0_i32 = arith.constant 0 : i32
    %c0_i32_0 = arith.constant 0 : i32
    %c0_i32_1 = arith.constant 0 : i32
    return %c0_i32, %c0_i32_0 : i32, i32
  }
  func.func @transform_7(%arg0: i32) -> (i32, i32) {
    %c0_i32 = arith.constant 0 : i32
    %c0_i32_0 = arith.constant 0 : i32
    %c0_i32_1 = arith.constant 0 : i32
    return %c0_i32, %c0_i32_0 : i32, i32
  }
  func.func @transform_8(%arg0: i32) -> (i32, i32) {
    %c0_i32 = arith.constant 0 : i32
    %c0_i32_0 = arith.constant 0 : i32
    %c0_i32_1 = arith.constant 0 : i32
    return %c0_i32, %c0_i32_0 : i32, i32
  }
  func.func @transform_9(%arg0: i32) -> (i32, i32) {
    %c0_i32 = arith.constant 0 : i32
    %c0_i32_0 = arith.constant 0 : i32
    %c0_i32_1 = arith.constant 0 : i32
    return %c0_i32, %c0_i32_0 : i32, i32
  }
  func.func @transform_10(%arg0: i32) -> (i32, i32) {
    %c0_i32 = arith.constant 0 : i32
    %c0_i32_0 = arith.constant 0 : i32
    %c0_i32_1 = arith.constant 0 : i32
    return %c0_i32, %c0_i32_0 : i32, i32
  }
  func.func @transform_11(%arg0: i32) -> (i32, i32) {
    %c0_i32 = arith.constant 0 : i32
    %c0_i32_0 = arith.constant 0 : i32
    %c0_i32_1 = arith.constant 0 : i32
    return %c0_i32, %c0_i32_0 : i32, i32
  }
  func.func @transform_12(%arg0: i32) -> (i32, i32) {
    %c0_i32 = arith.constant 0 : i32
    %c0_i32_0 = arith.constant 0 : i32
    %c0_i32_1 = arith.constant 0 : i32
    return %c0_i32, %c0_i32_0 : i32, i32
  }
  func.func @transform_13(%arg0: i32) -> (i32, i32) {
    %c0_i32 = arith.constant 0 : i32
    %c0_i32_0 = arith.constant 0 : i32
    %c0_i32_1 = arith.constant 0 : i32
    return %c0_i32, %c0_i32_0 : i32, i32
  }
  func.func @transform_14(%arg0: i32) -> (i32, i32) {
    %c0_i32 = arith.constant 0 : i32
    %c0_i32_0 = arith.constant 0 : i32
    %c0_i32_1 = arith.constant 0 : i32
    return %c0_i32, %c0_i32_0 : i32, i32
  }
  func.func @transform_15(%arg0: i32) -> (i32, i32) {
    %c0_i32 = arith.constant 0 : i32
    %c0_i32_0 = arith.constant 0 : i32
    return %arg0, %c0_i32 : i32, i32
  }
}

</mosaic_0001>

<bundles_post_ra>
// kernel: tpu_custom_call.1
= control target key start
LH: loop header
LB: loop body
LE: loop exit
PB: predicated region body
PF: predicated region fallthrough
CT: control target
= control target key end

     0   :  { %s10836_s0 = inlined_call_operand.vmem [shape: f32[2,1,6144], index: 0, kind: input, shape index: {}]   ;;  %s10837_s1 = inlined_call_operand.hbm [shape: f32[32,384], index: 1, kind: input, shape index: {}]   ;;  %s10838_s2 = inlined_call_operand.vmem [shape: f32[32,4], index: 2, kind: input, shape index: {}]   ;;  %s10839_s3 = inlined_call_operand.vmem [shape: f32[2,4,16], index: 3, kind: input, shape index: {}]   ;;  %s10840_s4 = inlined_call_operand.vmem [shape: f32[32,1], index: 4, kind: input, shape index: {}]   ;;  %s10841_s5 = inlined_call_operand.vmem [shape: f32[32,4], index: 5, kind: input, shape index: {}]   ;;  %s10842_s6 = inlined_call_operand.vmem [shape: bf16[32,32], index: 6, kind: input, shape index: {}]   ;;  %s10843_s7 = inlined_call_operand.vmem [shape: f32[32,1], index: 7, kind: input, shape index: {}]   ;;  %s10844_s8 = inlined_call_operand.vmem [shape: f32[1,32], index: 8, kind: input, shape index: {}]   ;;  %s10845_s9 = inlined_call_operand.<no memory space> [shape: f32[1,1], index: 9, kind: input, shape index: {}]   ;;  %s10846_s10 = inlined_call_operand.vmem [shape: f32[4,32], index: 10, kind: input, shape index: {}]   ;;  %s10847_s11 = inlined_call_operand.vmem [shape: f32[32,32], index: 11, kind: input, shape index: {}]   ;;  %s10848_s12 = inlined_call_operand.vmem [shape: f32[1,32], index: 12, kind: input, shape index: {}]   ;;  %s10849_s13 = inlined_call_operand.vmem [shape: f32[32,2], index: 13, kind: input, shape index: {}]   ;;  %s10850_s14 = inlined_call_operand.vmem [shape: f32[1,2], index: 14, kind: input, shape index: {}]   ;;  %s10851_s15 = inlined_call_operand.vmem [shape: f32[32,1], index: 15, kind: output, shape index: {}]  }
   0x1   :  { %v20_v0 = vstv %s10845_s9 }
   0x2   :  { %21 = vst [vmem:[#allocation2] sm:$0x1] %v20_v0 }
   0x3   :  { %22 = vsyncpa [#allocation4], 0 }
   0x4   :  { %24 = vsyncpa [#allocation4 + $0x1], 0  ;;  %s8834_s20 = smov 0   ;;  %s8836_s21 = smov 0  }
   0x5   :  { %s8838_s22 = smov 0   ;;  %s8840_s23 = smov 0  }
   0x6 LB: > { %10871 = sst [smem:[#allocation6_spill]] %s8723_s22  ;;  %s8853_s9 = sadd.s32 4294967295, %s8727_s23   ;;  %s8727_s23 = sphi %s8840_s23, %s11183_s23   ;;  %s8723_s22 = sphi %s8838_s22, %s11185_s22   ;;  %s8719_s21 = sphi %s8836_s21, %s11187_s21   ;;  %s8715_s20 = sphi %s8834_s20, %s11186_s20  }
   0x7   : > { %s8856_s24 = sadd.s32 1, %s8727_s23   ;;  %s63_s26 = sadd.s32 1, %s8723_s22 }
   0x8   : > { %10872 = sst [smem:[#allocation7_spill]] %s8856_s24  ;;  %s60_s25 = ssub.s32 %s8727_s23, %s8856_s24 }
   0x9   : > { %p61_p0 = scmp.eq.s32.totalorder %s60_s25, 0  ;;  %p70_p1 = scmp.ne.s32.totalorder %s8723_s22, %s8719_s21 }
   0xa   : > { %p71_p2 = scmp.eq.s32.totalorder %s8727_s23, 0  ;;  %p76_p3 = scmp.ne.s32.totalorder %s8719_s21, %s8715_s20 }
   0xb   : > { %s8866_s27 = scalar_select %p61_p0, %s8723_s22, %s63_s26  }
   0xc   : > { %p72_p4 = por %p71_p2, %p70_p1  ;;  %p77_p5 = scmp.eq.s32.totalorder %s8853_s9, 0 }
   0xd   : > { %10873 = sst [smem:[#allocation8_spill]] %s8866_s27  ;;  %p8462_p6 = scmp.lt.s32.totalorder %s8727_s23, 2 }
   0xe   : > { %p8870_p7 = por %p77_p5, %p76_p3  ;;  %s449_s29 = sand.u32 1, %s8723_s22  }
   0xf   : > { %s8452_s30 = smul.u32 48, %s449_s29  ;;  %p8876_p8 = pnand %p8462_p6, %p72_p4 }
  0x10   : > { %s8453_s16 = smul.u32 768, %s8727_s23  ;;  %s8888_s27 = scalar_lea.sflag [#allocation4], %s449_s29 }
  0x11   : > { %s453_s25 = scalar_lea.vmem [#allocation3], %s8452_s30  ;;  %p8665_p11 = pneg %p8876_p8 }
  0x12   : > { %s8883_s20 = scalar_lea.hbm %s10837_s1, %s8453_s16  ;;  %s461_s26 = sshll.u32 %s453_s25, 4  ;;  %s8885_s26 = int_to_ptr.vmem [resolvable:$true] %s461_s26 }
  0x13   : > { %s8663_s22 = scalar_lea.hbm %s8883_s20, 768  ;;  %s8668_s19 = scalar_lea.hbm %s10837_s1, 1536 }
  0x14   : > { %p8664_p10 = scmp.ne.s32.totalorder %s8883_s20, %s8663_s22  ;;  %p8669_p0 = scmp.lt.u32.totalorder %s8883_s20, %s10837_s1 }
  0x15   : > { %p8670_p1 = scmp.lt.u32.totalorder %s8668_s19, %s8663_s22  ;;  %p8672_p3 = scmp.lt.u32.totalorder %s8663_s22, %s8883_s20 }
  0x16   : > { %p8666_p12 = pnand %p8665_p11, %p8664_p10 }
  0x17   : > { %p8671_p2 = por %p8670_p1, %p8669_p0 }
  0x18   : > { %p8667_p13 = pneg %p8666_p12 }
  0x19   : > { %p8673_p4 = por %p8672_p3, %p8671_p2 }
  0x1b   : > { %p8674_p5 = pnand %p8673_p4, %p8667_p13 }
  0x1d   : > { %8677 = shalt.err (!%p8674_p5)
}
  0x1e   : > { %s8678_s29 = scalar_lea.vmem %s8885_s26, 768  ;;  %s8729_s25 = smov [#allocation3]  }
  0x1f   : > { %p8679_p6 = scmp.ne.s32.totalorder %s8885_s26, %s8678_s29  ;;  %s8683_s16 = sshll.u32 %s8729_s25, 4  ;;  %s8684_s16 = int_to_ptr.vmem [resolvable:$false] %s8683_s16 }
  0x20   : > { %s8685_s24 = scalar_lea.vmem %s8684_s16, 1536  ;;  %p8686_p9 = scmp.lt.s32.totalorder %s8885_s26, %s8684_s16 }
  0x21   : > { %p8681_p10 = pnand %p8679_p6, %p8665_p11  ;;  %p8687_p0 = scmp.lt.s32.totalorder %s8685_s24, %s8678_s29 }
  0x23   : > { %p8682_p12 = pneg %p8681_p10  ;;  %p8688_p1 = por %p8687_p0, %p8686_p9 }
  0x25   : > { %p8689_p2 = pnand %p8688_p1, %p8682_p12 }
  0x27   : > { %8692 = shalt.err (!%p8689_p2)
}
  0x28   : > { %s8730_s22 = smov 384   ;;  %s8731_s18 = smov 24  }
  0x29   : > { %8461 = dma.hbm_to_vmem [thread:$0]  (!%p8876_p8), %s8883_s20, 768, %s8885_s26, %s8888_s27, %s8730_s22, %s8730_s22, %s8731_s18  }
  0x2a   : > { %p485_p11 = scmp.lt.s32.totalorder %s8727_s23, 3  ;;  %p10876_p13 = scmp.ge.s32.totalorder %s8727_s23, 1 }
  0x2c   : > { %p486_p3 = pnand %p10876_p13, %p485_p11 }
  0x2e   : > { %489 = sbr.rel (%p486_p3) target bundleno = 1919 (0x77f), region = 80 }
  0x35   : > { %s491_s19 = sand.u32 1, %s8719_s21  }
  0x36   : > { %s8454_s30 = smul.u32 48, %s491_s19  ;;  %s492_s29 = scalar_lea.sflag [#allocation4], %s491_s19 }
  0x38   : > { %s8920_s25 = scalar_lea.vmem [#allocation3], %s8454_s30 }
  0x39   : > { %8710 = dma.done.wait (%p8870_p7), %s492_s29, 768  }
  0x3a   : > { %8712 = vsyncadd (%p8870_p7), %s492_s29, 4294966528  ;;  %p555_p9 = scmp.lt.s32.totalorder %s8853_s9, 1  ;;  %v593_v1 = vlaneseq  ;;  %v10855_v2 = vmov 0.0   ;;  %vm798_vm0 = vcmask 1040384   ;;  %v8967_v13 = vld [vmem:[%s10840_s4] sm:$0xff]  ;;  %vm785_vm1 = vcmask 7168  }
  0x3b   : > { %959 = vmatprep.mubr.f32.mxu0 %v10855_v2  ;;  %1048 = vmatprep.mubr.f32.mxu1 %v10855_v2  ;;  %v8982_v16 = vld [vmem:[%s10840_s4 + $0x8] sm:$0xff]  ;;  %v8992_v17 = vld [vmem:[%s10840_s4 + $0x10] sm:$0xff]  ;;  %v9000_v18 = vld [vmem:[%s10840_s4 + $0x18] sm:$0xff]  ;;  %vm3049_vm2 = vcmask 1043456   ;;  %vm3036_vm3 = vcmask 31744   ;;  %vm3916_vm4 = vcmask 261120  }
  0x3c   : > { %s8930_s23 = scalar_select %p555_p9, %s8853_s9, 1  ;;  %v8932_v3 = vshrl.u32 %v593_v1, 7  ;;  %v3031_v57 = vld [vmem:[%s10841_s5] sm:$0xff]  ;;  %v3032_v58 = vld [vmem:[%s10841_s5 + $0x8] sm:$0xff]  ;;  %v3033_v59 = vld [vmem:[%s10841_s5 + $0x10] sm:$0xff]  ;;  %vm7474_vm5 = vcmask 1041408  }
  0x3d   : > { %v3034_v62 = vld [vmem:[%s10841_s5 + $0x18] sm:$0xff]  ;;  %s7950_s16 = sshll.u32 %s8853_s9, 1  ;;  %vm7478_vm6 = vcmask 1042432   ;;  %vm7485_vm7 = vcmask 1044480   ;;  %vm7489_vm8 = vcmask 1045504   ;;  %vm7493_vm9 = vcmask 1046528  }
  0x3e   : > { %s8455_s27 = smul.u32 48, %s8930_s23  ;;  %v8936_v4 = vsub.s32 1, %v8932_v3  ;;  %v8939_v5 = vsub.s32 0, %v8932_v3  ;;  %v8942_v6 = vsub.s32 5, %v8932_v3  ;;  %v8945_v7 = vsub.s32 4, %v8932_v3  ;;  %p10621_p7 = scmp.lt.s32.totalorder %s7950_s16, 3 }
  0x3f   : > { %v9122_v34 = vsub.s32 3, %v8932_v3  ;;  %v9128_v36 = vsub.s32 2, %v8932_v3  ;;  %v9164_v41 = vsub.s32 7, %v8932_v3  ;;  %v9170_v43 = vsub.s32 6, %v8932_v3  ;;  %s8749_s22 = smov 1   ;;  %s8750_s18 = smov 127  }
  0x40   : > { %10877 = vst [vmem:[#allocation9_spill] sm:$0xff] %v8939_v5  ;;  %s8950_s20 = scalar_lea.vmem %s10836_s0, %s8455_s27  ;;  %s7952_s27 = sshll.u32 %s8930_s23, 2 }
  0x41   : > { %v8953_v8 = vld [vmem:[%s8950_s20] sm:$0xff]  ;;  %v8962_v12 = vld [vmem:[%s8950_s20 + $0x8] sm:$0xff]  ;;  %v9021_v21 = vld [vmem:[%s8950_s20 + $0x10] sm:$0xff]  ;;  %s11189_s16 = smov (!%p10621_p7, %s7950_s16), 3 }
  0x42   : > { %v600_v9 = vrot.slane %v8953_v8, %v8936_v4  ;;  %v596_v10 = vrot.slane %v8953_v8, %v8939_v5  ;;  %v616_v11 = vrot.slane %v8953_v8, %v8942_v6  ;;  %v612_v14 = vrot.slane %v8953_v8, %v8945_v7  ;;  %v9060_v26 = vld [vmem:[%s8950_s20 + $0x18] sm:$0xff]  ;;  %v9099_v31 = vld [vmem:[%s8950_s20 + $0x20] sm:$0xff]  ;;  %v9156_v40 = vld [vmem:[%s8950_s20 + $0x28] sm:$0xff]  ;;  %s569_s20 = scalar_lea.vmem %s10839_s3, %s7952_s27  ;;  %s7951_s9 = sshll.u32 %s11189_s16, 3 }
  0x43   : > { %v632_v15 = vrot.slane %v8962_v12, %v8936_v4  ;;  %v628_v19 = vrot.slane %v8962_v12, %v8939_v5  ;;  %v648_v20 = vrot.slane %v8962_v12, %v8942_v6  ;;  %v644_v22 = vrot.slane %v8962_v12, %v8945_v7  ;;  %v3035_v53 = vld [vmem:[%s569_s20] sm:$0xf]  ;;  %s564_s29 = scalar_lea.vmem %s10838_s2, %s7951_s9 }
  0x44   : > { %7955 = vmatprep.subr.msk.mxu0 %vm798_vm0, %v600_v9  ;;  %v664_v23 = vrot.slane %v9021_v21, %v8936_v4  ;;  %v660_v24 = vrot.slane %v9021_v21, %v8939_v5  ;;  %v680_v25 = vrot.slane %v9021_v21, %v8942_v6  ;;  %v676_v27 = vrot.slane %v9021_v21, %v8945_v7 }
  0x45   : > { %7956 = vmatpush1.msk.msra.mxu0 %vm798_vm0, %v596_v10  ;;  %v696_v28 = vrot.slane %v9060_v26, %v8936_v4  ;;  %v692_v29 = vrot.slane %v9060_v26, %v8939_v5  ;;  %v712_v30 = vrot.slane %v9060_v26, %v8942_v6  ;;  %v708_v32 = vrot.slane %v9060_v26, %v8945_v7 }
  0x46   : > { %7957 = vmatmul.mubr.msk.f32.vlgmr.msra.gmra.mrb[0].mxu0 %vm785_vm1, %v8967_v13  ;;  %7967 = vmatprep.subr.msk.mxu0 %vm798_vm0, %v616_v11  ;;  %v728_v33 = vrot.slane %v9099_v31, %v8936_v4  ;;  %v724_v35 = vrot.slane %v9099_v31, %v8939_v5  ;;  %v744_v37 = vrot.slane %v9099_v31, %v8942_v6 }
  0x47   : > { %965 = vmatprep.mubr.f32.mxu0 %v10855_v2  ;;  %7968 = vmatpush1.msk.msra.mxu0 %vm798_vm0, %v612_v14  ;;  %v608_v38 = vrot.slane %v8953_v8, %v9122_v34  ;;  %v604_v39 = vrot.slane %v8953_v8, %v9128_v36  ;;  %v740_v42 = vrot.slane %v9099_v31, %v8945_v7 }
  0x48   : > { %7979 = vmatprep.subr.msk.mxu0 %vm798_vm0, %v632_v15  ;;  %v760_v44 = vrot.slane %v9156_v40, %v8936_v4  ;;  %v624_v45 = vrot.slane %v8953_v8, %v9164_v41  ;;  %v620_v46 = vrot.slane %v8953_v8, %v9170_v43  ;;  %v756_v47 = vrot.slane %v9156_v40, %v8939_v5 }
  0x49   : > { %7961 = vmatprep.subr.msk.mxu1 %vm798_vm0, %v608_v38  ;;  %v776_v48 = vrot.slane %v9156_v40, %v8942_v6  ;;  %v640_v49 = vrot.slane %v8962_v12, %v9122_v34  ;;  %v636_v50 = vrot.slane %v8962_v12, %v9128_v36  ;;  %v772_v51 = vrot.slane %v9156_v40, %v8945_v7 }
  0x4a   : > { %7958 = vmatmul.mubr.msk.f32.gmra.mrb[2].mxu0 %vm785_vm1, %v8982_v16  ;;  %7962 = vmatpush1.msk.msra.mxu1 %vm798_vm0, %v604_v39  ;;  %v656_v52 = vrot.slane %v8962_v12, %v9164_v41  ;;  %v652_v54 = vrot.slane %v8962_v12, %v9170_v43  ;;  %v672_v55 = vrot.slane %v9021_v21, %v9122_v34 }
  0x4b   : > { %971 = vmatprep.mubr.f32.mxu0 %v10855_v2  ;;  %7963 = vmatmul.mubr.msk.f32.vlgmr.msra.gmra.mrb[0].mxu1 %vm785_vm1, %v8967_v13  ;;  %v668_v56 = vrot.slane %v9021_v21, %v9128_v36  ;;  %v688_v60 = vrot.slane %v9021_v21, %v9164_v41  ;;  %v684_v61 = vrot.slane %v9021_v21, %v9170_v43 }
  0x4c   : > { %1054 = vmatprep.mubr.f32.mxu1 %v10855_v2  ;;  %7973 = vmatprep.subr.msk.mxu1 %vm798_vm0, %v624_v45  ;;  %v704_v63 = vrot.slane %v9060_v26, %v9122_v34  ;;  %v700_v0 = vrot.slane %v9060_v26, %v9128_v36  ;;  %v720_v9 = vrot.slane %v9060_v26, %v9164_v41 }
  0x4d   : > { %7974 = vmatpush1.msk.msra.mxu1 %vm798_vm0, %v620_v46  ;;  %v716_v11 = vrot.slane %v9060_v26, %v9170_v43  ;;  %v748_v38 = vrot.slane %v9099_v31, %v9170_v43 }
  0x4e   : > { %7959 = vmatmul.mubr.msk.f32.gmra.mrb[4].mxu0 %vm785_vm1, %v8992_v17  ;;  %7985 = vmatprep.subr.msk.mxu1 %vm798_vm0, %v640_v49 }
  0x4f   : > { %977 = vmatprep.mubr.f32.mxu0 %v10855_v2  ;;  %7964 = vmatmul.mubr.msk.f32.gmra.mrb[2].mxu1 %vm785_vm1, %v8982_v16 }
  0x50   : > { %1060 = vmatprep.mubr.f32.mxu1 %v10855_v2 }
  0x52   : > { %7960 = vmatmul.mubr.msk.f32.gmra.mrb[6].mxu0 %vm785_vm1, %v9000_v18 }
  0x53   : > { %1137 = vmatprep.mubr.f32.mxu0 %v10855_v2  ;;  %7965 = vmatmul.mubr.msk.f32.gmra.mrb[4].mxu1 %vm785_vm1, %v8992_v17 }
  0x54   : > { %1066 = vmatprep.mubr.f32.mxu1 %v10855_v2 }
  0x56   : > { %7969 = vmatmul.mubr.msk.f32.vlgmr.msra.gmra.mrb[8].mxu0 %vm785_vm1, %v8967_v13 }
  0x57   : > { %1143 = vmatprep.mubr.f32.mxu0 %v10855_v2  ;;  %7980 = vmatpush1.msk.msra.mxu0 %vm798_vm0, %v628_v19 }
  0x58   : > { %7991 = vmatprep.subr.msk.mxu0 %vm798_vm0, %v648_v20  ;;  %7966 = vmatmul.mubr.msk.f32.gmra.mrb[6].mxu1 %vm785_vm1, %v9000_v18 }
  0x59   : > { %1226 = vmatprep.mubr.f32.mxu1 %v10855_v2 }
  0x5a   : > { %7970 = vmatmul.mubr.msk.f32.gmra.mrb[10].mxu0 %vm785_vm1, %v8982_v16 }
  0x5b   : > { %1149 = vmatprep.mubr.f32.mxu0 %v10855_v2 }
  0x5c   : > { %7975 = vmatmul.mubr.msk.f32.vlgmr.msra.gmra.mrb[8].mxu1 %vm785_vm1, %v8967_v13 }
  0x5d   : > { %1232 = vmatprep.mubr.f32.mxu1 %v10855_v2  ;;  %7986 = vmatpush1.msk.msra.mxu1 %vm798_vm0, %v636_v50  ;;  %v764_v50 = vrot.slane %v9156_v40, %v9128_v36 }
  0x5e   : > { %7971 = vmatmul.mubr.msk.f32.gmra.mrb[12].mxu0 %vm785_vm1, %v8992_v17  ;;  %7997 = vmatprep.subr.msk.mxu1 %vm798_vm0, %v656_v52 }
  0x5f   : > { %1155 = vmatprep.mubr.f32.mxu0 %v10855_v2 }
  0x60   : > { %7976 = vmatmul.mubr.msk.f32.gmra.mrb[10].mxu1 %vm785_vm1, %v8982_v16 }
  0x61   : > { %1238 = vmatprep.mubr.f32.mxu1 %v10855_v2 }
  0x62   : > { %7972 = vmatmul.mubr.msk.f32.gmra.mrb[14].mxu0 %vm785_vm1, %v9000_v18 }
  0x63   : > { %1315 = vmatprep.mubr.f32.mxu0 %v10855_v2 }
  0x64   : > { %7977 = vmatmul.mubr.msk.f32.gmra.mrb[12].mxu1 %vm785_vm1, %v8992_v17 }
  0x65   : > { %1244 = vmatprep.mubr.f32.mxu1 %v10855_v2 }
  0x66   : > { %7981 = vmatmul.mubr.msk.f32.vlgmr.msra.gmra.mrb[16].mxu0 %vm785_vm1, %v8967_v13 }
  0x67   : > { %1321 = vmatprep.mubr.f32.mxu0 %v10855_v2  ;;  %7992 = vmatpush1.msk.msra.mxu0 %vm798_vm0, %v644_v22 }
  0x68   : > { %8003 = vmatprep.subr.msk.mxu0 %vm798_vm0, %v664_v23  ;;  %7978 = vmatmul.mubr.msk.f32.gmra.mrb[14].mxu1 %vm785_vm1, %v9000_v18  ;;  %v736_v23 = vrot.slane %v9099_v31, %v9122_v34 }
  0x69   : > { %1404 = vmatprep.mubr.f32.mxu1 %v10855_v2 }
  0x6a   : > { %7982 = vmatmul.mubr.msk.f32.gmra.mrb[18].mxu0 %vm785_vm1, %v8982_v16 }
  0x6b   : > { %1327 = vmatprep.mubr.f32.mxu0 %v10855_v2 }
  0x6c   : > { %7987 = vmatmul.mubr.msk.f32.vlgmr.msra.gmra.mrb[16].mxu1 %vm785_vm1, %v8967_v13 }
  0x6d   : > { %1410 = vmatprep.mubr.f32.mxu1 %v10855_v2  ;;  %7998 = vmatpush1.msk.msra.mxu1 %vm798_vm0, %v652_v54 }
  0x6e   : > { %7983 = vmatmul.mubr.msk.f32.gmra.mrb[20].mxu0 %vm785_vm1, %v8992_v17  ;;  %8009 = vmatprep.subr.msk.mxu1 %vm798_vm0, %v672_v55 }
  0x6f   : > { %1333 = vmatprep.mubr.f32.mxu0 %v10855_v2 }
  0x70   : > { %7988 = vmatmul.mubr.msk.f32.gmra.mrb[18].mxu1 %vm785_vm1, %v8982_v16 }
  0x71   : > { %1416 = vmatprep.mubr.f32.mxu1 %v10855_v2 }
  0x72   : > { %7984 = vmatmul.mubr.msk.f32.gmra.mrb[22].mxu0 %vm785_vm1, %v9000_v18 }
  0x73   : > { %1493 = vmatprep.mubr.f32.mxu0 %v10855_v2 }
  0x74   : > { %7989 = vmatmul.mubr.msk.f32.gmra.mrb[20].mxu1 %vm785_vm1, %v8992_v17 }
  0x75   : > { %1422 = vmatprep.mubr.f32.mxu1 %v10855_v2 }
  0x76   : > { %7993 = vmatmul.mubr.msk.f32.vlgmr.msra.gmra.mrb[24].mxu0 %vm785_vm1, %v8967_v13 }
  0x77   : > { %1499 = vmatprep.mubr.f32.mxu0 %v10855_v2  ;;  %8004 = vmatpush1.msk.msra.mxu0 %vm798_vm0, %v660_v24 }
  0x78   : > { %8015 = vmatprep.subr.msk.mxu0 %vm798_vm0, %v680_v25  ;;  %7990 = vmatmul.mubr.msk.f32.gmra.mrb[22].mxu1 %vm785_vm1, %v9000_v18  ;;  %v732_v25 = vrot.slane %v9099_v31, %v9128_v36 }
  0x79   : > { %1582 = vmatprep.mubr.f32.mxu1 %v10855_v2 }
  0x7a   : > { %7994 = vmatmul.mubr.msk.f32.gmra.mrb[26].mxu0 %vm785_vm1, %v8982_v16 }
  0x7b   : > { %1505 = vmatprep.mubr.f32.mxu0 %v10855_v2 }
  0x7c   : > { %7999 = vmatmul.mubr.msk.f32.vlgmr.msra.gmra.mrb[24].mxu1 %vm785_vm1, %v8967_v13 }
  0x7d   : > { %1588 = vmatprep.mubr.f32.mxu1 %v10855_v2  ;;  %8010 = vmatpush1.msk.msra.mxu1 %vm798_vm0, %v668_v56 }
  0x7e   : > { %7995 = vmatmul.mubr.msk.f32.gmra.mrb[28].mxu0 %vm785_vm1, %v8992_v17  ;;  %8021 = vmatprep.subr.msk.mxu1 %vm798_vm0, %v688_v60 }
  0x7f   : > { %1511 = vmatprep.mubr.f32.mxu0 %v10855_v2 }
  0x80   : > { %8000 = vmatmul.mubr.msk.f32.gmra.mrb[26].mxu1 %vm785_vm1, %v8982_v16 }
  0x81   : > { %1594 = vmatprep.mubr.f32.mxu1 %v10855_v2 }
  0x82   : > { %7996 = vmatmul.mubr.msk.f32.gmra.mrb[30].mxu0 %vm785_vm1, %v9000_v18 }
  0x83   : > { %1671 = vmatprep.mubr.f32.mxu0 %v10855_v2 }
  0x84   : > { %8001 = vmatmul.mubr.msk.f32.gmra.mrb[28].mxu1 %vm785_vm1, %v8992_v17 }
  0x85   : > { %1600 = vmatprep.mubr.f32.mxu1 %v10855_v2 }
  0x86   : > { %8005 = vmatmul.mubr.msk.f32.vlgmr.msra.gmra.mrb[32].mxu0 %vm785_vm1, %v8967_v13 }
  0x87   : > { %1677 = vmatprep.mubr.f32.mxu0 %v10855_v2  ;;  %8016 = vmatpush1.msk.msra.mxu0 %vm798_vm0, %v676_v27 }
  0x88   : > { %8027 = vmatprep.subr.msk.mxu0 %vm798_vm0, %v696_v28  ;;  %8002 = vmatmul.mubr.msk.f32.gmra.mrb[30].mxu1 %vm785_vm1, %v9000_v18 }
  0x89   : > { %1760 = vmatprep.mubr.f32.mxu1 %v10855_v2 }
  0x8a   : > { %8006 = vmatmul.mubr.msk.f32.gmra.mrb[34].mxu0 %vm785_vm1, %v8982_v16 }
  0x8b   : > { %1683 = vmatprep.mubr.f32.mxu0 %v10855_v2 }
  0x8c   : > { %8011 = vmatmul.mubr.msk.f32.vlgmr.msra.gmra.mrb[32].mxu1 %vm785_vm1, %v8967_v13 }
  0x8d   : > { %1766 = vmatprep.mubr.f32.mxu1 %v10855_v2  ;;  %8022 = vmatpush1.msk.msra.mxu1 %vm798_vm0, %v684_v61 }
  0x8e   : > { %8007 = vmatmul.mubr.msk.f32.gmra.mrb[36].mxu0 %vm785_vm1, %v8992_v17  ;;  %8033 = vmatprep.subr.msk.mxu1 %vm798_vm0, %v704_v63 }
  0x8f   : > { %1689 = vmatprep.mubr.f32.mxu0 %v10855_v2 }
  0x90   : > { %8012 = vmatmul.mubr.msk.f32.gmra.mrb[34].mxu1 %vm785_vm1, %v8982_v16 }
  0x91   : > { %1772 = vmatprep.mubr.f32.mxu1 %v10855_v2 }
  0x92   : > { %8008 = vmatmul.mubr.msk.f32.gmra.mrb[38].mxu0 %vm785_vm1, %v9000_v18 }
  0x93   : > { %1849 = vmatprep.mubr.f32.mxu0 %v10855_v2 }
  0x94   : > { %8013 = vmatmul.mubr.msk.f32.gmra.mrb[36].mxu1 %vm785_vm1, %v8992_v17 }
  0x95   : > { %1778 = vmatprep.mubr.f32.mxu1 %v10855_v2 }
  0x96   : > { %8017 = vmatmul.mubr.msk.f32.vlgmr.msra.gmra.mrb[40].mxu0 %vm785_vm1, %v8967_v13 }
  0x97   : > { %1855 = vmatprep.mubr.f32.mxu0 %v10855_v2  ;;  %8028 = vmatpush1.msk.msra.mxu0 %vm798_vm0, %v692_v29 }
  0x98   : > { %8039 = vmatprep.subr.msk.mxu0 %vm798_vm0, %v712_v30  ;;  %8014 = vmatmul.mubr.msk.f32.gmra.mrb[38].mxu1 %vm785_vm1, %v9000_v18 }
  0x99   : > { %1938 = vmatprep.mubr.f32.mxu1 %v10855_v2 }
  0x9a   : > { %8018 = vmatmul.mubr.msk.f32.gmra.mrb[42].mxu0 %vm785_vm1, %v8982_v16 }
  0x9b   : > { %1861 = vmatprep.mubr.f32.mxu0 %v10855_v2 }
  0x9c   : > { %8023 = vmatmul.mubr.msk.f32.vlgmr.msra.gmra.mrb[40].mxu1 %vm785_vm1, %v8967_v13 }
  0x9d   : > { %1944 = vmatprep.mubr.f32.mxu1 %v10855_v2  ;;  %8034 = vmatpush1.msk.msra.mxu1 %vm798_vm0, %v700_v0 }
  0x9e   : > { %8019 = vmatmul.mubr.msk.f32.gmra.mrb[44].mxu0 %vm785_vm1, %v8992_v17  ;;  %8045 = vmatprep.subr.msk.mxu1 %vm798_vm0, %v720_v9 }
  0x9f   : > { %1867 = vmatprep.mubr.f32.mxu0 %v10855_v2 }
  0xa0   : > { %8024 = vmatmul.mubr.msk.f32.gmra.mrb[42].mxu1 %vm785_vm1, %v8982_v16 }
  0xa1   : > { %1950 = vmatprep.mubr.f32.mxu1 %v10855_v2 }
  0xa2   : > { %8020 = vmatmul.mubr.msk.f32.gmra.mrb[46].mxu0 %vm785_vm1, %v9000_v18 }
  0xa3   : > { %2027 = vmatprep.mubr.f32.mxu0 %v10855_v2 }
  0xa4   : > { %8025 = vmatmul.mubr.msk.f32.gmra.mrb[44].mxu1 %vm785_vm1, %v8992_v17 }
  0xa5   : > { %1956 = vmatprep.mubr.f32.mxu1 %v10855_v2 }
  0xa6   : > { %8029 = vmatmul.mubr.msk.f32.vlgmr.msra.gmra.mrb[48].mxu0 %vm785_vm1, %v8967_v13 }
  0xa7   : > { %2033 = vmatprep.mubr.f32.mxu0 %v10855_v2  ;;  %8040 = vmatpush1.msk.msra.mxu0 %vm798_vm0, %v708_v32 }
  0xa8   : > { %8051 = vmatprep.subr.msk.mxu0 %vm798_vm0, %v728_v33  ;;  %8026 = vmatmul.mubr.msk.f32.gmra.mrb[46].mxu1 %vm785_vm1, %v9000_v18 }
  0xa9   : > { %2116 = vmatprep.mubr.f32.mxu1 %v10855_v2 }
  0xaa   : > { %8030 = vmatmul.mubr.msk.f32.gmra.mrb[50].mxu0 %vm785_vm1, %v8982_v16 }
  0xab   : > { %2039 = vmatprep.mubr.f32.mxu0 %v10855_v2 }
  0xac   : > { %8035 = vmatmul.mubr.msk.f32.vlgmr.msra.gmra.mrb[48].mxu1 %vm785_vm1, %v8967_v13 }
  0xad   : > { %2122 = vmatprep.mubr.f32.mxu1 %v10855_v2  ;;  %8046 = vmatpush1.msk.msra.mxu1 %vm798_vm0, %v716_v11 }
  0xae   : > { %8031 = vmatmul.mubr.msk.f32.gmra.mrb[52].mxu0 %vm785_vm1, %v8992_v17  ;;  %8057 = vmatprep.subr.msk.mxu1 %vm798_vm0, %v736_v23 }
  0xaf   : > { %2045 = vmatprep.mubr.f32.mxu0 %v10855_v2 }
  0xb0   : > { %8036 = vmatmul.mubr.msk.f32.gmra.mrb[50].mxu1 %vm785_vm1, %v8982_v16 }
  0xb1   : > { %2128 = vmatprep.mubr.f32.mxu1 %v10855_v2 }
  0xb2   : > { %8032 = vmatmul.mubr.msk.f32.gmra.mrb[54].mxu0 %vm785_vm1, %v9000_v18 }
  0xb3   : > { %2205 = vmatprep.mubr.f32.mxu0 %v10855_v2 }
  0xb4   : > { %8037 = vmatmul.mubr.msk.f32.gmra.mrb[52].mxu1 %vm785_vm1, %v8992_v17 }
  0xb5   : > { %2134 = vmatprep.mubr.f32.mxu1 %v10855_v2 }
  0xb6   : > { %8041 = vmatmul.mubr.msk.f32.vlgmr.msra.gmra.mrb[56].mxu0 %vm785_vm1, %v8967_v13 }
  0xb7   : > { %2211 = vmatprep.mubr.f32.mxu0 %v10855_v2  ;;  %8052 = vmatpush1.msk.msra.mxu0 %vm798_vm0, %v724_v35  ;;  %v752_v35 = vrot.slane %v9099_v31, %v9164_v41 }
  0xb8   : > { %8063 = vmatprep.subr.msk.mxu0 %vm798_vm0, %v744_v37  ;;  %8038 = vmatmul.mubr.msk.f32.gmra.mrb[54].mxu1 %vm785_vm1, %v9000_v18 }
  0xb9   : > { %2294 = vmatprep.mubr.f32.mxu1 %v10855_v2 }
  0xba   : > { %8042 = vmatmul.mubr.msk.f32.gmra.mrb[58].mxu0 %vm785_vm1, %v8982_v16 }
  0xbb   : > { %2217 = vmatprep.mubr.f32.mxu0 %v10855_v2 }
  0xbc   : > { %8047 = vmatmul.mubr.msk.f32.vlgmr.msra.gmra.mrb[56].mxu1 %vm785_vm1, %v8967_v13 }
  0xbd   : > { %2300 = vmatprep.mubr.f32.mxu1 %v10855_v2  ;;  %8058 = vmatpush1.msk.msra.mxu1 %vm798_vm0, %v732_v25 }
  0xbe   : > { %8043 = vmatmul.mubr.msk.f32.gmra.mrb[60].mxu0 %vm785_vm1, %v8992_v17  ;;  %8069 = vmatprep.subr.msk.mxu1 %vm798_vm0, %v752_v35 }
  0xbf   : > { %2223 = vmatprep.mubr.f32.mxu0 %v10855_v2 }
  0xc0   : > { %8048 = vmatmul.mubr.msk.f32.gmra.mrb[58].mxu1 %vm785_vm1, %v8982_v16 }
  0xc1   : > { %2306 = vmatprep.mubr.f32.mxu1 %v10855_v2 }
  0xc2   : > { %8044 = vmatmul.mubr.msk.f32.gmra.mrb[62].mxu0 %vm785_vm1, %v9000_v18 }
  0xc3   : > { %2383 = vmatprep.mubr.f32.mxu0 %v10855_v2 }
  0xc4   : > { %8049 = vmatmul.mubr.msk.f32.gmra.mrb[60].mxu1 %vm785_vm1, %v8992_v17 }
  0xc5   : > { %2312 = vmatprep.mubr.f32.mxu1 %v10855_v2 }
  0xc6   : > { %8053 = vmatmul.mubr.msk.f32.vlgmr.msra.gmra.mrb[64].mxu0 %vm785_vm1, %v8967_v13 }
  0xc7   : > { %2389 = vmatprep.mubr.f32.mxu0 %v10855_v2  ;;  %8064 = vmatpush1.msk.msra.mxu0 %vm798_vm0, %v740_v42 }
  0xc8   : > { %8075 = vmatprep.subr.msk.mxu0 %vm798_vm0, %v760_v44  ;;  %8050 = vmatmul.mubr.msk.f32.gmra.mrb[62].mxu1 %vm785_vm1, %v9000_v18 }
  0xc9   : > { %2472 = vmatprep.mubr.f32.mxu1 %v10855_v2 }
  0xca   : > { %8054 = vmatmul.mubr.msk.f32.gmra.mrb[66].mxu0 %vm785_vm1, %v8982_v16 }
  0xcb   : > { %2395 = vmatprep.mubr.f32.mxu0 %v10855_v2 }
  0xcc   : > { %8059 = vmatmul.mubr.msk.f32.vlgmr.msra.gmra.mrb[64].mxu1 %vm785_vm1, %v8967_v13 }
  0xcd   : > { %2478 = vmatprep.mubr.f32.mxu1 %v10855_v2  ;;  %8070 = vmatpush1.msk.msra.mxu1 %vm798_vm0, %v748_v38 }
  0xce   : > { %8055 = vmatmul.mubr.msk.f32.gmra.mrb[68].mxu0 %vm785_vm1, %v8992_v17 }
  0xcf   : > { %2401 = vmatprep.mubr.f32.mxu0 %v10855_v2 }
  0xd0   : > { %8060 = vmatmul.mubr.msk.f32.gmra.mrb[66].mxu1 %vm785_vm1, %v8982_v16 }
  0xd1   : > { %2484 = vmatprep.mubr.f32.mxu1 %v10855_v2 }
  0xd2   : > { %8056 = vmatmul.mubr.msk.f32.gmra.mrb[70].mxu0 %vm785_vm1, %v9000_v18 }
  0xd3   : > { %2561 = vmatprep.mubr.f32.mxu0 %v10855_v2 }
  0xd4   : > { %8061 = vmatmul.mubr.msk.f32.gmra.mrb[68].mxu1 %vm785_vm1, %v8992_v17 }
  0xd5   : > { %2490 = vmatprep.mubr.f32.mxu1 %v10855_v2 }
  0xd6   : > { %8065 = vmatmul.mubr.msk.f32.vlgmr.msra.gmra.mrb[72].mxu0 %vm785_vm1, %v8967_v13 }
  0xd7   : > { %2567 = vmatprep.mubr.f32.mxu0 %v10855_v2  ;;  %8076 = vmatpush1.msk.msra.mxu0 %vm798_vm0, %v756_v47 }
  0xd8   : > { %8087 = vmatprep.subr.msk.mxu0 %vm798_vm0, %v776_v48  ;;  %8062 = vmatmul.mubr.msk.f32.gmra.mrb[70].mxu1 %vm785_vm1, %v9000_v18  ;;  %v768_v48 = vrot.slane %v9156_v40, %v9122_v34  ;;  %v10857_v34 = vmov 0  }
  0xd9   : > { %2650 = vmatprep.mubr.f32.mxu1 %v10855_v2  ;;  %8516 = vset.pattern.permute.xlu0 %v10857_v34 }
  0xda   : > { %8066 = vmatmul.mubr.msk.f32.gmra.mrb[74].mxu0 %vm785_vm1, %v8982_v16  ;;  %8081 = vmatprep.subr.msk.mxu1 %vm798_vm0, %v768_v48 }
  0xdb   : > { %2573 = vmatprep.mubr.f32.mxu0 %v10855_v2  ;;  %8517 = vset.pattern.permute.xlu1 %v10857_v34 }
  0xdc   : > { %8071 = vmatmul.mubr.msk.f32.vlgmr.msra.gmra.mrb[72].mxu1 %vm785_vm1, %v8967_v13 }
  0xdd   : > { %2656 = vmatprep.mubr.f32.mxu1 %v10855_v2  ;;  %8082 = vmatpush1.msk.msra.mxu1 %vm798_vm0, %v764_v50 }
  0xde   : > { %8067 = vmatmul.mubr.msk.f32.gmra.mrb[76].mxu0 %vm785_vm1, %v8992_v17 }
  0xdf   : > { %2579 = vmatprep.mubr.f32.mxu0 %v10855_v2 }
  0xe0   : > { %8072 = vmatmul.mubr.msk.f32.gmra.mrb[74].mxu1 %vm785_vm1, %v8982_v16 }
  0xe1   : > { %2662 = vmatprep.mubr.f32.mxu1 %v10855_v2 }
  0xe2   : > { %8068 = vmatmul.mubr.msk.f32.gmra.mrb[78].mxu0 %vm785_vm1, %v9000_v18 }
  0xe3   : > { %2739 = vmatprep.mubr.f32.mxu0 %v10855_v2 }
  0xe4   : > { %8073 = vmatmul.mubr.msk.f32.gmra.mrb[76].mxu1 %vm785_vm1, %v8992_v17 }
  0xe5   : > { %2668 = vmatprep.mubr.f32.mxu1 %v10855_v2 }
  0xe6   : > { %8077 = vmatmul.mubr.msk.f32.vlgmr.msra.gmra.mrb[80].mxu0 %vm785_vm1, %v8967_v13 }
  0xe7   : > { %2745 = vmatprep.mubr.f32.mxu0 %v10855_v2  ;;  %8088 = vmatpush1.msk.msra.mxu0 %vm798_vm0, %v772_v51 }
  0xe8   : > { %8209 = vmatprep.subr.msk.mxu0 %vm3049_vm2, %v3035_v53  ;;  %8074 = vmatmul.mubr.msk.f32.gmra.mrb[78].mxu1 %vm785_vm1, %v9000_v18 }
  0xe9   : > { %2828 = vmatprep.mubr.f32.mxu1 %v10855_v2 }
  0xea   : > { %8078 = vmatmul.mubr.msk.f32.gmra.mrb[82].mxu0 %vm785_vm1, %v8982_v16 }
  0xeb   : > { %2751 = vmatprep.mubr.f32.mxu0 %v10855_v2 }
  0xec   : > { %8083 = vmatmul.mubr.msk.f32.vlgmr.msra.gmra.mrb[80].mxu1 %vm785_vm1, %v8967_v13 }
  0xed   : > { %2834 = vmatprep.mubr.f32.mxu1 %v10855_v2 }
  0xee   : > { %8079 = vmatmul.mubr.msk.f32.gmra.mrb[84].mxu0 %vm785_vm1, %v8992_v17 }
  0xef   : > { %2757 = vmatprep.mubr.f32.mxu0 %v10855_v2 }
  0xf0   : > { %8084 = vmatmul.mubr.msk.f32.gmra.mrb[82].mxu1 %vm785_vm1, %v8982_v16 }
  0xf1   : > { %2840 = vmatprep.mubr.f32.mxu1 %v10855_v2 }
  0xf2   : > { %8080 = vmatmul.mubr.msk.f32.gmra.mrb[86].mxu0 %vm785_vm1, %v9000_v18 }
  0xf3   : > { %2917 = vmatprep.mubr.f32.mxu0 %v10855_v2 }
  0xf4   : > { %8085 = vmatmul.mubr.msk.f32.gmra.mrb[84].mxu1 %vm785_vm1, %v8992_v17 }
  0xf5   : > { %2846 = vmatprep.mubr.f32.mxu1 %v10855_v2 }
  0xf6   : > { %8089 = vmatmul.mubr.msk.f32.vlgmr.msra.gmra.mrb[88].mxu0 %vm785_vm1, %v8967_v13 }
  0xf7   : > { %2923 = vmatprep.mubr.f32.mxu0 %v10855_v2  ;;  %8210 = vmatpush3.msk.msra.mxu0 %vm3049_vm2, %v3035_v53 }
  0xf8   : > { %8086 = vmatmul.mubr.msk.f32.gmra.mrb[86].mxu1 %vm785_vm1, %v9000_v18 }
  0xf9   : > { %3006 = vmatprep.mubr.f32.mxu1 %v10855_v2 }
  0xfa   : > { %8090 = vmatmul.mubr.msk.f32.gmra.mrb[90].mxu0 %vm785_vm1, %v8982_v16 }
  0xfb   : > { %2929 = vmatprep.mubr.f32.mxu0 %v10855_v2 }
  0xfe   : > { %8091 = vmatmul.mubr.msk.f32.gmra.mrb[92].mxu0 %vm785_vm1, %v8992_v17 }
  0xff   : > { %2935 = vmatprep.mubr.f32.mxu0 %v10855_v2 }
 0x102   : > { %8092 = vmatmul.mubr.msk.f32.gmra.mrb[94].mxu0 %vm785_vm1, %v9000_v18 }
 0x103   : > { %8211 = vmatprep.mubr.msk.f32.mxu0 %vm3036_vm3, %v3031_v57  ;;  %v784_v57 = vrot.slane %v9156_v40, %v9164_v41 }
 0x105   : > { %8093 = vmatprep.subr.msk.mxu1 %vm798_vm0, %v784_v57 }
 0x106   : > { %8212 = vmatmul.mubr.msk.f32.vlgmr.msra.gmra.mrb[96].mxu0 %vm3036_vm3, %v3032_v58  ;;  %v780_v58 = vrot.slane %v9156_v40, %v9170_v43 }
 0x107   : > { %8214 = vmatprep.mubr.msk.f32.mxu0 %vm3036_vm3, %v3033_v59 }
 0x108   : > { %8094 = vmatpush1.msk.msra.mxu1 %vm798_vm0, %v780_v58 }
 0x109   : > { %8095 = vmatmul.mubr.msk.f32.vlgmr.msra.gmra.mrb[88].mxu1 %vm785_vm1, %v8967_v13 }
 0x10a   : > { %8215 = vmatmul.mubr.msk.f32.gmra.mrb[98].mxu0 %vm3036_vm3, %v3034_v62  ;;  %3012 = vmatprep.mubr.f32.mxu1 %v10855_v2 }
 0x10b   : > { %4008 = vmatprep.mubr.bf16.mxu0 %v10857_v34 }
 0x10d   : > { %8096 = vmatmul.mubr.msk.f32.gmra.mrb[90].mxu1 %vm785_vm1, %v8982_v16 }
 0x10e   : > { %3018 = vmatprep.mubr.f32.mxu1 %v10855_v2 }
 0x111   : > { %8097 = vmatmul.mubr.msk.f32.gmra.mrb[92].mxu1 %vm785_vm1, %v8992_v17 }
 0x112   : > { %3024 = vmatprep.mubr.f32.mxu1 %v10855_v2 }
 0x115   : > { %8098 = vmatmul.mubr.msk.f32.gmra.mrb[94].mxu1 %vm785_vm1, %v9000_v18 }
 0x116   : > { %3955 = vmatprep.mubr.bf16.mxu1 %v10857_v34 }
 0x119   : > { %v9353_v1 = vpop.f32.mrb[0].mxu0 }
 0x11a   : > { %v9355_v3 = vpop.f32.mrb[1].mxu0 }
 0x11d   : > { %v9360_v4 = vpop.f32.mrb[2].mxu0 }
 0x11e   : > { %v9362_v6 = vpop.f32.mrb[3].mxu0 }
 0x121   : > { %v9367_v7 = vpop.f32.mrb[4].mxu0 }
 0x122   : > { %v9369_v8 = vpop.f32.mrb[5].mxu0 }
 0x125   : > { %v9376_v10 = vpop.f32.mrb[6].mxu0 }
 0x126   : > { %v9380_v12 = vpop.f32.mrb[7].mxu0 }
 0x129   : > { %v9387_v14 = vpop.f32.mrb[8].mxu0 }
 0x12a   : > { %v9389_v15 = vpop.f32.mrb[9].mxu0 }
 0x12d   : > { %v9394_v19 = vpop.f32.mrb[10].mxu0 }
 0x12e   : > { %v9396_v20 = vpop.f32.mrb[11].mxu0 }
 0x131   : > { %v9401_v21 = vpop.f32.mrb[12].mxu0 }
 0x132   : > { %v9403_v22 = vpop.f32.mrb[13].mxu0 }
 0x135   : > { %v9410_v24 = vpop.f32.mrb[14].mxu0 }
 0x136   : > { %v9414_v26 = vpop.f32.mrb[15].mxu0 }
 0x139   : > { %v9421_v27 = vpop.f32.mrb[16].mxu0 }
 0x13a   : > { %v9423_v28 = vpop.f32.mrb[17].mxu0 }
 0x13d   : > { %v9428_v29 = vpop.f32.mrb[18].mxu0 }
 0x13e   : > { %v9430_v30 = vpop.f32.mrb[19].mxu0 }
 0x141   : > { %v9435_v32 = vpop.f32.mrb[20].mxu0 }
 0x142   : > { %10878 = vst [vmem:[#allocation10_spill] sm:$0xff] %v9435_v32  ;;  %v9437_v33 = vpop.f32.mrb[21].mxu0 }
 0x145   : > { %v9444_v37 = vpop.f32.mrb[22].mxu0 }
 0x146   : > { %10879 = vst [vmem:[#allocation11_spill] sm:$0xff] %v9444_v37  ;;  %v9448_v39 = vpop.f32.mrb[23].mxu0 }
 0x149   : > { %v9455_v42 = vpop.f32.mrb[24].mxu0 }
 0x14a   : > { %10880 = vst [vmem:[#allocation12_spill] sm:$0xff] %v9455_v42  ;;  %v9457_v44 = vpop.f32.mrb[25].mxu0 }
 0x14b   : > { %10881 = vst [vmem:[#allocation13_spill] sm:$0xff] %v9457_v44 }
 0x14d   : > { %v9462_v31 = vpop.f32.mrb[26].mxu0 }
 0x14e   : > { %10882 = vst [vmem:[#allocation14_spill] sm:$0xff] %v9462_v31  ;;  %v9464_v45 = vpop.f32.mrb[27].mxu0 }
 0x14f   : > { %10883 = vst [vmem:[#allocation15_spill] sm:$0xff] %v9464_v45 }
 0x151   : > { %v9469_v46 = vpop.f32.mrb[28].mxu0 }
 0x152   : > { %10884 = vst [vmem:[#allocation16_spill] sm:$0xff] %v9469_v46  ;;  %v9471_v47 = vpop.f32.mrb[29].mxu0 }
 0x153   : > { %10885 = vst [vmem:[#allocation17_spill] sm:$0xff] %v9471_v47 }
 0x155   : > { %v9478_v49 = vpop.f32.mrb[30].mxu0 }
 0x156   : > { %10886 = vst [vmem:[#allocation18_spill] sm:$0xff] %v9478_v49  ;;  %v9482_v51 = vpop.f32.mrb[31].mxu0 }
 0x157   : > { %10887 = vst [vmem:[#allocation19_spill] sm:$0xff] %v9482_v51  ;;  %v8737_v51 = vmov 4  }
 0x159   : > { %v9489_v52 = vpop.f32.mrb[32].mxu0 }
 0x15a   : > { %10888 = vst [vmem:[#allocation20_spill] sm:$0xff] %v9489_v52  ;;  %v9491_v53 = vpop.f32.mrb[33].mxu0 }
 0x15b   : > { %10889 = vst [vmem:[#allocation21_spill] sm:$0xff] %v9491_v53 }
 0x15d   : > { %v9499_v36 = vpop.f32.mrb[34].mxu0 }
 0x15e   : > { %10890 = vst [vmem:[#allocation22_spill] sm:$0xff] %v9499_v36  ;;  %v9501_v54 = vpop.f32.mrb[35].mxu0 }
 0x15f   : > { %10891 = vst [vmem:[#allocation23_spill] sm:$0xff] %v9501_v54 }
 0x161   : > { %v9506_v55 = vpop.f32.mrb[36].mxu0 }
 0x162   : > { %10892 = vst [vmem:[#allocation24_spill] sm:$0xff] %v9506_v55  ;;  %v9508_v56 = vpop.f32.mrb[37].mxu0 }
 0x163   : > { %10893 = vst [vmem:[#allocation25_spill] sm:$0xff] %v9508_v56 }
 0x165   : > { %v9517_v59 = vpop.f32.mrb[38].mxu0 }
 0x166   : > { %10894 = vst [vmem:[#allocation26_spill] sm:$0xff] %v9517_v59  ;;  %v9519_v60 = vpop.f32.mrb[39].mxu0  ;;  %v8736_v59 = vmov 2  }
 0x167   : > { %10895 = vst [vmem:[#allocation27_spill] sm:$0xff] %v9519_v60 }
 0x169   : > { %v9526_v61 = vpop.f32.mrb[40].mxu0 }
 0x16a   : > { %10896 = vst [vmem:[#allocation28_spill] sm:$0xff] %v9526_v61  ;;  %v9528_v62 = vpop.f32.mrb[41].mxu0 }
 0x16b   : > { %10897 = vst [vmem:[#allocation29_spill] sm:$0xff] %v9528_v62  ;;  %v8735_v62 = vmov 3  }
 0x16d   : > { %v9533_v40 = vpop.f32.mrb[42].mxu0 }
 0x16e   : > { %10898 = vst [vmem:[#allocation30_spill] sm:$0xff] %v9533_v40  ;;  %v9535_v41 = vpop.f32.mrb[43].mxu0 }
 0x16f   : > { %10899 = vst [vmem:[#allocation31_spill] sm:$0xff] %v9535_v41 }
 0x171   : > { %v9540_v43 = vpop.f32.mrb[44].mxu0 }
 0x172   : > { %10900 = vst [vmem:[#allocation32_spill] sm:$0xff] %v9540_v43  ;;  %v9542_v63 = vpop.f32.mrb[45].mxu0 }
 0x173   : > { %10901 = vst [vmem:[#allocation33_spill] sm:$0xff] %v9542_v63 }
 0x175   : > { %v9547_v13 = vpop.f32.mrb[46].mxu0 }
 0x176   : > { %10902 = vst [vmem:[#allocation34_spill] sm:$0xff] %v9547_v13  ;;  %v9549_v0 = vpop.f32.mrb[47].mxu0 }
 0x177   : > { %10903 = vst [vmem:[#allocation35_spill] sm:$0xff] %v9549_v0 }
 0x179   : > { %v9554_v16 = vpop.f32.mrb[48].mxu0 }
 0x17a   : > { %10904 = vst [vmem:[#allocation36_spill] sm:$0xff] %v9554_v16  ;;  %v9556_v9 = vpop.f32.mrb[49].mxu0  ;;  %v8734_v16 = vmov 1  }
 0x17b   : > { %10905 = vst [vmem:[#allocation37_spill] sm:$0xff] %v9556_v9 }
 0x17d   : > { %v9558_v11 = vpop.f32.mrb[50].mxu0 }
 0x17e   : > { %10906 = vst [vmem:[#allocation38_spill] sm:$0xff] %v9558_v11  ;;  %v9560_v23 = vpop.f32.mrb[51].mxu0 }
 0x17f   : > { %10907 = vst [vmem:[#allocation39_spill] sm:$0xff] %v9560_v23 }
 0x181   : > { %v9562_v17 = vpop.f32.mrb[52].mxu0 }
 0x182   : > { %10908 = vst [vmem:[#allocation40_spill] sm:$0xff] %v9562_v17  ;;  %v9564_v25 = vpop.f32.mrb[53].mxu0 }
 0x183   : > { %10909 = vst [vmem:[#allocation41_spill] sm:$0xff] %v9564_v25 }
 0x185   : > { %v9566_v35 = vpop.f32.mrb[54].mxu0 }
 0x186   : > { %10910 = vst [vmem:[#allocation42_spill] sm:$0xff] %v9566_v35  ;;  %v9568_v38 = vpop.f32.mrb[55].mxu0 }
 0x187   : > { %10911 = vst [vmem:[#allocation43_spill] sm:$0xff] %v9568_v38 }
 0x189   : > { %v9570_v48 = vpop.f32.mrb[56].mxu0 }
 0x18a   : > { %10912 = vst [vmem:[#allocation44_spill] sm:$0xff] %v9570_v48  ;;  %v9572_v18 = vpop.f32.mrb[57].mxu0 }
 0x18b   : > { %10913 = vst [vmem:[#allocation45_spill] sm:$0xff] %v9572_v18 }
 0x18d   : > { %v9574_v50 = vpop.f32.mrb[58].mxu0 }
 0x18e   : > { %10914 = vst [vmem:[#allocation46_spill] sm:$0xff] %v9574_v50  ;;  %v9576_v57 = vpop.f32.mrb[59].mxu0 }
 0x18f   : > { %10915 = vst [vmem:[#allocation47_spill] sm:$0xff] %v9576_v57 }
 0x191   : > { %v9578_v58 = vpop.f32.mrb[60].mxu0 }
 0x192   : > { %10916 = vst [vmem:[#allocation48_spill] sm:$0xff] %v9578_v58  ;;  %v9580_v2 = vpop.f32.mrb[61].mxu0 }
 0x193   : > { %10917 = vst [vmem:[#allocation49_spill] sm:$0xff] %v9580_v2 }
 0x195   : > { %v9582_v34 = vpop.f32.mrb[62].mxu0 }
 0x196   : > { %10918 = vst [vmem:[#allocation50_spill] sm:$0xff] %v9582_v34  ;;  %v9584_v5 = vpop.f32.mrb[63].mxu0 }
 0x197   : > { %10919 = vst [vmem:[#allocation51_spill] sm:$0xff] %v9584_v5 }
 0x199   : > { %v9586_v25 = vpop.f32.mrb[64].mxu0 }
 0x19a   : > { %10920 = vst [vmem:[#allocation52_spill] sm:$0xff] %v9586_v25  ;;  %v9588_v35 = vpop.f32.mrb[65].mxu0 }
 0x19b   : > { %10921 = vst [vmem:[#allocation53_spill] sm:$0xff] %v9588_v35 }
 0x19d   : > { %v9590_v38 = vpop.f32.mrb[66].mxu0 }
 0x19e   : > { %10922 = vst [vmem:[#allocation54_spill] sm:$0xff] %v9590_v38  ;;  %v9592_v48 = vpop.f32.mrb[67].mxu0 }
 0x19f   : > { %10923 = vst [vmem:[#allocation55_spill] sm:$0xff] %v9592_v48 }
 0x1a1   : > { %v9594_v18 = vpop.f32.mrb[68].mxu0 }
 0x1a2   : > { %10924 = vst [vmem:[#allocation56_spill] sm:$0xff] %v9594_v18  ;;  %v9596_v50 = vpop.f32.mrb[69].mxu0 }
 0x1a3   : > { %10925 = vst [vmem:[#allocation57_spill] sm:$0xff] %v9596_v50 }
 0x1a5   : > { %v9598_v57 = vpop.f32.mrb[70].mxu0 }
 0x1a6   : > { %10926 = vst [vmem:[#allocation58_spill] sm:$0xff] %v9598_v57  ;;  %v9600_v58 = vpop.f32.mrb[71].mxu0 }
 0x1a7   : > { %10927 = vst [vmem:[#allocation59_spill] sm:$0xff] %v9600_v58 }
 0x1a9   : > { %v9602_v2 = vpop.f32.mrb[72].mxu0 }
 0x1aa   : > { %10928 = vst [vmem:[#allocation60_spill] sm:$0xff] %v9602_v2  ;;  %v9604_v34 = vpop.f32.mrb[73].mxu0 }
 0x1ab   : > { %10929 = vst [vmem:[#allocation61_spill] sm:$0xff] %v9604_v34 }
 0x1ad   : > { %v9606_v5 = vpop.f32.mrb[74].mxu0 }
 0x1ae   : > { %10930 = vst [vmem:[#allocation62_spill] sm:$0xff] %v9606_v5  ;;  %v9608_v25 = vpop.f32.mrb[75].mxu0 }
 0x1af   : > { %10931 = vst [vmem:[#allocation63_spill] sm:$0xff] %v9608_v25 }
 0x1b1   : > { %v9610_v35 = vpop.f32.mrb[76].mxu0 }
 0x1b2   : > { %10932 = vst [vmem:[#allocation64_spill] sm:$0xff] %v9610_v35  ;;  %v9612_v38 = vpop.f32.mrb[77].mxu0 }
 0x1b3   : > { %10933 = vst [vmem:[#allocation65_spill] sm:$0xff] %v9612_v38 }
 0x1b5   : > { %v9614_v48 = vpop.f32.mrb[78].mxu0 }
 0x1b6   : > { %10934 = vst [vmem:[#allocation66_spill] sm:$0xff] %v9614_v48  ;;  %v9616_v18 = vpop.f32.mrb[79].mxu0 }
 0x1b7   : > { %10935 = vst [vmem:[#allocation67_spill] sm:$0xff] %v9616_v18 }
 0x1b9   : > { %v9618_v50 = vpop.f32.mrb[80].mxu0 }
 0x1ba   : > { %10936 = vst [vmem:[#allocation68_spill] sm:$0xff] %v9618_v50  ;;  %v9620_v57 = vpop.f32.mrb[81].mxu0 }
 0x1bb   : > { %10937 = vst [vmem:[#allocation69_spill] sm:$0xff] %v9620_v57 }
 0x1bd   : > { %v9622_v58 = vpop.f32.mrb[82].mxu0 }
 0x1be   : > { %10938 = vst [vmem:[#allocation70_spill] sm:$0xff] %v9622_v58  ;;  %v9624_v2 = vpop.f32.mrb[83].mxu0 }
 0x1bf   : > { %10939 = vst [vmem:[#allocation71_spill] sm:$0xff] %v9624_v2 }
 0x1c1   : > { %v9626_v34 = vpop.f32.mrb[84].mxu0 }
 0x1c2   : > { %10940 = vst [vmem:[#allocation72_spill] sm:$0xff] %v9626_v34  ;;  %v9628_v5 = vpop.f32.mrb[85].mxu0 }
 0x1c3   : > { %10941 = vst [vmem:[#allocation73_spill] sm:$0xff] %v9628_v5  ;;  %v9650_v5 = vpop.f32.mrb[0].mxu1 }
 0x1c5   : > { %v9630_v25 = vpop.f32.mrb[86].mxu0 }
 0x1c6   : > { %10942 = vst [vmem:[#allocation74_spill] sm:$0xff] %v9630_v25  ;;  %v9632_v35 = vpop.f32.mrb[87].mxu0  ;;  %v9652_v25 = vpop.f32.mrb[1].mxu1 }
 0x1c7   : > { %10943 = vst [vmem:[#allocation75_spill] sm:$0xff] %v9632_v35 }
 0x1c9   : > { %v9634_v38 = vpop.f32.mrb[88].mxu0 }
 0x1ca   : > { %10944 = vst [vmem:[#allocation76_spill] sm:$0xff] %v9634_v38  ;;  %v9636_v48 = vpop.f32.mrb[89].mxu0 }
 0x1cb   : > { %10945 = vst [vmem:[#allocation77_spill] sm:$0xff] %v9636_v48 }
 0x1cd   : > { %v9638_v18 = vpop.f32.mrb[90].mxu0 }
 0x1ce   : > { %10946 = vst [vmem:[#allocation78_spill] sm:$0xff] %v9638_v18  ;;  %v9640_v50 = vpop.f32.mrb[91].mxu0  ;;  %v9659_v18 = vpop.f32.mrb[2].mxu1 }
 0x1cf   : > { %10947 = vst [vmem:[#allocation79_spill] sm:$0xff] %v9640_v50  ;;  %v9661_v48 = vpop.f32.mrb[3].mxu1 }
 0x1d1   : > { %v9642_v57 = vpop.f32.mrb[92].mxu0 }
 0x1d2   : > { %10948 = vst [vmem:[#allocation80_spill] sm:$0xff] %v9642_v57  ;;  %v9644_v58 = vpop.f32.mrb[93].mxu0 }
 0x1d3   : > { %10949 = vst [vmem:[#allocation81_spill] sm:$0xff] %v9644_v58  ;;  %v9665_v58 = vpop.f32.mrb[4].mxu1 }
 0x1d5   : > { %v9646_v2 = vpop.f32.mrb[94].mxu0 }
 0x1d6   : > { %10950 = vst [vmem:[#allocation82_spill] sm:$0xff] %v9646_v2  ;;  %v9648_v34 = vpop.f32.mrb[95].mxu0 }
 0x1d7   : > { %10951 = vst [vmem:[#allocation83_spill] sm:$0xff] %v9648_v34  ;;  %v9669_v34 = vpop.f32.mrb[5].mxu1 }
 0x1d8   : > { %v9673_v50 = vpop.f32.mrb[6].mxu1 }
 0x1d9   : > { %v9654_v35 = vpop.f32.mrb[96].mxu0  ;;  %v9675_v17 = vpop.f32.mrb[7].mxu1 }
 0x1da   : > { %v9656_v38 = vpop.f32.mrb[97].mxu0  ;;  %v9677_v9 = vpop.f32.mrb[8].mxu1 }
 0x1db   : > { %3140 = vperm.xlu0 %8516, %v9656_v38   ;;  %v9680_v23 = vpop.f32.mrb[9].mxu1 }
 0x1dc   : > { %v9683_v11 = vpop.f32.mrb[10].mxu1 }
 0x1dd   : > { %v9663_v57 = vpop.f32.mrb[98].mxu0  ;;  %v9685_v13 = vpop.f32.mrb[11].mxu1 }
 0x1de   : > { %v9667_v2 = vpop.f32.mrb[99].mxu0  ;;  %v9687_v43 = vpop.f32.mrb[12].mxu1 }
 0x1df   : > { %3145 = vperm.xlu0 %8516, %v9654_v35   ;;  %3150 = vperm.xlu1 %8517, %v9667_v2   ;;  %v9691_v0 = vpop.f32.mrb[13].mxu1 }
 0x1e0   : > { %10952 = vst [vmem:[#allocation84_spill] sm:$0xff] %v9691_v0  ;;  %v9693_v40 = vpop.f32.mrb[14].mxu1 }
 0x1e1   : > { %10953 = vst [vmem:[#allocation85_spill] sm:$0xff] %v9693_v40  ;;  %v9695_v63 = vpop.f32.mrb[15].mxu1 }
 0x1e2   : > { %10954 = vst [vmem:[#allocation86_spill] sm:$0xff] %v9695_v63  ;;  %v9697_v61 = vpop.f32.mrb[16].mxu1 }
 0x1e3   : > { %8518 = vset.pattern.permute.xlu0 %v8734_v16  ;;  %3155 = vperm.xlu1 %8517, %v9663_v57   ;;  %v9700_v41 = vpop.f32.mrb[17].mxu1 }
 0x1e4   : > { %3189 = vperm.xlu0 %8518, %v9656_v38  }
 0x1e7   : > { %8519 = vset.pattern.permute.xlu1 %v8734_v16  ;;  %v9703_v16 = vpop.f32.mrb[18].mxu1 }
 0x1e8   : > { %3201 = vperm.xlu0 %8518, %v9663_v57   ;;  %3193 = vperm.xlu1 %8519, %v9654_v35   ;;  %v9705_v56 = vpop.f32.mrb[19].mxu1 }
 0x1e9   : > { %v9709_v55 = vpop.f32.mrb[20].mxu1 }
 0x1ea   : > { %v9711_v60 = vpop.f32.mrb[21].mxu1 }
 0x1eb   : > { %v9715_v54 = vpop.f32.mrb[22].mxu1 }
 0x1ec   : > { %8521 = vset.pattern.permute.xlu0 %v8735_v62  ;;  %3197 = vperm.xlu1 %8519, %v9667_v2   ;;  %v9717_v36 = vpop.f32.mrb[23].mxu1 }
 0x1ed   : > { %3285 = vperm.xlu0 %8521, %v9654_v35   ;;  %v9719_v53 = vpop.f32.mrb[24].mxu1 }
 0x1ee   : > { %10955 = vst [vmem:[#allocation87_spill] sm:$0xff] %v9719_v53  ;;  %v9721_v52 = vpop.f32.mrb[25].mxu1  ;;  %v8738_v53 = vmov 5  }
 0x1ef   : > { %10956 = vst [vmem:[#allocation88_spill] sm:$0xff] %v9721_v52  ;;  %v9724_v49 = vpop.f32.mrb[26].mxu1 }
 0x1f0   : > { %8520 = vset.pattern.permute.xlu1 %v8735_v62  ;;  %10957 = vst [vmem:[#allocation89_spill] sm:$0xff] %v9724_v49  ;;  %v9727_v47 = vpop.f32.mrb[27].mxu1 }
 0x1f1   : > { %3289 = vperm.xlu0 %8521, %v9667_v2   ;;  %3281 = vperm.xlu1 %8520, %v9656_v38   ;;  %10958 = vst [vmem:[#allocation90_spill] sm:$0xff] %v9727_v47  ;;  %v9729_v46 = vpop.f32.mrb[28].mxu1 }
 0x1f2   : > { %10959 = vst [vmem:[#allocation91_spill] sm:$0xff] %v9729_v46  ;;  %v9731_v44 = vpop.f32.mrb[29].mxu1 }
 0x1f3   : > { %10960 = vst [vmem:[#allocation92_spill] sm:$0xff] %v9731_v44  ;;  %v9733_v42 = vpop.f32.mrb[30].mxu1 }
 0x1f4   : > { %10961 = vst [vmem:[#allocation93_spill] sm:$0xff] %v9733_v42  ;;  %v9736_v52 = vpop.f32.mrb[31].mxu1 }
 0x1f5   : > { %8524 = vset.pattern.permute.xlu0 %v8736_v59  ;;  %8522 = vset.pattern.permute.xlu1 %v8736_v59  ;;  %10962 = vst [vmem:[#allocation94_spill] sm:$0xff] %v9736_v52  ;;  %v9739_v45 = vpop.f32.mrb[32].mxu1 }
 0x1f6   : > { %3243 = vperm.xlu0 %8524, %v9667_v2   ;;  %3235 = vperm.xlu1 %8522, %v9656_v38   ;;  %10963 = vst [vmem:[#allocation95_spill] sm:$0xff] %v9739_v45  ;;  %v9741_v49 = vpop.f32.mrb[33].mxu1  ;;  %v8739_v45 = vmov 7  }
 0x1f7   : > { %10964 = vst [vmem:[#allocation96_spill] sm:$0xff] %v9741_v49  ;;  %v9743_v47 = vpop.f32.mrb[34].mxu1 }
 0x1f8   : > { %10965 = vst [vmem:[#allocation97_spill] sm:$0xff] %v9743_v47  ;;  %v9745_v46 = vpop.f32.mrb[35].mxu1 }
 0x1f9   : > { %10966 = vst [vmem:[#allocation98_spill] sm:$0xff] %v9745_v46 }
 0x1fa   : > { %8527 = vset.pattern.permute.xlu0 %v8737_v51  ;;  %3239 = vperm.xlu1 %8522, %v9654_v35  }
 0x1fb   : > { %3331 = vperm.xlu0 %8527, %v9654_v35  }
 0x1fe   : > { %8523 = vset.pattern.permute.xlu1 %v8735_v62  ;;  %v9749_v62 = vpop.f32.mrb[36].mxu1 }
 0x1ff   : > { %8528 = vset.pattern.permute.xlu0 %v8738_v53  ;;  %3293 = vperm.xlu1 %8523, %v9663_v57   ;;  %10967 = vst [vmem:[#allocation99_spill] sm:$0xff] %v9749_v62  ;;  %v9751_v44 = vpop.f32.mrb[37].mxu1 }
 0x200   : > { %3373 = vperm.xlu0 %8528, %v9656_v38   ;;  %10968 = vst [vmem:[#allocation100_spill] sm:$0xff] %v9751_v44  ;;  %v9753_v52 = vpop.f32.mrb[38].mxu1  ;;  %v8740_v44 = vmov 6  }
 0x201   : > { %10969 = vst [vmem:[#allocation101_spill] sm:$0xff] %v9753_v52  ;;  %v9755_v42 = vpop.f32.mrb[39].mxu1 }
 0x202   : > { %10970 = vst [vmem:[#allocation102_spill] sm:$0xff] %v9755_v42  ;;  %v9757_v49 = vpop.f32.mrb[40].mxu1 }
 0x203   : > { %8525 = vset.pattern.permute.xlu1 %v8736_v59  ;;  %10971 = vst [vmem:[#allocation103_spill] sm:$0xff] %v9757_v49  ;;  %v9761_v59 = vpop.f32.mrb[41].mxu1  ;;  %v8741_v49 = vmov 8  }
 0x204   : > { %3385 = vperm.xlu0 %8528, %v9663_v57   ;;  %3247 = vperm.xlu1 %8525, %v9663_v57   ;;  %10972 = vst [vmem:[#allocation104_spill] sm:$0xff] %v9761_v59  ;;  %v9763_v46 = vpop.f32.mrb[42].mxu1 }
 0x205   : > { %10973 = vst [vmem:[#allocation105_spill] sm:$0xff] %v9763_v46  ;;  %v9765_v62 = vpop.f32.mrb[43].mxu1 }
 0x206   : > { %10974 = vst [vmem:[#allocation106_spill] sm:$0xff] %v9765_v62  ;;  %v9769_v42 = vpop.f32.mrb[44].mxu1 }
 0x207   : > { %10975 = vst [vmem:[#allocation107_spill] sm:$0xff] %v9769_v42  ;;  %v9771_v52 = vpop.f32.mrb[45].mxu1 }
 0x208   : > { %8531 = vset.pattern.permute.xlu0 %v8739_v45  ;;  %8526 = vset.pattern.permute.xlu1 %v8737_v51  ;;  %10976 = vst [vmem:[#allocation108_spill] sm:$0xff] %v9771_v52  ;;  %v9773_v51 = vpop.f32.mrb[46].mxu1 }
 0x209   : > { %3469 = vperm.xlu0 %8531, %v9654_v35   ;;  %3327 = vperm.xlu1 %8526, %v9656_v38   ;;  %10977 = vst [vmem:[#allocation109_spill] sm:$0xff] %v9773_v51  ;;  %v9777_v47 = vpop.f32.mrb[47].mxu1 }
 0x20a   : > { %10978 = vst [vmem:[#allocation110_spill] sm:$0xff] %v9777_v47  ;;  %v9779_v59 = vpop.f32.mrb[48].mxu1 }
 0x20b   : > { %10979 = vst [vmem:[#allocation111_spill] sm:$0xff] %v9779_v59  ;;  %v9782_v42 = vpop.f32.mrb[49].mxu1 }
 0x20c   : > { %10980 = vst [vmem:[#allocation112_spill] sm:$0xff] %v9782_v42  ;;  %v9785_v51 = vpop.f32.mrb[50].mxu1 }
 0x20d   : > { %3473 = vperm.xlu0 %8531, %v9667_v2   ;;  %3335 = vperm.xlu1 %8526, %v9667_v2   ;;  %10981 = vst [vmem:[#allocation113_spill] sm:$0xff] %v9785_v51  ;;  %v9787_v52 = vpop.f32.mrb[51].mxu1 }
 0x20e   : > { %10982 = vst [vmem:[#allocation114_spill] sm:$0xff] %v9787_v52  ;;  %v9789_v62 = vpop.f32.mrb[52].mxu1 }
 0x20f   : > { %10983 = vst [vmem:[#allocation115_spill] sm:$0xff] %v9789_v62  ;;  %v9792_v47 = vpop.f32.mrb[53].mxu1 }
 0x210   : > { %10984 = vst [vmem:[#allocation116_spill] sm:$0xff] %v9792_v47  ;;  %v9795_v59 = vpop.f32.mrb[54].mxu1 }
 0x211   : > { %8534 = vset.pattern.permute.xlu0 %v8740_v44  ;;  %3339 = vperm.xlu1 %8526, %v9663_v57   ;;  %10985 = vst [vmem:[#allocation117_spill] sm:$0xff] %v9795_v59  ;;  %v9798_v42 = vpop.f32.mrb[55].mxu1 }
 0x212   : > { %3427 = vperm.xlu0 %8534, %v9667_v2   ;;  %10986 = vst [vmem:[#allocation118_spill] sm:$0xff] %v9798_v42  ;;  %v9800_v46 = vpop.f32.mrb[56].mxu1  ;;  %v10861_v42 = vmov 11  }
 0x213   : > { %10987 = vst [vmem:[#allocation119_spill] sm:$0xff] %v9800_v46  ;;  %v9802_v51 = vpop.f32.mrb[57].mxu1 }
 0x214   : > { %10988 = vst [vmem:[#allocation120_spill] sm:$0xff] %v9802_v51  ;;  %v9805_v52 = vpop.f32.mrb[58].mxu1 }
 0x215   : > { %8529 = vset.pattern.permute.xlu1 %v8738_v53  ;;  %v10860_v53 = vmov 9   ;;  %10989 = vst [vmem:[#allocation121_spill] sm:$0xff] %v9805_v52  ;;  %v9808_v47 = vpop.f32.mrb[59].mxu1 }
 0x216   : > { %8537 = vset.pattern.permute.xlu0 %v8741_v49  ;;  %3377 = vperm.xlu1 %8529, %v9654_v35   ;;  %10990 = vst [vmem:[#allocation122_spill] sm:$0xff] %v9808_v47 }
 0x217   : > { %3515 = vperm.xlu0 %8537, %v9654_v35  }
 0x21a   : > { %3381 = vperm.xlu1 %8529, %v9667_v2  }
 0x21b   : > { %8538 = vset.pattern.permute.xlu0 %v10860_v53  ;;  %v9810_v53 = vpop.f32.mrb[60].mxu1 }
 0x21c   : > { %3557 = vperm.xlu0 %8538, %v9656_v38   ;;  %10991 = vst [vmem:[#allocation123_spill] sm:$0xff] %v9810_v53  ;;  %v9812_v59 = vpop.f32.mrb[61].mxu1 }
 0x21d   : > { %10992 = vst [vmem:[#allocation124_spill] sm:$0xff] %v9812_v59  ;;  %v9814_v62 = vpop.f32.mrb[62].mxu1 }
 0x21e   : > { %8530 = vset.pattern.permute.xlu1 %v8739_v45  ;;  %10993 = vst [vmem:[#allocation125_spill] sm:$0xff] %v9814_v62  ;;  %v9818_v51 = vpop.f32.mrb[63].mxu1 }
 0x21f   : > { %3465 = vperm.xlu1 %8530, %v9656_v38   ;;  %10994 = vst [vmem:[#allocation126_spill] sm:$0xff] %v9818_v51  ;;  %v9821_v52 = vpop.f32.mrb[64].mxu1  ;;  %v10863_v51 = vmov 10  }
 0x220   : > { %3569 = vperm.xlu0 %8538, %v9663_v57   ;;  %10995 = vst [vmem:[#allocation127_spill] sm:$0xff] %v9821_v52  ;;  %v9823_v46 = vpop.f32.mrb[65].mxu1 }
 0x221   : > { %10996 = vst [vmem:[#allocation128_spill] sm:$0xff] %v9823_v46  ;;  %v9825_v47 = vpop.f32.mrb[66].mxu1 }
 0x222   : > { %10997 = vst [vmem:[#allocation129_spill] sm:$0xff] %v9825_v47  ;;  %v9828_v59 = vpop.f32.mrb[67].mxu1 }
 0x223   : > { %8532 = vset.pattern.permute.xlu1 %v8740_v44  ;;  %10998 = vst [vmem:[#allocation130_spill] sm:$0xff] %v9828_v59  ;;  %v9831_v62 = vpop.f32.mrb[68].mxu1  ;;  %v10865_v59 = vmov 12  }
 0x224   : > { %8541 = vset.pattern.permute.xlu0 %v10861_v42  ;;  %3419 = vperm.xlu1 %8532, %v9656_v38   ;;  %10999 = vst [vmem:[#allocation131_spill] sm:$0xff] %v9831_v62  ;;  %v9833_v42 = vpop.f32.mrb[69].mxu1 }
 0x225   : > { %3653 = vperm.xlu0 %8541, %v9654_v35   ;;  %11000 = vst [vmem:[#allocation132_spill] sm:$0xff] %v9833_v42  ;;  %v9837_v53 = vpop.f32.mrb[70].mxu1 }
 0x226   : > { %11001 = vst [vmem:[#allocation133_spill] sm:$0xff] %v9837_v53  ;;  %v9840_v46 = vpop.f32.mrb[71].mxu1 }
 0x227   : > { %11002 = vst [vmem:[#allocation134_spill] sm:$0xff] %v9840_v46  ;;  %v9842_v52 = vpop.f32.mrb[72].mxu1 }
 0x228   : > { %3423 = vperm.xlu1 %8532, %v9654_v35   ;;  %11003 = vst [vmem:[#allocation135_spill] sm:$0xff] %v9842_v52 }
 0x229   : > { %3657 = vperm.xlu0 %8541, %v9667_v2  }
 0x22c   : > { %8533 = vset.pattern.permute.xlu1 %v8739_v45  ;;  %v9846_v45 = vpop.f32.mrb[73].mxu1 }
 0x22d   : > { %8544 = vset.pattern.permute.xlu0 %v10863_v51  ;;  %3477 = vperm.xlu1 %8533, %v9663_v57   ;;  %11004 = vst [vmem:[#allocation136_spill] sm:$0xff] %v9846_v45  ;;  %v9849_v51 = vpop.f32.mrb[74].mxu1 }
 0x22e   : > { %3611 = vperm.xlu0 %8544, %v9667_v2   ;;  %11005 = vst [vmem:[#allocation137_spill] sm:$0xff] %v9849_v51  ;;  %v9851_v42 = vpop.f32.mrb[75].mxu1 }
 0x22f   : > { %11006 = vst [vmem:[#allocation138_spill] sm:$0xff] %v9851_v42  ;;  %v9853_v53 = vpop.f32.mrb[76].mxu1 }
 0x230   : > { %11007 = vst [vmem:[#allocation139_spill] sm:$0xff] %v9853_v53  ;;  %v9855_v46 = vpop.f32.mrb[77].mxu1 }
 0x231   : > { %8535 = vset.pattern.permute.xlu1 %v8740_v44  ;;  %11008 = vst [vmem:[#allocation140_spill] sm:$0xff] %v9855_v46  ;;  %v10866_v44 = vmov 13  }
 0x232   : > { %8547 = vset.pattern.permute.xlu0 %v10865_v59  ;;  %3431 = vperm.xlu1 %8535, %v9663_v57   ;;  %v9859_v59 = vpop.f32.mrb[78].mxu1 }
 0x233   : > { %3699 = vperm.xlu0 %8547, %v9654_v35   ;;  %11009 = vst [vmem:[#allocation141_spill] sm:$0xff] %v9859_v59  ;;  %v9862_v45 = vpop.f32.mrb[79].mxu1 }
 0x234   : > { %11010 = vst [vmem:[#allocation142_spill] sm:$0xff] %v9862_v45  ;;  %v9864_v52 = vpop.f32.mrb[80].mxu1  ;;  %v10867_v45 = vmov 15  }
 0x235   : > { %11011 = vst [vmem:[#allocation143_spill] sm:$0xff] %v9864_v52  ;;  %v9866_v51 = vpop.f32.mrb[81].mxu1 }
 0x236   : > { %8536 = vset.pattern.permute.xlu1 %v8741_v49  ;;  %11012 = vst [vmem:[#allocation144_spill] sm:$0xff] %v9866_v51  ;;  %v9869_v49 = vpop.f32.mrb[82].mxu1 }
 0x237   : > { %8548 = vset.pattern.permute.xlu0 %v10866_v44  ;;  %3511 = vperm.xlu1 %8536, %v9656_v38   ;;  %11013 = vst [vmem:[#allocation145_spill] sm:$0xff] %v9869_v49  ;;  %v9872_v46 = vpop.f32.mrb[83].mxu1 }
 0x238   : > { %3741 = vperm.xlu0 %8548, %v9656_v38   ;;  %11014 = vst [vmem:[#allocation146_spill] sm:$0xff] %v9872_v46  ;;  %v9874_v44 = vpop.f32.mrb[84].mxu1  ;;  %v11021_v46 = vmov 9  }
 0x239   : > { %11015 = vst [vmem:[#allocation147_spill] sm:$0xff] %v9874_v44  ;;  %v9876_v42 = vpop.f32.mrb[85].mxu1 }
 0x23a   : > { %11016 = vst [vmem:[#allocation148_spill] sm:$0xff] %v9876_v42  ;;  %v9879_v59 = vpop.f32.mrb[86].mxu1 }
 0x23b   : > { %3519 = vperm.xlu1 %8536, %v9667_v2   ;;  %11017 = vst [vmem:[#allocation149_spill] sm:$0xff] %v9879_v59  ;;  %v9882_v51 = vpop.f32.mrb[87].mxu1 }
 0x23c   : > { %3753 = vperm.xlu0 %8548, %v9663_v57   ;;  %11018 = vst [vmem:[#allocation150_spill] sm:$0xff] %v9882_v51  ;;  %v9885_v49 = vpop.f32.mrb[88].mxu1  ;;  %v10869_v51 = vmov 14  }
 0x23d   : > { %11019 = vst [vmem:[#allocation151_spill] sm:$0xff] %v9885_v49  ;;  %v9887_v52 = vpop.f32.mrb[89].mxu1  ;;  %v11027_v49 = vmov 0  }
 0x23e   : > { %11020 = vst [vmem:[#allocation152_spill] sm:$0xff] %v9887_v52  ;;  %v9890_v44 = vpop.f32.mrb[90].mxu1  ;;  %v3883_v52 = vld [vmem:[%s10843_s7 + $0x8] sm:$0xff] }
 0x23f   : > { %3523 = vperm.xlu1 %8536, %v9663_v57   ;;  %11022 = vst [vmem:[#allocation153_spill] sm:$0xff] %v9890_v44  ;;  %v9893_v42 = vpop.f32.mrb[91].mxu1 }
 0x240   : > { %8551 = vset.pattern.permute.xlu0 %v10867_v45  ;;  %11023 = vst [vmem:[#allocation154_spill] sm:$0xff] %v9893_v42  ;;  %v9896_v59 = vpop.f32.mrb[92].mxu1 }
 0x241   : > { %3837 = vperm.xlu0 %8551, %v9654_v35   ;;  %11024 = vst [vmem:[#allocation155_spill] sm:$0xff] %v9896_v59  ;;  %v9899_v45 = vpop.f32.mrb[93].mxu1  ;;  %v11028_v59 = vmov 10  }
 0x242   : > { %11025 = vst [vmem:[#allocation156_spill] sm:$0xff] %v9899_v45 }
 0x243   : > { %8539 = vset.pattern.permute.xlu1 %v11021_v46  ;;  %v11026_v46 = vmov 11  }
 0x244   : > { %3561 = vperm.xlu1 %8539, %v9654_v35  }
 0x245   : > { %3841 = vperm.xlu0 %8551, %v9667_v2  }
 0x248   : > { %3565 = vperm.xlu1 %8539, %v9667_v2  }
 0x249   : > { %8554 = vset.pattern.permute.xlu0 %v10869_v51 }
 0x24a   : > { %3795 = vperm.xlu0 %8554, %v9667_v2  }
 0x24c   : > { %8540 = vset.pattern.permute.xlu1 %v11026_v46 }
 0x24d   : > { %3649 = vperm.xlu1 %8540, %v9656_v38  }
 0x24e   : > { %8557 = vset.pattern.permute.xlu0 %v11027_v49 }
 0x24f   : > { %3893 = vperm.xlu0 %8557, %v3883_v52  }
 0x251   : > { %8542 = vset.pattern.permute.xlu1 %v11028_v59 }
 0x252   : > { %3603 = vperm.xlu1 %8542, %v9656_v38  }
 0x256   : > { %3607 = vperm.xlu1 %8542, %v9654_v35  }
 0x25a   : > { %v3141_v51 = vpop.permute.xlu0 %3140  ;;  %8543 = vset.pattern.permute.xlu1 %v11026_v46 }
 0x25b   : > { %3661 = vperm.xlu1 %8543, %v9663_v57   ;;  %v3158_v45 = vadd.f32 %v3141_v51, %v9353_v1  ;;  %v3160_v42 = vadd.f32 %v3141_v51, %v9650_v5  ;;  %v3159_v44 = vadd.f32 %v3141_v51, %v9355_v3 }
 0x25d   : > { %v3170_v37 = vmax.f32 %v3158_v45, 0.0  ;;  %v3172_v46 = vmax.f32 %v3160_v42, 0.0  ;;  %v3171_v51 = vmax.f32 %v3159_v44, 0.0  ;;  %v11029_v45 = vmov 12  }
 0x25e   : > { %v3146_v53 = vpop.permute.xlu0 %3145  ;;  %v3151_v62 = vpop.permute.xlu1 %3150 }
 0x25f   : > { %v3161_v52 = vadd.f32 %v3146_v53, %v9360_v4  ;;  %v3162_v47 = vadd.f32 %v3146_v53, %v9362_v6  ;;  %v3163_v31 = vadd.f32 %v3146_v53, %v9659_v18  ;;  %8545 = vset.pattern.permute.xlu1 %v11028_v59  ;;  %v3164_v63 = vadd.f32 %v3151_v62, %v9367_v7 }
 0x260   : > { %3615 = vperm.xlu1 %8545, %v9663_v57   ;;  %v3165_v3 = vadd.f32 %v3151_v62, %v9369_v8  ;;  %v3166_v4 = vadd.f32 %v3151_v62, %v9665_v58 }
 0x261   : > { %v3173_v1 = vmax.f32 %v3161_v52, 0.0  ;;  %v3174_v5 = vmax.f32 %v3162_v47, 0.0  ;;  %v3175_v40 = vmax.f32 %v3163_v31, 0.0  ;;  %v3176_v7 = vmax.f32 %v3164_v63, 0.0 }
 0x262   : > { %v3156_v0 = vpop.permute.xlu1 %3155  ;;  %v3177_v31 = vmax.f32 %v3165_v3, 0.0  ;;  %v3178_v58 = vmax.f32 %v3166_v4, 0.0 }
 0x263   : > { %v3182_v6 = vpack.c.bf16 %v3173_v1, %v3170_v37  ;;  %v9925_v32 = vpack.c.bf16 %v3175_v40, %v3172_v46  ;;  %v3167_v18 = vadd.f32 %v3156_v0, %v9376_v10  ;;  %v3168_v42 = vadd.f32 %v3156_v0, %v9380_v12  ;;  %v3190_v59 = vpop.permute.xlu0 %3189 }
 0x264   : > { %v3169_v53 = vadd.f32 %v3156_v0, %v9673_v50  ;;  %8546 = vset.pattern.permute.xlu1 %v11029_v45  ;;  %v3183_v44 = vpack.c.bf16 %v3174_v5, %v3171_v51  ;;  %v3204_v40 = vadd.f32 %v3190_v59, %v9652_v25  ;;  %v3205_v10 = vadd.f32 %v3190_v59, %v9387_v14 }
 0x265   : > { %v3179_v47 = vmax.f32 %v3167_v18, 0.0  ;;  %v3180_v8 = vmax.f32 %v3168_v42, 0.0  ;;  %3695 = vperm.xlu1 %8546, %v9656_v38   ;;  %v3206_v12 = vadd.f32 %v3190_v59, %v9389_v15 }
 0x266   : > { %v3181_v37 = vmax.f32 %v3169_v53, 0.0  ;;  %3923 = vmatprep.subr.bf16.mxu1 %v3183_v44  ;;  %v3216_v15 = vmax.f32 %v3204_v40, 0.0  ;;  %v3217_v51 = vmax.f32 %v3205_v10, 0.0 }
 0x267   : > { %v3185_v62 = vpack.c.bf16 %v3179_v47, %v3176_v7  ;;  %v3202_v63 = vpop.permute.xlu0 %3201  ;;  %v3194_v0 = vpop.permute.xlu1 %3193  ;;  %v3186_v50 = vpack.c.bf16 %v3180_v8, %v3177_v31  ;;  %3924 = vmatpush1.bf16.msra.mxu1 %v3182_v6 }
 0x268   : > { %v3187_v52 = vpack.c.bf16 %v3181_v37, %v3178_v58  ;;  %v3213_v46 = vadd.f32 %v3202_v63, %v9675_v17  ;;  %v3214_v1 = vadd.f32 %v3202_v63, %v9410_v24  ;;  %v3215_v5 = vadd.f32 %v3202_v63, %v9414_v26  ;;  %v9945_v24 = vld [vmem:[%s10842_s6] sm:$0xff]  }
 0x269   : > { %v3207_v3 = vadd.f32 %v3194_v0, %v9661_v48  ;;  %v3208_v25 = vadd.f32 %v3194_v0, %v9394_v19  ;;  %v3209_v14 = vadd.f32 %v3194_v0, %v9396_v20  ;;  %3703 = vperm.xlu1 %8546, %v9667_v2   ;;  %3925 = vmatprep.subr.bf16.mxu1 %v3186_v50  ;;  %v3218_v26 = vmax.f32 %v3206_v12, 0.0 }
 0x26a   : > { %v3225_v59 = vmax.f32 %v3213_v46, 0.0  ;;  %v3226_v7 = vmax.f32 %v3214_v1, 0.0  ;;  %v3227_v53 = vmax.f32 %v3215_v5, 0.0  ;;  %v11030_v63 = vmov 13  }
 0x26b   : > { %v3219_v4 = vmax.f32 %v3207_v3, 0.0  ;;  %v3220_v6 = vmax.f32 %v3208_v25, 0.0  ;;  %v3221_v18 = vmax.f32 %v3209_v14, 0.0  ;;  %v3198_v17 = vpop.permute.xlu1 %3197  ;;  %3926 = vmatpush1.bf16.msra.mxu1 %v3185_v62 }
 0x26c   : > { %v3210_v19 = vadd.f32 %v3198_v17, %v9669_v34  ;;  %v3211_v20 = vadd.f32 %v3198_v17, %v9401_v21  ;;  %v3212_v48 = vadd.f32 %v3198_v17, %v9403_v22  ;;  %v3286_v42 = vpop.permute.xlu0 %3285  ;;  %v11031_v17 = vmov 15  }
 0x26d   : > { %v3229_v45 = vpack.c.bf16 %v3220_v6, %v3217_v51  ;;  %3707 = vperm.xlu1 %8546, %v9663_v57   ;;  %v3228_v44 = vpack.c.bf16 %v3219_v4, %v3216_v15  ;;  %v3300_v58 = vadd.f32 %v3286_v42, %v9703_v16  ;;  %v3230_v34 = vpack.c.bf16 %v3221_v18, %v3218_v26 }
 0x26e   : > { %v3222_v31 = vmax.f32 %v3210_v19, 0.0  ;;  %v3223_v47 = vmax.f32 %v3211_v20, 0.0  ;;  %v3224_v8 = vmax.f32 %v3212_v48, 0.0  ;;  %8106 = vmatmul.mubr.msk.bf16.vlgmr.msra.gmra.mrb[96].mxu1 %vm3916_vm4, %v9945_v24  ;;  %v3299_v62 = vadd.f32 %v3286_v42, %v9430_v30  ;;  %v9966_v30 = vld [vmem:[%s10842_s6 + $0x8] sm:$0xff]  }
 0x26f   : > { %3976 = vmatprep.subr.bf16.mxu0 %v3228_v44  ;;  %3965 = vmatprep.mubr.bf16.mxu1 %v11027_v49  ;;  %v3301_v0 = vadd.f32 %v3286_v42, %v9705_v56 }
 0x270   : > { %v3232_v21 = vpack.c.bf16 %v3226_v7, %v3223_v47  ;;  %v3282_v22 = vpop.permute.xlu1 %3281  ;;  %v3231_v37 = vpack.c.bf16 %v3225_v59, %v3222_v31  ;;  %v3233_v40 = vpack.c.bf16 %v3227_v53, %v3224_v8  ;;  %4029 = vmatprep.subr.bf16.mxu1 %v3230_v34  ;;  %3977 = vmatpush1.bf16.msra.mxu0 %v9925_v32  ;;  %v3312_v32 = vmax.f32 %v3300_v58, 0.0  ;;  %v3290_v25 = vpop.permute.xlu0 %3289  ;;  %v11033_v34 = vld [vmem:[#allocation10_spill] sm:$0xff] }
 0x271   : > { %4030 = vmatpush1.bf16.msra.mxu1 %v3229_v45  ;;  %v3296_v10 = vadd.f32 %v3282_v22, %v9423_v28  ;;  %v3297_v16 = vadd.f32 %v3282_v22, %v9697_v61  ;;  %v3298_v12 = vadd.f32 %v3282_v22, %v9700_v41  ;;  %8549 = vset.pattern.permute.xlu1 %v11030_v63  ;;  %v3311_v41 = vmax.f32 %v3299_v62, 0.0  ;;  %v11037_v63 = vld [vmem:[#allocation11_spill] sm:$0xff] }
 0x272   : > { %3745 = vperm.xlu1 %8549, %v9654_v35   ;;  %3978 = vmatprep.subr.bf16.mxu0 %v3231_v37  ;;  %v3313_v56 = vmax.f32 %v3301_v0, 0.0  ;;  %v3303_v4 = vadd.f32 %v3290_v25, %v9709_v55 }
 0x273   : > { %v3308_v50 = vmax.f32 %v3296_v10, 0.0  ;;  %v3309_v46 = vmax.f32 %v3297_v16, 0.0  ;;  %4031 = vmatprep.subr.bf16.mxu1 %v3233_v40  ;;  %v3310_v28 = vmax.f32 %v3298_v12, 0.0  ;;  %v11034_v40 = vld [vmem:[#allocation84_spill] sm:$0xff]  ;;  %v11036_v12 = vld [vmem:[#allocation86_spill] sm:$0xff] }
 0x274   : > { %3979 = vmatpush1.bf16.msra.mxu0 %v3187_v52  ;;  %v3315_v31 = vmax.f32 %v3303_v4, 0.0  ;;  %v11042_v4 = vld [vmem:[#allocation13_spill] sm:$0xff] }
 0x275   : > { %v3236_v61 = vpop.permute.xlu1 %3235  ;;  %v9968_v1 = vpack.c.bf16 %v3312_v32, %v3309_v46  ;;  %4032 = vmatpush1.bf16.msra.mxu1 %v3232_v21  ;;  %v3320_v52 = vpack.c.bf16 %v3311_v41, %v3308_v50  ;;  %v9980_v51 = vpack.c.bf16 %v3313_v56, %v3310_v28  ;;  %v3244_v42 = vpop.permute.xlu0 %3243  ;;  %v11038_v28 = vld [vmem:[#allocation14_spill] sm:$0xff] }
 0x276   : > { %8107 = vmatmul.mubr.msk.bf16.gmra.mrb[100].mxu1 %vm3916_vm4, %v9966_v30  ;;  %v3250_v5 = vadd.f32 %v3236_v61, %v9677_v9  ;;  %v3251_v3 = vadd.f32 %v3236_v61, %v9680_v23  ;;  %3749 = vperm.xlu1 %8549, %v9667_v2   ;;  %v3252_v14 = vadd.f32 %v3236_v61, %v9421_v27 }
 0x277   : > { %8108 = vmatmul.mubr.msk.bf16.vlgmr.msra.gmra.mrb[100].mxu0 %vm3916_vm4, %v9945_v24  ;;  %4061 = vmatprep.mubr.bf16.mxu1 %v11027_v49  ;;  %v3302_v27 = vadd.f32 %v3290_v25, %v9437_v33  ;;  %v3257_v62 = vadd.f32 %v3244_v42, %v11034_v40 }
 0x278   : > { %4018 = vmatprep.mubr.bf16.mxu0 %v11027_v49  ;;  %4135 = vmatprep.subr.bf16.mxu1 %v3320_v52  ;;  %v3262_v6 = vmax.f32 %v3250_v5, 0.0  ;;  %v3263_v18 = vmax.f32 %v3251_v3, 0.0  ;;  %v3264_v26 = vmax.f32 %v3252_v14, 0.0  ;;  %v11039_v3 = vld [vmem:[#allocation89_spill] sm:$0xff] }
 0x279   : > { %v3240_v15 = vpop.permute.xlu1 %3239  ;;  %v3314_v45 = vmax.f32 %v3302_v27, 0.0  ;;  %v3269_v5 = vmax.f32 %v3257_v62, 0.0 }
 0x27a   : > { %v3253_v9 = vadd.f32 %v3240_v15, %v9683_v11  ;;  %v3254_v23 = vadd.f32 %v3240_v15, %v9685_v13  ;;  %v3255_v2 = vadd.f32 %v3240_v15, %v9428_v29  ;;  %8550 = vset.pattern.permute.xlu1 %v11031_v17  ;;  %v3304_v11 = vadd.f32 %v3290_v25, %v9711_v60  ;;  %v3332_v10 = vpop.permute.xlu0 %3331  ;;  %v11040_v15 = vld [vmem:[#allocation15_spill] sm:$0xff] }
 0x27b   : > { %3833 = vperm.xlu1 %8550, %v9656_v38   ;;  %v11032_v60 = vmov 14   ;;  %v3345_v61 = vadd.f32 %v3332_v10, %v11038_v28  ;;  %v3347_v25 = vadd.f32 %v3332_v10, %v11039_v3  ;;  %v11054_v3 = vld [vmem:[#allocation22_spill] sm:$0xff] }
 0x27c   : > { %v3265_v19 = vmax.f32 %v3253_v9, 0.0  ;;  %v3266_v20 = vmax.f32 %v3254_v23, 0.0  ;;  %v3267_v48 = vmax.f32 %v3255_v2, 0.0  ;;  %v3316_v47 = vmax.f32 %v3304_v11, 0.0  ;;  %v10017_v23 = vpop.f32.mrb[94].mxu1  ;;  %v11041_v2 = vld [vmem:[#allocation12_spill] sm:$0xff] }
 0x27d   : > { %v3359_v11 = vmax.f32 %v3347_v25, 0.0 }
 0x27e   : > { %v3274_v13 = vpack.c.bf16 %v3265_v19, %v3262_v6  ;;  %v3276_v59 = vpack.c.bf16 %v3267_v48, %v3264_v26  ;;  %v3294_v29 = vpop.permute.xlu1 %3293  ;;  %v3275_v7 = vpack.c.bf16 %v3266_v20, %v3263_v18  ;;  %8110 = vmatmul.mubr.msk.bf16.vlgmr.msra.gmra.mrb[104].mxu1 %vm3916_vm4, %v9945_v24  ;;  %v11043_v18 = vld [vmem:[#allocation87_spill] sm:$0xff]  ;;  %v10023_v20 = vpop.f32.mrb[95].mxu1  ;;  %v3357_v48 = vmax.f32 %v3345_v61, 0.0 }
 0x27f   : > { %v3305_v33 = vadd.f32 %v3294_v29, %v9448_v39  ;;  %v3306_v55 = vadd.f32 %v3294_v29, %v9715_v54  ;;  %v3307_v53 = vadd.f32 %v3294_v29, %v9717_v36  ;;  %8109 = vmatmul.mubr.msk.bf16.gmra.mrb[104].mxu0 %vm3916_vm4, %v9966_v30  ;;  %8552 = vset.pattern.permute.xlu1 %v11032_v60 }
 0x280   : > { %3787 = vperm.xlu1 %8552, %v9656_v38   ;;  %4082 = vmatprep.subr.bf16.mxu0 %v3275_v7  ;;  %v3256_v39 = vadd.f32 %v3244_v42, %v9687_v43  ;;  %v3258_v54 = vadd.f32 %v3244_v42, %v11033_v34  ;;  %v11035_v38 = vld [vmem:[#allocation85_spill] sm:$0xff]  ;;  %v3374_v7 = vpop.permute.xlu0 %3373 }
 0x281   : > { %v3317_v8 = vmax.f32 %v3305_v33, 0.0  ;;  %v3318_v44 = vmax.f32 %v3306_v55, 0.0  ;;  %v3319_v58 = vmax.f32 %v3307_v53, 0.0  ;;  %4136 = vmatpush1.bf16.msra.mxu1 %v3276_v59  ;;  %4083 = vmatpush1.bf16.msra.mxu0 %v3274_v13  ;;  %v11044_v53 = vld [vmem:[#allocation16_spill] sm:$0xff] }
 0x282   : > { %4071 = vmatprep.mubr.bf16.mxu1 %v11027_v49  ;;  %4114 = vmatprep.mubr.bf16.mxu0 %v11027_v49  ;;  %v3268_v32 = vmax.f32 %v3256_v39, 0.0  ;;  %v3270_v46 = vmax.f32 %v3258_v54, 0.0  ;;  %v11048_v54 = vld [vmem:[#allocation19_spill] sm:$0xff] }
 0x283   : > { %v10001_v36 = vpack.c.bf16 %v3318_v44, %v3315_v31  ;;  %v3248_v21 = vpop.permute.xlu1 %3247  ;;  %v3323_v22 = vpack.c.bf16 %v3317_v8, %v3314_v45  ;;  %v3325_v37 = vpack.c.bf16 %v3319_v58, %v3316_v47  ;;  %v11045_v31 = vld [vmem:[#allocation17_spill] sm:$0xff]  ;;  %v11046_v8 = vld [vmem:[#allocation91_spill] sm:$0xff] }
 0x284   : > { %v3259_v16 = vadd.f32 %v3248_v21, %v11035_v38  ;;  %v3260_v43 = vadd.f32 %v3248_v21, %v11036_v12  ;;  %v3261_v0 = vadd.f32 %v3248_v21, %v11037_v63  ;;  %3791 = vperm.xlu1 %8552, %v9654_v35   ;;  %v3346_v35 = vadd.f32 %v3332_v10, %v11040_v15  ;;  %v11051_v63 = vld [vmem:[#allocation88_spill] sm:$0xff] }
 0x285   : > { %4137 = vmatprep.subr.bf16.mxu1 %v3323_v22  ;;  %v11049_v22 = vld [vmem:[#allocation93_spill] sm:$0xff] }
 0x286   : > { %v3271_v50 = vmax.f32 %v3259_v16, 0.0  ;;  %v3272_v41 = vmax.f32 %v3260_v43, 0.0  ;;  %v3273_v56 = vmax.f32 %v3261_v0, 0.0  ;;  %8111 = vmatmul.mubr.msk.bf16.gmra.mrb[108].mxu1 %vm3916_vm4, %v9966_v30  ;;  %v3358_v29 = vmax.f32 %v3346_v35, 0.0  ;;  %v11056_v35 = vld [vmem:[#allocation94_spill] sm:$0xff] }
 0x287   : > { %4167 = vmatprep.mubr.bf16.mxu1 %v11027_v49  ;;  %v3388_v0 = vadd.f32 %v3374_v7, %v11051_v63  ;;  %v11066_v63 = vld [vmem:[#allocation103_spill] sm:$0xff] }
 0x288   : > { %v3277_v14 = vpack.c.bf16 %v3271_v50, %v3268_v32  ;;  %v3328_v52 = vpop.permute.xlu1 %3327  ;;  %v3279_v9 = vpack.c.bf16 %v3273_v56, %v3270_v46  ;;  %8553 = vset.pattern.permute.xlu1 %v11031_v17  ;;  %v3278_v19 = vpack.c.bf16 %v3272_v41, %v3269_v5  ;;  %v11052_v32 = vld [vmem:[#allocation21_spill] sm:$0xff]  ;;  %v3386_v46 = vpop.permute.xlu0 %3385  ;;  %v11053_v56 = vld [vmem:[#allocation90_spill] sm:$0xff] }
 0x289   : > { %v3342_v27 = vadd.f32 %v3328_v52, %v11041_v2  ;;  %v3343_v6 = vadd.f32 %v3328_v52, %v11042_v4  ;;  %v3344_v26 = vadd.f32 %v3328_v52, %v11043_v18  ;;  %3845 = vperm.xlu1 %8553, %v9663_v57   ;;  %v3390_v50 = vadd.f32 %v3374_v7, %v11052_v32  ;;  %v11057_v2 = vld [vmem:[#allocation26_spill] sm:$0xff]  ;;  %v11058_v4 = vld [vmem:[#allocation27_spill] sm:$0xff]  ;;  %v11067_v32 = vld [vmem:[#allocation104_spill] sm:$0xff] }
 0x28a   : > { %4138 = vmatpush1.bf16.msra.mxu1 %v3279_v9  ;;  %4084 = vmatprep.subr.bf16.mxu0 %v3278_v19  ;;  %v3397_v9 = vadd.f32 %v3386_v46, %v11056_v35 }
 0x28b   : > { %v3354_v42 = vmax.f32 %v3342_v27, 0.0  ;;  %v3355_v13 = vmax.f32 %v3343_v6, 0.0  ;;  %v3356_v59 = vmax.f32 %v3344_v26, 0.0  ;;  %4085 = vmatpush1.bf16.msra.mxu0 %v3277_v14  ;;  %v11055_v14 = vld [vmem:[#allocation23_spill] sm:$0xff]  ;;  %v3398_v27 = vadd.f32 %v3386_v46, %v11057_v2  ;;  %v11069_v2 = vld [vmem:[#allocation96_spill] sm:$0xff] }
 0x28c   : > { %v3336_v17 = vpop.permute.xlu1 %3335  ;;  %4188 = vmatprep.subr.bf16.mxu0 %v9980_v51  ;;  %v11047_v51 = vld [vmem:[#allocation18_spill] sm:$0xff]  ;;  %v3399_v6 = vadd.f32 %v3386_v46, %v11058_v4 }
 0x28d   : > { %v3366_v33 = vpack.c.bf16 %v3357_v48, %v3354_v42  ;;  %v10025_v55 = vpack.c.bf16 %v3359_v11, %v3356_v59  ;;  %v3348_v45 = vadd.f32 %v3336_v17, %v11044_v53  ;;  %v3349_v47 = vadd.f32 %v3336_v17, %v11045_v31  ;;  %8555 = vset.pattern.permute.xlu1 %v11032_v60  ;;  %v11050_v60 = vld [vmem:[#allocation20_spill] sm:$0xff]  ;;  %v11061_v53 = vld [vmem:[#allocation25_spill] sm:$0xff] }
 0x28e   : > { %v3350_v44 = vadd.f32 %v3336_v17, %v11046_v8  ;;  %8114 = vmatmul.mubr.msk.bf16.vlgmr.msra.gmra.mrb[112].mxu1 %vm3916_vm4, %v9945_v24  ;;  %3799 = vperm.xlu1 %8555, %v9663_v57   ;;  %v3367_v58 = vpack.c.bf16 %v3358_v29, %v3355_v13  ;;  %v3389_v62 = vadd.f32 %v3374_v7, %v11050_v60  ;;  %v3882_v57 = vld [vmem:[%s10843_s7] sm:$0xff]  ;;  %v3400_v48 = vmax.f32 %v3388_v0, 0.0  ;;  %v3470_v13 = vpop.permute.xlu0 %3469 }
 0x28f   : > { %8112 = vmatmul.mubr.msk.bf16.vlgmr.msra.gmra.mrb[108].mxu0 %vm3916_vm4, %v9945_v24  ;;  %4177 = vmatprep.mubr.bf16.mxu1 %v11027_v49  ;;  %v3360_v10 = vmax.f32 %v3348_v45, 0.0  ;;  %v3361_v38 = vmax.f32 %v3349_v47, 0.0  ;;  %v3402_v11 = vmax.f32 %v3390_v50, 0.0  ;;  %v11059_v17 = vld [vmem:[#allocation92_spill] sm:$0xff]  ;;  %v3409_v31 = vmax.f32 %v3397_v9, 0.0 }
 0x290   : > { %v3340_v39 = vpop.permute.xlu1 %3339  ;;  %4189 = vmatpush1.bf16.msra.mxu0 %v9968_v1  ;;  %4241 = vmatprep.subr.bf16.mxu1 %v3367_v58  ;;  %v3362_v16 = vmax.f32 %v3350_v44, 0.0  ;;  %v3401_v15 = vmax.f32 %v3389_v62, 0.0  ;;  %v11060_v7 = vld [vmem:[#allocation24_spill] sm:$0xff]  ;;  %v3410_v47 = vmax.f32 %v3398_v27, 0.0  ;;  %v11064_v62 = vld [vmem:[#allocation106_spill] sm:$0xff] }
 0x291   : > { %v3351_v34 = vadd.f32 %v3340_v39, %v11047_v51  ;;  %v3352_v21 = vadd.f32 %v3340_v39, %v11048_v54  ;;  %v3353_v40 = vadd.f32 %v3340_v39, %v11049_v22  ;;  %4190 = vmatprep.subr.bf16.mxu0 %v3325_v37  ;;  %4242 = vmatpush1.bf16.msra.mxu1 %v3366_v33  ;;  %v3885_v58 = vld [vmem:[%s10843_s7 + $0x18] sm:$0xff]  ;;  %v3411_v39 = vmax.f32 %v3399_v6, 0.0  ;;  %v11071_v6 = vld [vmem:[#allocation33_spill] sm:$0xff] }
 0x292   : > { %4124 = vmatprep.mubr.bf16.mxu0 %v11027_v49  ;;  %8556 = vset.pattern.permute.xlu1 %v11027_v49 }
 0x293   : > { %v3363_v1 = vmax.f32 %v3351_v34, 0.0  ;;  %v3364_v12 = vmax.f32 %v3352_v21, 0.0  ;;  %v3365_v43 = vmax.f32 %v3353_v40, 0.0  ;;  %3888 = vperm.xlu1 %8556, %v3882_v57   ;;  %v11062_v21 = vld [vmem:[#allocation31_spill] sm:$0xff]  ;;  %v11063_v40 = vld [vmem:[#allocation105_spill] sm:$0xff] }
 0x294   : > { %4191 = vmatpush1.bf16.msra.mxu0 %v10001_v36  ;;  %v3884_v36 = vld [vmem:[%s10843_s7 + $0x10] sm:$0xff]  ;;  %v3483_v22 = vadd.f32 %v3470_v13, %v11062_v21  ;;  %v3484_v60 = vadd.f32 %v3470_v13, %v11063_v40  ;;  %v11078_v40 = vld [vmem:[#allocation109_spill] sm:$0xff] }
 0x295   : > { %v3369_v28 = vpack.c.bf16 %v3363_v1, %v3360_v10  ;;  %v10050_v37 = vpack.c.bf16 %v3365_v43, %v3362_v16  ;;  %v3378_v61 = vpop.permute.xlu1 %3377  ;;  %v3370_v41 = vpack.c.bf16 %v3364_v12, %v3361_v38  ;;  %v3485_v10 = vadd.f32 %v3470_v13, %v11064_v62  ;;  %v11065_v12 = vld [vmem:[#allocation29_spill] sm:$0xff]  ;;  %v11077_v21 = vld [vmem:[#allocation35_spill] sm:$0xff]  ;;  %v11079_v62 = vld [vmem:[#allocation110_spill] sm:$0xff] }
 0x296   : > { %v3391_v5 = vadd.f32 %v3378_v61, %v11053_v56  ;;  %v3392_v25 = vadd.f32 %v3378_v61, %v11054_v3  ;;  %v3393_v52 = vadd.f32 %v3378_v61, %v11055_v14  ;;  %8115 = vmatmul.mubr.msk.bf16.gmra.mrb[116].mxu1 %vm3916_vm4, %v9966_v30  ;;  %v3495_v46 = vmax.f32 %v3483_v22, 0.0  ;;  %v5388_v3 = vld [vmem:[#allocation2] sm:$0x1] }
 0x297   : > { %4243 = vmatprep.subr.bf16.mxu1 %v3370_v41  ;;  %8113 = vmatmul.mubr.msk.bf16.gmra.mrb[112].mxu0 %vm3916_vm4, %v9966_v30  ;;  %v3497_v56 = vmax.f32 %v3485_v10, 0.0 }
 0x298   : > { %v3403_v18 = vmax.f32 %v3391_v5, 0.0  ;;  %v3404_v26 = vmax.f32 %v3392_v25, 0.0  ;;  %v3405_v19 = vmax.f32 %v3393_v52, 0.0  ;;  %4244 = vmatpush1.bf16.msra.mxu1 %v3369_v28  ;;  %4273 = vmatprep.mubr.bf16.mxu1 %v11027_v49  ;;  %v3496_v28 = vmax.f32 %v3484_v60, 0.0 }
 0x299   : > { %v3382_v42 = vpop.permute.xlu1 %3381  ;;  %4220 = vmatprep.mubr.bf16.mxu0 %v11027_v49  ;;  %3898 = vperm.xlu1 %8556, %v3884_v36   ;;  %v11070_v36 = vld [vmem:[#allocation28_spill] sm:$0xff] }
 0x29a   : > { %v3413_v59 = vpack.c.bf16 %v3404_v26, %v3401_v15  ;;  %v3394_v29 = vadd.f32 %v3382_v42, %v11059_v17  ;;  %v3395_v33 = vadd.f32 %v3382_v42, %v11060_v7  ;;  %v3396_v45 = vadd.f32 %v3382_v42, %v11061_v53  ;;  %5391 = vperm.xlu0 %8557, %v5388_v3   ;;  %v3474_v15 = vpop.permute.xlu0 %3473  ;;  %v11074_v42 = vld [vmem:[#allocation30_spill] sm:$0xff]  ;;  %v11083_v3 = vld [vmem:[#allocation101_spill] sm:$0xff] }
 0x29b   : > { %v3412_v8 = vpack.c.bf16 %v3403_v18, %v3400_v48  ;;  %v3414_v44 = vpack.c.bf16 %v3405_v19, %v3402_v11  ;;  %v3486_v18 = vadd.f32 %v3474_v15, %v11071_v6  ;;  %v11072_v19 = vld [vmem:[#allocation97_spill] sm:$0xff]  ;;  %v11073_v11 = vld [vmem:[#allocation98_spill] sm:$0xff] }
 0x29c   : > { %v3406_v51 = vmax.f32 %v3394_v29, 0.0  ;;  %v3407_v34 = vmax.f32 %v3395_v33, 0.0  ;;  %v3408_v54 = vmax.f32 %v3396_v45, 0.0  ;;  %v11076_v29 = vld [vmem:[#allocation108_spill] sm:$0xff] }
 0x29d   : > { %4294 = vmatprep.subr.bf16.mxu0 %v3412_v8  ;;  %4347 = vmatprep.subr.bf16.mxu1 %v3414_v44  ;;  %v3488_v7 = vadd.f32 %v3474_v15, %v11076_v29 }
 0x29e   : > { %v3416_v38 = vpack.c.bf16 %v3410_v47, %v3407_v34  ;;  %v3466_v57 = vpop.permute.xlu1 %3465  ;;  %v3415_v16 = vpack.c.bf16 %v3409_v31, %v3406_v51  ;;  %v3417_v1 = vpack.c.bf16 %v3411_v39, %v3408_v54  ;;  %3903 = vperm.xlu1 %8556, %v3885_v58   ;;  %8118 = vmatmul.mubr.msk.bf16.vlgmr.msra.gmra.mrb[120].mxu1 %vm3916_vm4, %v9945_v24  ;;  %v3428_v44 = vpop.permute.xlu0 %3427  ;;  %v3498_v54 = vmax.f32 %v3486_v18, 0.0 }
 0x29f   : > { %v3480_v43 = vadd.f32 %v3466_v57, %v11065_v12  ;;  %v3481_v0 = vadd.f32 %v3466_v57, %v11066_v63  ;;  %4348 = vmatpush1.bf16.msra.mxu1 %v3413_v59  ;;  %8116 = vmatmul.mubr.msk.bf16.vlgmr.msra.gmra.mrb[116].mxu0 %vm3916_vm4, %v9945_v24  ;;  %v3482_v50 = vadd.f32 %v3466_v57, %v11067_v32  ;;  %v11075_v59 = vld [vmem:[#allocation107_spill] sm:$0xff]  ;;  %v3500_v57 = vmax.f32 %v3488_v7, 0.0  ;;  %v11081_v12 = vld [vmem:[#allocation100_spill] sm:$0xff] }
 0x2a0   : > { %4295 = vmatpush1.bf16.msra.mxu0 %v10025_v55  ;;  %4349 = vmatprep.subr.bf16.mxu1 %v3417_v1  ;;  %v11068_v55 = vld [vmem:[#allocation95_spill] sm:$0xff]  ;;  %v3487_v17 = vadd.f32 %v3474_v15, %v11075_v59  ;;  %v11082_v63 = vld [vmem:[#allocation32_spill] sm:$0xff] }
 0x2a1   : > { %v3492_v61 = vmax.f32 %v3480_v43, 0.0  ;;  %v3493_v41 = vmax.f32 %v3481_v0, 0.0  ;;  %v3494_v5 = vmax.f32 %v3482_v50, 0.0  ;;  %4296 = vmatprep.subr.bf16.mxu0 %v3415_v16  ;;  %4283 = vmatprep.mubr.bf16.mxu1 %v11027_v49  ;;  %v11080_v16 = vld [vmem:[#allocation99_spill] sm:$0xff]  ;;  %v3441_v43 = vadd.f32 %v3428_v44, %v11081_v12  ;;  %v11089_v7 = vld [vmem:[#allocation36_spill] sm:$0xff] }
 0x2a2   : > { %4230 = vmatprep.mubr.bf16.mxu0 %v11027_v49  ;;  %v3440_v1 = vadd.f32 %v3428_v44, %v11080_v16  ;;  %v3442_v0 = vadd.f32 %v3428_v44, %v11082_v63  ;;  %v11096_v63 = vld [vmem:[#allocation43_spill] sm:$0xff] }
 0x2a3   : > { %v10086_v25 = vpack.c.bf16 %v3496_v28, %v3493_v41  ;;  %v3420_v14 = vpop.permute.xlu1 %3419  ;;  %v3504_v52 = vpack.c.bf16 %v3495_v46, %v3492_v61  ;;  %4350 = vmatpush1.bf16.msra.mxu1 %v3416_v38  ;;  %v10089_v35 = vpack.c.bf16 %v3497_v56, %v3494_v5  ;;  %v3499_v38 = vmax.f32 %v3487_v17, 0.0  ;;  %v3516_v28 = vpop.permute.xlu0 %3515  ;;  %v11088_v17 = vld [vmem:[#allocation39_spill] sm:$0xff] }
 0x2a4   : > { %4297 = vmatpush1.bf16.msra.mxu0 %v10050_v37  ;;  %v3434_v9 = vadd.f32 %v3420_v14, %v11068_v55  ;;  %v3435_v27 = vadd.f32 %v3420_v14, %v11069_v2  ;;  %v3436_v4 = vadd.f32 %v3420_v14, %v11070_v36  ;;  %v11085_v55 = vld [vmem:[#allocation34_spill] sm:$0xff]  ;;  %v3452_v2 = vmax.f32 %v3440_v1, 0.0 }
 0x2a5   : > { %4453 = vmatprep.subr.bf16.mxu1 %v3504_v52  ;;  %v11084_v52 = vld [vmem:[#allocation102_spill] sm:$0xff]  ;;  %v3454_v36 = vmax.f32 %v3442_v0, 0.0  ;;  %v3530_v29 = vadd.f32 %v3516_v28, %v11088_v17 }
 0x2a6   : > { %8119 = vmatmul.mubr.msk.bf16.gmra.mrb[124].mxu1 %vm3916_vm4, %v9966_v30  ;;  %v3446_v33 = vmax.f32 %v3434_v9, 0.0  ;;  %v3447_v53 = vmax.f32 %v3435_v27, 0.0  ;;  %v3448_v45 = vmax.f32 %v3436_v4, 0.0  ;;  %v3453_v27 = vmax.f32 %v3441_v43, 0.0  ;;  %v11086_v4 = vld [vmem:[#allocation38_spill] sm:$0xff] }
 0x2a7   : > { %v3424_v26 = vpop.permute.xlu1 %3423  ;;  %8117 = vmatmul.mubr.msk.bf16.gmra.mrb[120].mxu0 %vm3916_vm4, %v9966_v30  ;;  %4379 = vmatprep.mubr.bf16.mxu1 %v11027_v49  ;;  %v3529_v6 = vadd.f32 %v3516_v28, %v11086_v4 }
 0x2a8   : > { %v3437_v48 = vadd.f32 %v3424_v26, %v11072_v19  ;;  %v3438_v37 = vadd.f32 %v3424_v26, %v11073_v11  ;;  %v3439_v13 = vadd.f32 %v3424_v26, %v11074_v42  ;;  %4326 = vmatprep.mubr.bf16.mxu0 %v11027_v49 }
 0x2aa   : > { %v3449_v31 = vmax.f32 %v3437_v48, 0.0  ;;  %v3450_v47 = vmax.f32 %v3438_v37, 0.0  ;;  %v3451_v8 = vmax.f32 %v3439_v13, 0.0  ;;  %v11087_v48 = vld [vmem:[#allocation113_spill] sm:$0xff] }
 0x2ab   : > { %v3531_v11 = vadd.f32 %v3516_v28, %v11087_v48  ;;  %v11102_v48 = vld [vmem:[#allocation114_spill] sm:$0xff] }
 0x2ac   : > { %v3458_v58 = vpack.c.bf16 %v3449_v31, %v3446_v33  ;;  %v3460_v39 = vpack.c.bf16 %v3451_v8, %v3448_v45  ;;  %v3478_v51 = vpop.permute.xlu1 %3477  ;;  %v3459_v34 = vpack.c.bf16 %v3450_v47, %v3447_v53  ;;  %v11090_v53 = vld [vmem:[#allocation37_spill] sm:$0xff]  ;;  %v11091_v31 = vld [vmem:[#allocation111_spill] sm:$0xff]  ;;  %v3541_v8 = vmax.f32 %v3529_v6, 0.0 }
 0x2ad   : > { %v3489_v22 = vadd.f32 %v3478_v51, %v11077_v21  ;;  %v3490_v60 = vadd.f32 %v3478_v51, %v11078_v40  ;;  %v3491_v10 = vadd.f32 %v3478_v51, %v11079_v62  ;;  %v3543_v44 = vmax.f32 %v3531_v11, 0.0  ;;  %v3558_v21 = vpop.permute.xlu0 %3557 }
 0x2ae   : > { %4400 = vmatprep.subr.bf16.mxu0 %v3459_v34  ;;  %8122 = vmatmul.mubr.msk.bf16.vlgmr.msra.gmra.mrb[128].mxu1 %vm3916_vm4, %v9945_v24 }
 0x2af   : > { %v3501_v32 = vmax.f32 %v3489_v22, 0.0  ;;  %v3502_v50 = vmax.f32 %v3490_v60, 0.0  ;;  %v3503_v46 = vmax.f32 %v3491_v10, 0.0  ;;  %8120 = vmatmul.mubr.msk.bf16.vlgmr.msra.gmra.mrb[124].mxu0 %vm3916_vm4, %v9945_v24  ;;  %4454 = vmatpush1.bf16.msra.mxu1 %v3460_v39  ;;  %v11092_v60 = vld [vmem:[#allocation40_spill] sm:$0xff]  ;;  %v11093_v10 = vld [vmem:[#allocation41_spill] sm:$0xff] }
 0x2b0   : > { %4401 = vmatpush1.bf16.msra.mxu0 %v3458_v58  ;;  %4389 = vmatprep.mubr.bf16.mxu1 %v11027_v49 }
 0x2b1   : > { %v10117_v61 = vpack.c.bf16 %v3502_v50, %v3499_v38  ;;  %v3432_v41 = vpop.permute.xlu1 %3431  ;;  %v3507_v56 = vpack.c.bf16 %v3501_v32, %v3498_v54  ;;  %v10120_v5 = vpack.c.bf16 %v3503_v46, %v3500_v57  ;;  %4336 = vmatprep.mubr.bf16.mxu0 %v11027_v49  ;;  %v3542_v54 = vmax.f32 %v3530_v29, 0.0  ;;  %v11094_v57 = vld [vmem:[#allocation115_spill] sm:$0xff]  ;;  %v11097_v32 = vld [vmem:[#allocation117_spill] sm:$0xff] }
 0x2b2   : > { %v3443_v14 = vadd.f32 %v3432_v41, %v11083_v3  ;;  %v3444_v15 = vadd.f32 %v3432_v41, %v11084_v52  ;;  %v3445_v9 = vadd.f32 %v3432_v41, %v11085_v55  ;;  %v3570_v41 = vpop.permute.xlu0 %3569 }
 0x2b3   : > { %4455 = vmatprep.subr.bf16.mxu1 %v3507_v56 }
 0x2b4   : > { %v3455_v18 = vmax.f32 %v3443_v14, 0.0  ;;  %v3456_v26 = vmax.f32 %v3444_v15, 0.0  ;;  %v3457_v19 = vmax.f32 %v3445_v9, 0.0  ;;  %v11098_v15 = vld [vmem:[#allocation112_spill] sm:$0xff] }
 0x2b5   : > { %v3572_v55 = vadd.f32 %v3558_v21, %v11098_v15  ;;  %v11099_v9 = vld [vmem:[#allocation44_spill] sm:$0xff] }
 0x2b6   : > { %v3461_v37 = vpack.c.bf16 %v3455_v18, %v3452_v2  ;;  %v3463_v42 = vpack.c.bf16 %v3457_v19, %v3454_v36  ;;  %v3512_v13 = vpop.permute.xlu1 %3511  ;;  %v3462_v59 = vpack.c.bf16 %v3456_v26, %v3453_v27  ;;  %8123 = vmatmul.mubr.msk.bf16.gmra.mrb[132].mxu1 %vm3916_vm4, %v9966_v30  ;;  %v3573_v2 = vadd.f32 %v3558_v21, %v11099_v9  ;;  %v11100_v27 = vld [vmem:[#allocation45_spill] sm:$0xff]  ;;  %v11101_v26 = vld [vmem:[#allocation118_spill] sm:$0xff]  ;;  %v11115_v15 = vld [vmem:[#allocation128_spill] sm:$0xff] }
 0x2b7   : > { %v3526_v33 = vadd.f32 %v3512_v13, %v11089_v7  ;;  %v3527_v45 = vadd.f32 %v3512_v13, %v11090_v53  ;;  %v3528_v47 = vadd.f32 %v3512_v13, %v11091_v31  ;;  %8121 = vmatmul.mubr.msk.bf16.gmra.mrb[128].mxu0 %vm3916_vm4, %v9966_v30  ;;  %4485 = vmatprep.mubr.bf16.mxu1 %v11027_v49  ;;  %v11104_v13 = vld [vmem:[#allocation50_spill] sm:$0xff]  ;;  %v3584_v53 = vmax.f32 %v3572_v55, 0.0  ;;  %v11106_v31 = vld [vmem:[#allocation51_spill] sm:$0xff] }
 0x2b8   : > { %4402 = vmatprep.subr.bf16.mxu0 %v3462_v59  ;;  %4456 = vmatpush1.bf16.msra.mxu1 %v3463_v42  ;;  %v3574_v36 = vadd.f32 %v3558_v21, %v11100_v27  ;;  %v3581_v19 = vadd.f32 %v3570_v41, %v11101_v26  ;;  %v3582_v59 = vadd.f32 %v3570_v41, %v11104_v13  ;;  %v3585_v29 = vmax.f32 %v3573_v2, 0.0 }
 0x2b9   : > { %v3538_v58 = vmax.f32 %v3526_v33, 0.0  ;;  %v3539_v39 = vmax.f32 %v3527_v45, 0.0  ;;  %v3540_v51 = vmax.f32 %v3528_v47, 0.0  ;;  %4403 = vmatpush1.bf16.msra.mxu0 %v3461_v37  ;;  %4432 = vmatprep.mubr.bf16.mxu0 %v11027_v49  ;;  %v11103_v37 = vld [vmem:[#allocation46_spill] sm:$0xff]  ;;  %v3583_v47 = vadd.f32 %v3570_v41, %v11106_v31 }
 0x2ba   : > { %4506 = vmatprep.subr.bf16.mxu0 %v10089_v35  ;;  %v3520_v34 = vpop.permute.xlu1 %3519  ;;  %v11095_v35 = vld [vmem:[#allocation42_spill] sm:$0xff]  ;;  %v3586_v45 = vmax.f32 %v3574_v36, 0.0 }
 0x2bb   : > { %v3550_v22 = vpack.c.bf16 %v3541_v8, %v3538_v58  ;;  %v10138_v40 = vpack.c.bf16 %v3543_v44, %v3540_v51  ;;  %v3532_v62 = vadd.f32 %v3520_v34, %v11092_v60  ;;  %v3533_v38 = vadd.f32 %v3520_v34, %v11093_v10  ;;  %v3654_v8 = vpop.permute.xlu0 %3653  ;;  %v11109_v60 = vld [vmem:[#allocation49_spill] sm:$0xff]  ;;  %v11121_v31 = vld [vmem:[#allocation122_spill] sm:$0xff] }
 0x2bc   : > { %v3534_v16 = vadd.f32 %v3520_v34, %v11094_v57  ;;  %v3551_v1 = vpack.c.bf16 %v3542_v54, %v3539_v39  ;;  %v3593_v39 = vmax.f32 %v3581_v19, 0.0  ;;  %v11108_v54 = vld [vmem:[#allocation48_spill] sm:$0xff]  ;;  %v11110_v57 = vld [vmem:[#allocation55_spill] sm:$0xff] }
 0x2bd   : > { %v3544_v46 = vmax.f32 %v3532_v62, 0.0  ;;  %v3545_v28 = vmax.f32 %v3533_v38, 0.0 }
 0x2be   : > { %v3524_v12 = vpop.permute.xlu1 %3523  ;;  %8126 = vmatmul.mubr.msk.bf16.vlgmr.msra.gmra.mrb[136].mxu1 %vm3916_vm4, %v9945_v24  ;;  %4559 = vmatprep.subr.bf16.mxu1 %v3551_v1  ;;  %v3546_v56 = vmax.f32 %v3534_v16, 0.0  ;;  %v3667_v16 = vadd.f32 %v3654_v8, %v11110_v57  ;;  %v11111_v1 = vld [vmem:[#allocation129_spill] sm:$0xff] }
 0x2bf   : > { %v3535_v43 = vadd.f32 %v3524_v12, %v11095_v35  ;;  %v3536_v0 = vadd.f32 %v3524_v12, %v11096_v63  ;;  %v3537_v50 = vadd.f32 %v3524_v12, %v11097_v32  ;;  %8124 = vmatmul.mubr.msk.bf16.vlgmr.msra.gmra.mrb[132].mxu0 %vm3916_vm4, %v9945_v24  ;;  %4560 = vmatpush1.bf16.msra.mxu1 %v3550_v22  ;;  %v3594_v22 = vmax.f32 %v3582_v59, 0.0  ;;  %v11112_v63 = vld [vmem:[#allocation130_spill] sm:$0xff]  ;;  %v11117_v59 = vld [vmem:[#allocation120_spill] sm:$0xff] }
 0x2c0   : > { %4507 = vmatpush1.bf16.msra.mxu0 %v10086_v25  ;;  %4495 = vmatprep.mubr.bf16.mxu1 %v11027_v49  ;;  %v3668_v12 = vadd.f32 %v3654_v8, %v11111_v1  ;;  %v3679_v9 = vmax.f32 %v3667_v16, 0.0 }
 0x2c1   : > { %v3547_v3 = vmax.f32 %v3535_v43, 0.0  ;;  %v3548_v14 = vmax.f32 %v3536_v0, 0.0  ;;  %v3549_v52 = vmax.f32 %v3537_v50, 0.0  ;;  %4508 = vmatprep.subr.bf16.mxu0 %v10120_v5  ;;  %4442 = vmatprep.mubr.bf16.mxu0 %v11027_v49  ;;  %v11105_v5 = vld [vmem:[#allocation47_spill] sm:$0xff]  ;;  %v3669_v0 = vadd.f32 %v3654_v8, %v11112_v63  ;;  %v11122_v8 = vld [vmem:[#allocation54_spill] sm:$0xff] }
 0x2c2   : > { %v3595_v50 = vmax.f32 %v3583_v47, 0.0  ;;  %v3680_v2 = vmax.f32 %v3668_v12, 0.0  ;;  %v11125_v12 = vld [vmem:[#allocation59_spill] sm:$0xff] }
 0x2c3   : > { %v3553_v4 = vpack.c.bf16 %v3547_v3, %v3544_v46  ;;  %v10158_v6 = vpack.c.bf16 %v3549_v52, %v3546_v56  ;;  %v3562_v18 = vpop.permute.xlu1 %3561  ;;  %v3554_v25 = vpack.c.bf16 %v3548_v14, %v3545_v28  ;;  %v11113_v56 = vld [vmem:[#allocation53_spill] sm:$0xff]  ;;  %v11114_v14 = vld [vmem:[#allocation127_spill] sm:$0xff]  ;;  %v3681_v36 = vmax.f32 %v3669_v0, 0.0  ;;  %v11127_v0 = vld [vmem:[#allocation134_spill] sm:$0xff] }
 0x2c4   : > { %v3575_v11 = vadd.f32 %v3562_v18, %v11102_v48  ;;  %v3576_v42 = vadd.f32 %v3562_v18, %v11103_v37  ;;  %4509 = vmatpush1.bf16.msra.mxu0 %v10117_v61  ;;  %v3577_v17 = vadd.f32 %v3562_v18, %v11105_v5  ;;  %v11107_v61 = vld [vmem:[#allocation116_spill] sm:$0xff]  ;;  %v3658_v37 = vpop.permute.xlu0 %3657 }
 0x2c5   : > { %4561 = vmatprep.subr.bf16.mxu1 %v3554_v25 }
 0x2c6   : > { %v3587_v7 = vmax.f32 %v3575_v11, 0.0  ;;  %v3588_v33 = vmax.f32 %v3576_v42, 0.0  ;;  %v3589_v44 = vmax.f32 %v3577_v17, 0.0  ;;  %8127 = vmatmul.mubr.msk.bf16.gmra.mrb[140].mxu1 %vm3916_vm4, %v9966_v30  ;;  %v11116_v42 = vld [vmem:[#allocation119_spill] sm:$0xff]  ;;  %v11118_v17 = vld [vmem:[#allocation52_spill] sm:$0xff] }
 0x2c7   : > { %v3566_v58 = vpop.permute.xlu1 %3565  ;;  %8125 = vmatmul.mubr.msk.bf16.gmra.mrb[136].mxu0 %vm3916_vm4, %v9966_v30  ;;  %4562 = vmatpush1.bf16.msra.mxu1 %v3553_v4 }
 0x2c8   : > { %v3597_v51 = vpack.c.bf16 %v3588_v33, %v3585_v29  ;;  %v3578_v34 = vadd.f32 %v3566_v58, %v11107_v61  ;;  %v3579_v21 = vadd.f32 %v3566_v58, %v11108_v54  ;;  %v3580_v62 = vadd.f32 %v3566_v58, %v11109_v60  ;;  %4591 = vmatprep.mubr.bf16.mxu1 %v11027_v49  ;;  %v11123_v58 = vld [vmem:[#allocation131_spill] sm:$0xff] }
 0x2c9   : > { %v3596_v10 = vpack.c.bf16 %v3587_v7, %v3584_v53  ;;  %v3598_v38 = vpack.c.bf16 %v3589_v44, %v3586_v45  ;;  %4538 = vmatprep.mubr.bf16.mxu0 %v11027_v49  ;;  %v11119_v7 = vld [vmem:[#allocation57_spill] sm:$0xff] }
 0x2ca   : > { %v3590_v35 = vmax.f32 %v3578_v34, 0.0  ;;  %v3591_v43 = vmax.f32 %v3579_v21, 0.0  ;;  %v3592_v32 = vmax.f32 %v3580_v62, 0.0  ;;  %v3670_v33 = vadd.f32 %v3658_v37, %v11119_v7  ;;  %v11120_v53 = vld [vmem:[#allocation121_spill] sm:$0xff]  ;;  %v3612_v62 = vpop.permute.xlu0 %3611 }
 0x2cb   : > { %4612 = vmatprep.subr.bf16.mxu0 %v3596_v10  ;;  %4665 = vmatprep.subr.bf16.mxu1 %v3598_v38 }
 0x2cc   : > { %v3600_v46 = vpack.c.bf16 %v3594_v22, %v3591_v43  ;;  %v3650_v28 = vpop.permute.xlu1 %3649  ;;  %v3599_v41 = vpack.c.bf16 %v3593_v39, %v3590_v35  ;;  %v3601_v27 = vpack.c.bf16 %v3595_v50, %v3592_v32  ;;  %v3671_v39 = vadd.f32 %v3658_v37, %v11123_v58  ;;  %v11126_v43 = vld [vmem:[#allocation133_spill] sm:$0xff] }
 0x2cd   : > { %v3664_v3 = vadd.f32 %v3650_v28, %v11113_v56  ;;  %v3665_v52 = vadd.f32 %v3650_v28, %v11114_v14  ;;  %v3666_v55 = vadd.f32 %v3650_v28, %v11115_v15  ;;  %v3682_v1 = vmax.f32 %v3670_v33, 0.0  ;;  %v11128_v28 = vld [vmem:[#allocation123_spill] sm:$0xff]  ;;  %v11129_v56 = vld [vmem:[#allocation124_spill] sm:$0xff] }
 0x2ce   : > { %8130 = vmatmul.mubr.msk.bf16.vlgmr.msra.gmra.mrb[144].mxu1 %vm3916_vm4, %v9945_v24  ;;  %v3683_v50 = vmax.f32 %v3671_v39, 0.0  ;;  %v11130_v14 = vld [vmem:[#allocation56_spill] sm:$0xff] }
 0x2cf   : > { %v3676_v4 = vmax.f32 %v3664_v3, 0.0  ;;  %v3677_v18 = vmax.f32 %v3665_v52, 0.0  ;;  %v3678_v25 = vmax.f32 %v3666_v55, 0.0  ;;  %4666 = vmatpush1.bf16.msra.mxu1 %v3597_v51  ;;  %8128 = vmatmul.mubr.msk.bf16.vlgmr.msra.gmra.mrb[140].mxu0 %vm3916_vm4, %v9945_v24  ;;  %v11124_v51 = vld [vmem:[#allocation132_spill] sm:$0xff]  ;;  %v3625_v3 = vadd.f32 %v3612_v62, %v11129_v56  ;;  %v11144_v56 = vld [vmem:[#allocation67_spill] sm:$0xff] }
 0x2d0   : > { %4613 = vmatpush1.bf16.msra.mxu0 %v10138_v40  ;;  %4667 = vmatprep.subr.bf16.mxu1 %v3601_v27  ;;  %v3672_v61 = vadd.f32 %v3658_v37, %v11124_v51  ;;  %v3626_v52 = vadd.f32 %v3612_v62, %v11130_v14  ;;  %v11137_v51 = vld [vmem:[#allocation60_spill] sm:$0xff]  ;;  %v11145_v14 = vld [vmem:[#allocation141_spill] sm:$0xff] }
 0x2d1   : > { %v10186_v26 = vpack.c.bf16 %v3680_v2, %v3677_v18  ;;  %v3604_v19 = vpop.permute.xlu1 %3603  ;;  %v3688_v48 = vpack.c.bf16 %v3679_v9, %v3676_v4  ;;  %v10189_v11 = vpack.c.bf16 %v3681_v36, %v3678_v25  ;;  %4614 = vmatprep.subr.bf16.mxu0 %v3599_v41  ;;  %4601 = vmatprep.mubr.bf16.mxu1 %v11027_v49  ;;  %v3700_v2 = vpop.permute.xlu0 %3699  ;;  %v11131_v25 = vld [vmem:[#allocation125_spill] sm:$0xff] }
 0x2d2   : > { %v3618_v13 = vadd.f32 %v3604_v19, %v11116_v42  ;;  %v3619_v5 = vadd.f32 %v3604_v19, %v11117_v59  ;;  %4548 = vmatprep.mubr.bf16.mxu0 %v11027_v49  ;;  %v3620_v29 = vadd.f32 %v3604_v19, %v11118_v17  ;;  %v3624_v41 = vadd.f32 %v3612_v62, %v11128_v28  ;;  %v11133_v42 = vld [vmem:[#allocation58_spill] sm:$0xff] }
 0x2d3   : > { %4668 = vmatpush1.bf16.msra.mxu1 %v3600_v46  ;;  %v3684_v46 = vmax.f32 %v3672_v61, 0.0  ;;  %v3638_v17 = vmax.f32 %v3626_v52, 0.0 }
 0x2d4   : > { %4615 = vmatpush1.bf16.msra.mxu0 %v10158_v6  ;;  %4771 = vmatprep.subr.bf16.mxu1 %v3688_v48  ;;  %v3630_v34 = vmax.f32 %v3618_v13, 0.0  ;;  %v3631_v54 = vmax.f32 %v3619_v5, 0.0  ;;  %v3632_v6 = vmax.f32 %v3620_v29, 0.0  ;;  %v11132_v48 = vld [vmem:[#allocation126_spill] sm:$0xff]  ;;  %v3636_v59 = vmax.f32 %v3624_v41, 0.0 }
 0x2d5   : > { %v3608_v40 = vpop.permute.xlu1 %3607  ;;  %v3637_v5 = vmax.f32 %v3625_v3, 0.0  ;;  %v11134_v29 = vld [vmem:[#allocation62_spill] sm:$0xff] }
 0x2d6   : > { %v3621_v45 = vadd.f32 %v3608_v40, %v11120_v53  ;;  %v3622_v47 = vadd.f32 %v3608_v40, %v11121_v31  ;;  %v3623_v44 = vadd.f32 %v3608_v40, %v11122_v8  ;;  %8131 = vmatmul.mubr.msk.bf16.gmra.mrb[148].mxu1 %vm3916_vm4, %v9966_v30  ;;  %v3713_v40 = vadd.f32 %v3700_v2, %v11134_v29  ;;  %v11136_v31 = vld [vmem:[#allocation63_spill] sm:$0xff]  ;;  %v11143_v41 = vld [vmem:[#allocation66_spill] sm:$0xff]  ;;  %v11148_v29 = vld [vmem:[#allocation69_spill] sm:$0xff] }
 0x2d7   : > { %8129 = vmatmul.mubr.msk.bf16.gmra.mrb[144].mxu0 %vm3916_vm4, %v9966_v30  ;;  %4697 = vmatprep.mubr.bf16.mxu1 %v11027_v49 }
 0x2d8   : > { %v3633_v21 = vmax.f32 %v3621_v45, 0.0  ;;  %v3634_v22 = vmax.f32 %v3622_v47, 0.0  ;;  %v3635_v60 = vmax.f32 %v3623_v44, 0.0  ;;  %4644 = vmatprep.mubr.bf16.mxu0 %v11027_v49  ;;  %v3714_v47 = vadd.f32 %v3700_v2, %v11136_v31  ;;  %v11151_v31 = vld [vmem:[#allocation138_spill] sm:$0xff] }
 0x2da   : > { %v3642_v10 = vpack.c.bf16 %v3633_v21, %v3630_v34  ;;  %v3644_v38 = vpack.c.bf16 %v3635_v60, %v3632_v6  ;;  %v3662_v57 = vpop.permute.xlu1 %3661  ;;  %v3643_v16 = vpack.c.bf16 %v3634_v22, %v3631_v54  ;;  %v11138_v34 = vld [vmem:[#allocation61_spill] sm:$0xff]  ;;  %v11139_v6 = vld [vmem:[#allocation135_spill] sm:$0xff]  ;;  %v3725_v22 = vmax.f32 %v3713_v40, 0.0 }
 0x2db   : > { %v3673_v35 = vadd.f32 %v3662_v57, %v11125_v12  ;;  %v3674_v63 = vadd.f32 %v3662_v57, %v11126_v43  ;;  %v3675_v32 = vadd.f32 %v3662_v57, %v11127_v0  ;;  %v3726_v57 = vmax.f32 %v3714_v47, 0.0  ;;  %v11140_v43 = vld [vmem:[#allocation64_spill] sm:$0xff]  ;;  %v11141_v0 = vld [vmem:[#allocation65_spill] sm:$0xff] }
 0x2dc   : > { %4718 = vmatprep.subr.bf16.mxu0 %v3643_v16 }
 0x2dd   : > { %v3685_v15 = vmax.f32 %v3673_v35, 0.0  ;;  %v3686_v55 = vmax.f32 %v3674_v63, 0.0  ;;  %v3687_v9 = vmax.f32 %v3675_v32, 0.0 }
 0x2de   : > { %8134 = vmatmul.mubr.msk.bf16.vlgmr.msra.gmra.mrb[152].mxu1 %vm3916_vm4, %v9945_v24 }
 0x2df   : > { %v10215_v27 = vpack.c.bf16 %v3686_v55, %v3683_v50  ;;  %v3616_v36 = vpop.permute.xlu1 %3615  ;;  %v3691_v4 = vpack.c.bf16 %v3685_v15, %v3682_v1  ;;  %v10219_v18 = vpack.c.bf16 %v3687_v9, %v3684_v46  ;;  %4772 = vmatpush1.bf16.msra.mxu1 %v3644_v38  ;;  %8132 = vmatmul.mubr.msk.bf16.vlgmr.msra.gmra.mrb[148].mxu0 %vm3916_vm4, %v9945_v24  ;;  %v11135_v24 = vld [vmem:[#allocation137_spill] sm:$0xff]  ;;  %v3742_v1 = vpop.permute.xlu0 %3741  ;;  %v11142_v46 = vld [vmem:[#allocation139_spill] sm:$0xff] }
 0x2e0   : > { %v3627_v19 = vadd.f32 %v3616_v36, %v11131_v25  ;;  %v3628_v37 = vadd.f32 %v3616_v36, %v11132_v48  ;;  %v3629_v13 = vadd.f32 %v3616_v36, %v11133_v42  ;;  %4719 = vmatpush1.bf16.msra.mxu0 %v3642_v10  ;;  %4707 = vmatprep.mubr.bf16.mxu1 %v11027_v49  ;;  %v11146_v48 = vld [vmem:[#allocation136_spill] sm:$0xff] }
 0x2e1   : > { %4773 = vmatprep.subr.bf16.mxu1 %v3691_v4  ;;  %4654 = vmatprep.mubr.bf16.mxu0 %v11027_v49  ;;  %v3715_v45 = vadd.f32 %v3700_v2, %v11135_v24  ;;  %v11147_v42 = vld [vmem:[#allocation68_spill] sm:$0xff]  ;;  %v3758_v40 = vadd.f32 %v3742_v1, %v11148_v29 }
 0x2e2   : > { %v3639_v7 = vmax.f32 %v3627_v19, 0.0  ;;  %v3640_v33 = vmax.f32 %v3628_v37, 0.0  ;;  %v3641_v53 = vmax.f32 %v3629_v13, 0.0  ;;  %v10252_v19 = vld [vmem:[%s10842_s6] sm:$0xff]   ;;  %v3756_v37 = vadd.f32 %v3742_v1, %v11146_v48 }
 0x2e3   : > { %v3727_v60 = vmax.f32 %v3715_v45, 0.0  ;;  %v3754_v9 = vpop.permute.xlu0 %3753  ;;  %v3757_v13 = vadd.f32 %v3742_v1, %v11147_v42 }
 0x2e4   : > { %v3645_v8 = vpack.c.bf16 %v3639_v7, %v3636_v59  ;;  %v3647_v44 = vpack.c.bf16 %v3641_v53, %v3638_v17  ;;  %v3696_v58 = vpop.permute.xlu1 %3695  ;;  %v3646_v39 = vpack.c.bf16 %v3640_v33, %v3637_v5  ;;  %v11149_v7 = vld [vmem:[#allocation142_spill] sm:$0xff] }
 0x2e5   : > { %v3710_v61 = vadd.f32 %v3696_v58, %v11137_v51  ;;  %v3711_v54 = vadd.f32 %v3696_v58, %v11138_v34  ;;  %v3712_v21 = vadd.f32 %v3696_v58, %v11139_v6  ;;  %v3765_v33 = vadd.f32 %v3754_v9, %v11149_v7  ;;  %v11150_v53 = vld [vmem:[#allocation74_spill] sm:$0xff]  ;;  %v11153_v58 = vld [vmem:[#allocation71_spill] sm:$0xff] }
 0x2e6   : > { %4720 = vmatprep.subr.bf16.mxu0 %v3646_v39  ;;  %4774 = vmatpush1.bf16.msra.mxu1 %v3647_v44  ;;  %v3766_v24 = vadd.f32 %v3754_v9, %v11150_v53  ;;  %v11154_v39 = vld [vmem:[#allocation75_spill] sm:$0xff] }
 0x2e7   : > { %v3722_v62 = vmax.f32 %v3710_v61, 0.0  ;;  %v3723_v10 = vmax.f32 %v3711_v54, 0.0  ;;  %v3724_v38 = vmax.f32 %v3712_v21, 0.0  ;;  %8135 = vmatmul.mubr.msk.bf16.gmra.mrb[156].mxu1 %vm3916_vm4, %v9966_v30  ;;  %4721 = vmatpush1.bf16.msra.mxu0 %v3645_v8  ;;  %v11152_v8 = vld [vmem:[#allocation70_spill] sm:$0xff]  ;;  %v3767_v51 = vadd.f32 %v3754_v9, %v11154_v39  ;;  %v3838_v34 = vpop.permute.xlu0 %3837 }
 0x2e8   : > { %8133 = vmatmul.mubr.msk.bf16.gmra.mrb[152].mxu0 %vm3916_vm4, %v9966_v30  ;;  %4824 = vmatprep.subr.bf16.mxu0 %v10189_v11  ;;  %v3704_v16 = vpop.permute.xlu1 %3703  ;;  %v3769_v61 = vmax.f32 %v3757_v13, 0.0 }
 0x2e9   : > { %v3734_v12 = vpack.c.bf16 %v3725_v22, %v3722_v62  ;;  %v10239_v35 = vpack.c.bf16 %v3727_v60, %v3724_v38  ;;  %4803 = vmatprep.mubr.bf16.mxu1 %v11027_v49  ;;  %v3716_v63 = vadd.f32 %v3704_v16, %v11140_v43  ;;  %v3717_v32 = vadd.f32 %v3704_v16, %v11141_v0 }
 0x2ea   : > { %v3735_v50 = vpack.c.bf16 %v3726_v57, %v3723_v10  ;;  %4750 = vmatprep.mubr.bf16.mxu0 %v11027_v49  ;;  %v3718_v28 = vadd.f32 %v3704_v16, %v11142_v46  ;;  %v3770_v22 = vmax.f32 %v3758_v40, 0.0  ;;  %v3777_v60 = vmax.f32 %v3765_v33, 0.0  ;;  %v10277_v57 = vld [vmem:[%s10842_s6 + $0x8] sm:$0xff]   ;;  %v11155_v16 = vld [vmem:[#allocation140_spill] sm:$0xff] }
 0x2eb   : > { %v3728_v15 = vmax.f32 %v3716_v63, 0.0  ;;  %v3729_v55 = vmax.f32 %v3717_v32, 0.0  ;;  %v3778_v62 = vmax.f32 %v3766_v24, 0.0  ;;  %v11157_v63 = vld [vmem:[#allocation73_spill] sm:$0xff]  ;;  %v3779_v0 = vmax.f32 %v3767_v51, 0.0  ;;  %v11158_v32 = vld [vmem:[#allocation79_spill] sm:$0xff] }
 0x2ec   : > { %4877 = vmatprep.subr.bf16.mxu1 %v3735_v50  ;;  %v3708_v30 = vpop.permute.xlu1 %3707  ;;  %v3730_v2 = vmax.f32 %v3718_v28, 0.0  ;;  %v3851_v50 = vadd.f32 %v3838_v34, %v11158_v32 }
 0x2ed   : > { %v3719_v11 = vadd.f32 %v3708_v30, %v11143_v41  ;;  %v3720_v3 = vadd.f32 %v3708_v30, %v11144_v56  ;;  %v3721_v52 = vadd.f32 %v3708_v30, %v11145_v14  ;;  %v11159_v30 = vld [vmem:[#allocation153_spill] sm:$0xff]  ;;  %v11160_v14 = vld [vmem:[#allocation154_spill] sm:$0xff] }
 0x2ee   : > { %v3852_v41 = vadd.f32 %v3838_v34, %v11159_v30  ;;  %v3863_v13 = vmax.f32 %v3851_v50, 0.0 }
 0x2ef   : > { %v3731_v36 = vmax.f32 %v3719_v11, 0.0  ;;  %v3732_v4 = vmax.f32 %v3720_v3, 0.0  ;;  %v3733_v25 = vmax.f32 %v3721_v52, 0.0  ;;  %8138 = vmatmul.mubr.msk.bf16.vlgmr.msra.gmra.mrb[160].mxu1 %vm3916_vm4, %v10252_v19  ;;  %v3853_v52 = vadd.f32 %v3838_v34, %v11160_v14  ;;  %v11168_v34 = vld [vmem:[#allocation146_spill] sm:$0xff] }
 0x2f0   : > { %4878 = vmatpush1.bf16.msra.mxu1 %v3734_v12  ;;  %8136 = vmatmul.mubr.msk.bf16.vlgmr.msra.gmra.mrb[156].mxu0 %vm3916_vm4, %v10252_v19  ;;  %v11156_v12 = vld [vmem:[#allocation72_spill] sm:$0xff] }
 0x2f1   : > { %v3737_v59 = vpack.c.bf16 %v3731_v36, %v3728_v15  ;;  %v10260_v5 = vpack.c.bf16 %v3733_v25, %v3730_v2  ;;  %4825 = vmatpush1.bf16.msra.mxu0 %v10186_v26  ;;  %v3738_v17 = vpack.c.bf16 %v3732_v4, %v3729_v55  ;;  %4813 = vmatprep.mubr.bf16.mxu1 %v11027_v49  ;;  %v3746_v45 = vpop.permute.xlu1 %3745  ;;  %v11161_v36 = vld [vmem:[#allocation77_spill] sm:$0xff]  ;;  %v11162_v25 = vld [vmem:[#allocation151_spill] sm:$0xff] }
 0x2f2   : > { %4826 = vmatprep.subr.bf16.mxu0 %v10219_v18  ;;  %4760 = vmatprep.mubr.bf16.mxu0 %v11027_v49  ;;  %v3759_v47 = vadd.f32 %v3746_v45, %v11151_v31  ;;  %v3760_v44 = vadd.f32 %v3746_v45, %v11152_v8  ;;  %v3761_v26 = vadd.f32 %v3746_v45, %v11153_v58  ;;  %v3768_v18 = vmax.f32 %v3756_v37, 0.0  ;;  %v11163_v37 = vld [vmem:[#allocation152_spill] sm:$0xff]  ;;  %v11164_v31 = vld [vmem:[#allocation143_spill] sm:$0xff]  ;;  %v3842_v58 = vpop.permute.xlu0 %3841 }
 0x2f3   : > { %4879 = vmatprep.subr.bf16.mxu1 %v3738_v17  ;;  %v3865_v17 = vmax.f32 %v3853_v52, 0.0  ;;  %v11165_v8 = vld [vmem:[#allocation144_spill] sm:$0xff] }
 0x2f4   : > { %4880 = vmatpush1.bf16.msra.mxu1 %v3737_v59  ;;  %v3771_v54 = vmax.f32 %v3759_v47, 0.0  ;;  %v3772_v6 = vmax.f32 %v3760_v44, 0.0  ;;  %v3773_v21 = vmax.f32 %v3761_v26, 0.0  ;;  %v3864_v59 = vmax.f32 %v3852_v41, 0.0  ;;  %v11166_v26 = vld [vmem:[#allocation76_spill] sm:$0xff] }
 0x2f5   : > { %4827 = vmatpush1.bf16.msra.mxu0 %v10215_v27  ;;  %v3750_v10 = vpop.permute.xlu1 %3749 }
 0x2f6   : > { %v3781_v38 = vpack.c.bf16 %v3772_v6, %v3769_v61  ;;  %v3762_v1 = vadd.f32 %v3750_v10, %v11155_v16  ;;  %v3763_v43 = vadd.f32 %v3750_v10, %v11156_v12  ;;  %v3764_v27 = vadd.f32 %v3750_v10, %v11157_v63  ;;  %v11167_v61 = vld [vmem:[#allocation145_spill] sm:$0xff]  ;;  %v11169_v6 = vld [vmem:[#allocation78_spill] sm:$0xff] }
 0x2f7   : > { %8139 = vmatmul.mubr.msk.bf16.gmra.mrb[164].mxu1 %vm3916_vm4, %v10277_v57  ;;  %v3780_v46 = vpack.c.bf16 %v3771_v54, %v3768_v18  ;;  %v3782_v28 = vpack.c.bf16 %v3773_v21, %v3770_v22  ;;  %v11170_v18 = vld [vmem:[#allocation81_spill] sm:$0xff] }
 0x2f8   : > { %8137 = vmatmul.mubr.msk.bf16.gmra.mrb[160].mxu0 %vm3916_vm4, %v10277_v57  ;;  %4909 = vmatprep.mubr.bf16.mxu1 %v11027_v49  ;;  %v3774_v11 = vmax.f32 %v3762_v1, 0.0  ;;  %v3775_v56 = vmax.f32 %v3763_v43, 0.0  ;;  %v3776_v3 = vmax.f32 %v3764_v27, 0.0  ;;  %v3854_v22 = vadd.f32 %v3842_v58, %v11170_v18 }
 0x2f9   : > { %4856 = vmatprep.mubr.bf16.mxu0 %v11027_v49  ;;  %4930 = vmatprep.subr.bf16.mxu0 %v3780_v46  ;;  %v3796_v46 = vpop.permute.xlu0 %3795 }
 0x2fa   : > { %4983 = vmatprep.subr.bf16.mxu1 %v3782_v28  ;;  %v3784_v15 = vpack.c.bf16 %v3778_v62, %v3775_v56  ;;  %v3834_v55 = vpop.permute.xlu1 %3833  ;;  %v3785_v9 = vpack.c.bf16 %v3779_v0, %v3776_v3  ;;  %v3783_v2 = vpack.c.bf16 %v3777_v60, %v3774_v11  ;;  %v11171_v60 = vld [vmem:[#allocation155_spill] sm:$0xff]  ;;  %v3866_v56 = vmax.f32 %v3854_v22, 0.0 }
 0x2fb   : > { %v3848_v4 = vadd.f32 %v3834_v55, %v11161_v36  ;;  %v3849_v48 = vadd.f32 %v3834_v55, %v11162_v25  ;;  %v3850_v42 = vadd.f32 %v3834_v55, %v11163_v37  ;;  %v3855_v62 = vadd.f32 %v3842_v58, %v11171_v60  ;;  %v11173_v28 = vld [vmem:[#allocation83_spill] sm:$0xff]  ;;  %v11175_v36 = vld [vmem:[#allocation148_spill] sm:$0xff] }
 0x2fc   : > { %v11176_v25 = vld [vmem:[#allocation80_spill] sm:$0xff] }
 0x2fd   : > { %v3860_v29 = vmax.f32 %v3848_v4, 0.0  ;;  %v3861_v40 = vmax.f32 %v3849_v48, 0.0  ;;  %v3862_v7 = vmax.f32 %v3850_v42, 0.0  ;;  %v3867_v3 = vmax.f32 %v3855_v62, 0.0 }
 0x2fe   : > { %v3809_v4 = vadd.f32 %v3796_v46, %v11175_v36  ;;  %v3810_v48 = vadd.f32 %v3796_v46, %v11176_v25 }
 0x2ff   : > { %8142 = vmatmul.mubr.msk.bf16.vlgmr.msra.gmra.mrb[168].mxu1 %vm3916_vm4, %v10252_v19  ;;  %v10296_v33 = vpack.c.bf16 %v3864_v59, %v3861_v40  ;;  %v3788_v53 = vpop.permute.xlu1 %3787  ;;  %v3872_v24 = vpack.c.bf16 %v3863_v13, %v3860_v29  ;;  %v10300_v45 = vpack.c.bf16 %v3865_v17, %v3862_v7  ;;  %v11178_v17 = vld [vmem:[#allocation150_spill] sm:$0xff] }
 0x300   : > { %4984 = vmatpush1.bf16.msra.mxu1 %v3781_v38  ;;  %8140 = vmatmul.mubr.msk.bf16.vlgmr.msra.gmra.mrb[164].mxu0 %vm3916_vm4, %v10252_v19  ;;  %v3802_v47 = vadd.f32 %v3788_v53, %v11164_v31  ;;  %v3803_v44 = vadd.f32 %v3788_v53, %v11165_v8  ;;  %v3804_v39 = vadd.f32 %v3788_v53, %v11166_v26  ;;  %v11179_v40 = vld [vmem:[#allocation82_spill] sm:$0xff]  ;;  %v3822_v31 = vmax.f32 %v3810_v48, 0.0 }
 0x301   : > { %4931 = vmatpush1.bf16.msra.mxu0 %v10239_v35  ;;  %4985 = vmatprep.subr.bf16.mxu1 %v3785_v9  ;;  %v11174_v9 = vld [vmem:[#allocation147_spill] sm:$0xff] }
 0x302   : > { %4932 = vmatprep.subr.bf16.mxu0 %v3783_v2  ;;  %4919 = vmatprep.mubr.bf16.mxu1 %v11027_v49  ;;  %v3814_v10 = vmax.f32 %v3802_v47, 0.0  ;;  %v3815_v38 = vmax.f32 %v3803_v44, 0.0  ;;  %v3816_v16 = vmax.f32 %v3804_v39, 0.0  ;;  %v3808_v2 = vadd.f32 %v3796_v46, %v11174_v9 }
 0x303   : > { %4866 = vmatprep.mubr.bf16.mxu0 %v11027_v49  ;;  %v3792_v51 = vpop.permute.xlu1 %3791 }
 0x304   : > { %4986 = vmatpush1.bf16.msra.mxu1 %v3784_v15  ;;  %v3805_v35 = vadd.f32 %v3792_v51, %v11167_v61  ;;  %v3806_v54 = vadd.f32 %v3792_v51, %v11168_v34  ;;  %v3807_v21 = vadd.f32 %v3792_v51, %v11169_v6  ;;  %v3820_v53 = vmax.f32 %v3808_v2, 0.0  ;;  %v10364_v61 = vpop.permute.xlu0 %3893 }
 0x305   : > { %4933 = vmatpush1.bf16.msra.mxu0 %v10260_v5  ;;  %5089 = vmatprep.subr.bf16.mxu1 %v3872_v24  ;;  %v11172_v5 = vld [vmem:[#allocation156_spill] sm:$0xff]  ;;  %v3821_v24 = vmax.f32 %v3809_v4, 0.0 }
 0x306   : > { %v3817_v1 = vmax.f32 %v3805_v35, 0.0  ;;  %v3818_v12 = vmax.f32 %v3806_v54, 0.0  ;;  %v3819_v43 = vmax.f32 %v3807_v21, 0.0  ;;  %v3856_v63 = vadd.f32 %v3842_v58, %v11172_v5 }
 0x307   : > { %8143 = vmatmul.mubr.msk.bf16.gmra.mrb[172].mxu1 %vm3916_vm4, %v10277_v57 }
 0x308   : > { %8141 = vmatmul.mubr.msk.bf16.gmra.mrb[168].mxu0 %vm3916_vm4, %v10277_v57  ;;  %5015 = vmatprep.mubr.bf16.mxu1 %v11027_v49  ;;  %v3826_v27 = vpack.c.bf16 %v3817_v1, %v3814_v10  ;;  %v3828_v0 = vpack.c.bf16 %v3819_v43, %v3816_v16  ;;  %v3846_v32 = vpop.permute.xlu1 %3845  ;;  %v3827_v50 = vpack.c.bf16 %v3818_v12, %v3815_v38  ;;  %v3868_v14 = vmax.f32 %v3856_v63, 0.0 }
 0x309   : > { %4962 = vmatprep.mubr.bf16.mxu0 %v11027_v49  ;;  %v3857_v30 = vadd.f32 %v3846_v32, %v11173_v28  ;;  %v3858_v41 = vadd.f32 %v3846_v32, %v10017_v23  ;;  %v3859_v11 = vadd.f32 %v3846_v32, %v10023_v20  ;;  %v11177_v20 = vld [vmem:[#allocation149_spill] sm:$0xff] }
 0x30a   : > { %5036 = vmatprep.subr.bf16.mxu0 %v3827_v50 }
 0x30b   : > { %v3869_v52 = vmax.f32 %v3857_v30, 0.0  ;;  %v3870_v15 = vmax.f32 %v3858_v41, 0.0  ;;  %v3871_v55 = vmax.f32 %v3859_v11, 0.0 }
 0x30d   : > { %v3876_v37 = vpack.c.bf16 %v3870_v15, %v3867_v3  ;;  %v3875_v42 = vpack.c.bf16 %v3869_v52, %v3866_v56  ;;  %v3877_v13 = vpack.c.bf16 %v3871_v55, %v3868_v14  ;;  %v3800_v23 = vpop.permute.xlu1 %3799 }
 0x30e   : > { %v3811_v59 = vadd.f32 %v3800_v23, %v11177_v20  ;;  %v3812_v29 = vadd.f32 %v3800_v23, %v11178_v17  ;;  %v3813_v7 = vadd.f32 %v3800_v23, %v11179_v40 }
 0x30f   : > { %8146 = vmatmul.mubr.msk.bf16.vlgmr.msra.gmra.mrb[176].mxu1 %vm3916_vm4, %v10252_v19 }
 0x310   : > { %5090 = vmatpush1.bf16.msra.mxu1 %v3828_v0  ;;  %8144 = vmatmul.mubr.msk.bf16.vlgmr.msra.gmra.mrb[172].mxu0 %vm3916_vm4, %v10252_v19  ;;  %v3823_v47 = vmax.f32 %v3811_v59, 0.0  ;;  %v3824_v8 = vmax.f32 %v3812_v29, 0.0  ;;  %v3825_v44 = vmax.f32 %v3813_v7, 0.0 }
 0x311   : > { %5037 = vmatpush1.bf16.msra.mxu0 %v3826_v27  ;;  %5091 = vmatprep.subr.bf16.mxu1 %v3875_v42 }
 0x312   : > { %5025 = vmatprep.mubr.bf16.mxu1 %v11027_v49  ;;  %4972 = vmatprep.mubr.bf16.mxu0 %v11027_v49  ;;  %v3829_v58 = vpack.c.bf16 %v3823_v47, %v3820_v53  ;;  %v3831_v26 = vpack.c.bf16 %v3825_v44, %v3822_v31  ;;  %v3830_v39 = vpack.c.bf16 %v3824_v8, %v3821_v24  ;;  %v10390_v47 = vld [vmem:[%s10844_s8] sm:$0x1] }
 0x314   : > { %5038 = vmatprep.subr.bf16.mxu0 %v3830_v39  ;;  %5092 = vmatpush1.bf16.msra.mxu1 %v3831_v26 }
 0x315   : > { %5039 = vmatpush1.bf16.msra.mxu0 %v3829_v58 }
 0x316   : > { %5142 = vmatprep.subr.bf16.mxu0 %v10300_v45  ;;  %v11180_v45 = vmov 0.0  }
 0x317   : > { %8147 = vmatmul.mubr.msk.bf16.gmra.mrb[180].mxu1 %vm3916_vm4, %v10277_v57 }
 0x318   : > { %8145 = vmatmul.mubr.msk.bf16.gmra.mrb[176].mxu0 %vm3916_vm4, %v10277_v57  ;;  %5121 = vmatprep.mubr.bf16.mxu1 %v11027_v49 }
 0x319   : > { %5068 = vmatprep.mubr.bf16.mxu0 %v11027_v49 }
 0x31f   : > { %8150 = vmatmul.mubr.msk.bf16.vlgmr.msra.gmra.mrb[184].mxu1 %vm3916_vm4, %v10252_v19 }
 0x320   : > { %8148 = vmatmul.mubr.msk.bf16.vlgmr.msra.gmra.mrb[180].mxu0 %vm3916_vm4, %v10252_v19  ;;  %5131 = vmatprep.mubr.bf16.mxu1 %v11027_v49 }
 0x321   : > { %5143 = vmatpush1.bf16.msra.mxu0 %v10296_v33  ;;  %5078 = vmatprep.mubr.bf16.mxu0 %v11027_v49  ;;  %v10362_v33 = vpop.permute.xlu1 %3888 }
 0x322   : > { %5144 = vmatprep.subr.bf16.mxu0 %v3877_v13 }
 0x325   : > { %5145 = vmatpush1.bf16.msra.mxu0 %v3876_v37  ;;  %v10368_v21 = vpop.permute.xlu1 %3898 }
 0x327   : > { %8151 = vmatmul.mubr.msk.bf16.gmra.mrb[188].mxu1 %vm3916_vm4, %v10277_v57 }
 0x328   : > { %8149 = vmatmul.mubr.msk.bf16.gmra.mrb[184].mxu0 %vm3916_vm4, %v10277_v57  ;;  %5465 = vmatprep.mubr.f32.mxu1 %v11180_v45 }
 0x329   : > { %5174 = vmatprep.mubr.bf16.mxu0 %v11027_v49  ;;  %v10372_v1 = vpop.permute.xlu1 %3903 }
 0x330   : > { %8152 = vmatmul.mubr.msk.bf16.vlgmr.msra.gmra.mrb[188].mxu0 %vm3916_vm4, %v10252_v19 }
 0x331   : > { %5184 = vmatprep.mubr.bf16.mxu0 %v11027_v49 }
 0x338   : > { %8153 = vmatmul.mubr.msk.bf16.gmra.mrb[192].mxu0 %vm3916_vm4, %v10277_v57 }
 0x339   : > { %5536 = vmatprep.mubr.f32.mxu0 %v11180_v45 }
 0x341   : > { %v3957_v51 = vpop.f32.mrb[96].mxu1 }
 0x342   : > { %v3958_v35 = vadd.f32 %v3957_v51, %v10362_v33  ;;  %v3959_v34 = vpop.f32.mrb[97].mxu1 }
 0x343   : > { %v3960_v54 = vadd.f32 %v3959_v34, %v10362_v33  ;;  %v3961_v6 = vpop.f32.mrb[98].mxu1 }
 0x344   : > { %v3963_v19 = vpop.f32.mrb[99].mxu1  ;;  %v3962_v49 = vadd.f32 %v3961_v6, %v10364_v61  ;;  %v5195_v18 = vmax.f32 %v3958_v35, 0.0 }
 0x345   : > { %v3964_v57 = vadd.f32 %v3963_v19, %v10364_v61  ;;  %v5196_v60 = vmax.f32 %v3960_v54, 0.0 }
 0x346   : > { %v5243_v22 = vmax.f32 %v3962_v49, 0.0 }
 0x347   : > { %v5244_v62 = vmax.f32 %v3964_v57, 0.0 }
 0x348   : > { %v8246_v10 = vpack.c.bf16 %v5243_v22, %v5195_v18 }
 0x349   : > { %v8244_v38 = vpack.c.bf16 %v5244_v62, %v5196_v60  ;;  %v3967_v16 = vpop.f32.mrb[100].mxu1 }
 0x34a   : > { %v3968_v12 = vadd.f32 %v3967_v16, %v10368_v21  ;;  %v3969_v43 = vpop.f32.mrb[101].mxu1  ;;  %v4010_v5 = vpop.f32.mrb[100].mxu0 }
 0x34b   : > { %v3970_v63 = vadd.f32 %v3969_v43, %v10368_v21  ;;  %v3971_v27 = vpop.f32.mrb[102].mxu1  ;;  %v4011_v0 = vadd.f32 %v4010_v5, %v10362_v33  ;;  %v4012_v32 = vpop.f32.mrb[101].mxu0  ;;  %8245 = vmatprep.subr.bf16.mxu1 %v8244_v38 }
 0x34c   : > { %v3973_v50 = vpop.f32.mrb[103].mxu1  ;;  %v4013_v46 = vadd.f32 %v4012_v32, %v10362_v33  ;;  %v4014_v28 = vpop.f32.mrb[102].mxu0  ;;  %8247 = vmatpush1.bf16.msra.mxu1 %v8246_v10  ;;  %v3972_v30 = vadd.f32 %v3971_v27, %v10372_v1  ;;  %v5291_v14 = vmax.f32 %v3968_v12, 0.0 }
 0x34d   : > { %v5197_v41 = vmax.f32 %v4011_v0, 0.0  ;;  %v4015_v11 = vadd.f32 %v4014_v28, %v10364_v61  ;;  %v4016_v56 = vpop.f32.mrb[103].mxu0  ;;  %v3974_v3 = vadd.f32 %v3973_v50, %v10372_v1  ;;  %v5292_v9 = vmax.f32 %v3970_v63, 0.0 }
 0x34e   : > { %v5198_v52 = vmax.f32 %v4013_v46, 0.0  ;;  %v4017_v15 = vadd.f32 %v4016_v56, %v10364_v61  ;;  %v5339_v55 = vmax.f32 %v3972_v30, 0.0 }
 0x34f   : > { %v5245_v2 = vmax.f32 %v4015_v11, 0.0  ;;  %v5340_v36 = vmax.f32 %v3974_v3, 0.0 }
 0x350   : > { %v5246_v4 = vmax.f32 %v4017_v15, 0.0  ;;  %v8250_v25 = vpack.c.bf16 %v5339_v55, %v5291_v14 }
 0x351   : > { %v8254_v48 = vpack.c.bf16 %v5245_v2, %v5197_v41  ;;  %v8248_v37 = vpack.c.bf16 %v5340_v36, %v5292_v9  ;;  %v4063_v42 = vpop.f32.mrb[104].mxu1 }
 0x352   : > { %v8252_v13 = vpack.c.bf16 %v5246_v4, %v5198_v52  ;;  %v4020_v23 = vpop.f32.mrb[104].mxu0  ;;  %v4064_v20 = vadd.f32 %v4063_v42, %v10362_v33  ;;  %v4065_v59 = vpop.f32.mrb[105].mxu1 }
 0x353   : > { %v4021_v17 = vadd.f32 %v4020_v23, %v10368_v21  ;;  %v4022_v29 = vpop.f32.mrb[105].mxu0  ;;  %8249 = vmatprep.subr.bf16.mxu1 %v8248_v37  ;;  %v4066_v40 = vadd.f32 %v4065_v59, %v10362_v33  ;;  %v4067_v7 = vpop.f32.mrb[106].mxu1 }
 0x354   : > { %v4023_v53 = vadd.f32 %v4022_v29, %v10368_v21  ;;  %v4024_v24 = vpop.f32.mrb[106].mxu0  ;;  %8251 = vmatpush1.bf16.msra.mxu1 %v8250_v25  ;;  %v4068_v31 = vadd.f32 %v4067_v7, %v10364_v61  ;;  %v4069_v8 = vpop.f32.mrb[107].mxu1  ;;  %8253 = vmatprep.subr.bf16.mxu0 %v8252_v13  ;;  %v5199_v34 = vmax.f32 %v4064_v20, 0.0 }
 0x355   : > { %v5293_v44 = vmax.f32 %v4021_v17, 0.0  ;;  %v4025_v58 = vadd.f32 %v4024_v24, %v10372_v1  ;;  %v4026_v26 = vpop.f32.mrb[107].mxu0  ;;  %v4070_v39 = vadd.f32 %v4069_v8, %v10364_v61  ;;  %8255 = vmatpush1.bf16.msra.mxu0 %v8254_v48  ;;  %v5200_v19 = vmax.f32 %v4066_v40, 0.0 }
 0x356   : > { %v5294_v51 = vmax.f32 %v4023_v53, 0.0  ;;  %v4027_v35 = vadd.f32 %v4026_v26, %v10372_v1  ;;  %v5247_v54 = vmax.f32 %v4068_v31, 0.0 }
 0x357   : > { %v5341_v6 = vmax.f32 %v4025_v58, 0.0  ;;  %8154 = vmatmul.mubr.msk.f32.vlgmr.msra.gmra.mrb[192].mxu1 %vm3916_vm4, %v10390_v47  ;;  %v5248_v49 = vmax.f32 %v4070_v39, 0.0 }
 0x358   : > { %v5342_v57 = vmax.f32 %v4027_v35, 0.0  ;;  %v8262_v18 = vpack.c.bf16 %v5247_v54, %v5199_v34  ;;  %5607 = vmatprep.mubr.f32.mxu1 %v11180_v45 }
 0x359   : > { %v8258_v22 = vpack.c.bf16 %v5341_v6, %v5293_v44  ;;  %v8260_v60 = vpack.c.bf16 %v5248_v49, %v5200_v19  ;;  %v4073_v62 = vpop.f32.mrb[108].mxu1 }
 0x35a   : > { %v8256_v10 = vpack.c.bf16 %v5342_v57, %v5294_v51  ;;  %v4074_v38 = vadd.f32 %v4073_v62, %v10368_v21  ;;  %v4075_v16 = vpop.f32.mrb[109].mxu1 }
 0x35b   : > { %v4076_v12 = vadd.f32 %v4075_v16, %v10368_v21  ;;  %v4077_v43 = vpop.f32.mrb[110].mxu1  ;;  %8261 = vmatprep.subr.bf16.mxu1 %v8260_v60 }
 0x35c   : > { %v4078_v5 = vadd.f32 %v4077_v43, %v10372_v1  ;;  %v4079_v63 = vpop.f32.mrb[111].mxu1  ;;  %8257 = vmatprep.subr.bf16.mxu0 %v8256_v10  ;;  %8263 = vmatpush1.bf16.msra.mxu1 %v8262_v18  ;;  %v5295_v0 = vmax.f32 %v4074_v38, 0.0 }
 0x35d   : > { %v4080_v27 = vadd.f32 %v4079_v63, %v10372_v1  ;;  %8259 = vmatpush1.bf16.msra.mxu0 %v8258_v22  ;;  %v5296_v50 = vmax.f32 %v4076_v12, 0.0 }
 0x35e   : > { %v5343_v32 = vmax.f32 %v4078_v5, 0.0 }
 0x35f   : > { %v5344_v46 = vmax.f32 %v4080_v27, 0.0 }
 0x360   : > { %v8266_v28 = vpack.c.bf16 %v5343_v32, %v5295_v0  ;;  %8155 = vmatmul.mubr.msk.f32.vlgmr.msra.gmra.mrb[196].mxu0 %vm3916_vm4, %v10390_v47 }
 0x361   : > { %v8264_v30 = vpack.c.bf16 %v5344_v46, %v5296_v50  ;;  %v4169_v41 = vpop.f32.mrb[112].mxu1  ;;  %5678 = vmatprep.mubr.f32.mxu0 %v11180_v45 }
 0x362   : > { %v4170_v11 = vadd.f32 %v4169_v41, %v10362_v33  ;;  %v4116_v56 = vpop.f32.mrb[108].mxu0  ;;  %v4171_v3 = vpop.f32.mrb[113].mxu1 }
 0x363   : > { %8265 = vmatprep.subr.bf16.mxu1 %v8264_v30  ;;  %v4117_v14 = vadd.f32 %v4116_v56, %v10362_v33  ;;  %v4172_v52 = vadd.f32 %v4171_v3, %v10362_v33  ;;  %v4118_v15 = vpop.f32.mrb[109].mxu0  ;;  %v4173_v55 = vpop.f32.mrb[114].mxu1 }
 0x364   : > { %8267 = vmatpush1.bf16.msra.mxu1 %v8266_v28  ;;  %v4119_v9 = vadd.f32 %v4118_v15, %v10362_v33  ;;  %v4174_v2 = vadd.f32 %v4173_v55, %v10364_v61  ;;  %v4120_v36 = vpop.f32.mrb[110].mxu0  ;;  %v4175_v4 = vpop.f32.mrb[115].mxu1  ;;  %v5203_v13 = vmax.f32 %v4170_v11, 0.0 }
 0x365   : > { %v5201_v25 = vmax.f32 %v4117_v14, 0.0  ;;  %v4121_v48 = vadd.f32 %v4120_v36, %v10364_v61  ;;  %v4176_v37 = vadd.f32 %v4175_v4, %v10364_v61  ;;  %v4122_v42 = vpop.f32.mrb[111].mxu0  ;;  %v5204_v17 = vmax.f32 %v4172_v52, 0.0 }
 0x366   : > { %v5202_v23 = vmax.f32 %v4119_v9, 0.0  ;;  %v5251_v20 = vmax.f32 %v4174_v2, 0.0  ;;  %v4123_v59 = vadd.f32 %v4122_v42, %v10364_v61 }
 0x367   : > { %8156 = vmatmul.mubr.msk.f32.vlgmr.msra.gmra.mrb[194].mxu1 %vm3916_vm4, %v10390_v47  ;;  %v5249_v29 = vmax.f32 %v4121_v48, 0.0  ;;  %v5252_v40 = vmax.f32 %v4176_v37, 0.0 }
 0x368   : > { %v8278_v7 = vpack.c.bf16 %v5251_v20, %v5203_v13  ;;  %v5250_v53 = vmax.f32 %v4123_v59, 0.0  ;;  %5749 = vmatprep.mubr.f32.mxu1 %v11180_v45 }
 0x369   : > { %v8270_v24 = vpack.c.bf16 %v5249_v29, %v5201_v25  ;;  %v8276_v31 = vpack.c.bf16 %v5252_v40, %v5204_v17  ;;  %v4179_v8 = vpop.f32.mrb[116].mxu1 }
 0x36a   : > { %v8268_v44 = vpack.c.bf16 %v5250_v53, %v5202_v23  ;;  %v4180_v58 = vadd.f32 %v4179_v8, %v10368_v21  ;;  %v4126_v26 = vpop.f32.mrb[112].mxu0  ;;  %v4181_v39 = vpop.f32.mrb[117].mxu1 }
 0x36b   : > { %v4127_v51 = vadd.f32 %v4126_v26, %v10368_v21  ;;  %v4182_v35 = vadd.f32 %v4181_v39, %v10368_v21  ;;  %v4128_v34 = vpop.f32.mrb[113].mxu0  ;;  %v4183_v54 = vpop.f32.mrb[118].mxu1  ;;  %8277 = vmatprep.subr.bf16.mxu1 %v8276_v31 }
 0x36c   : > { %v4129_v6 = vadd.f32 %v4128_v34, %v10368_v21  ;;  %v4184_v19 = vadd.f32 %v4183_v54, %v10372_v1  ;;  %v4130_v49 = vpop.f32.mrb[114].mxu0  ;;  %v4185_v57 = vpop.f32.mrb[119].mxu1  ;;  %8269 = vmatprep.subr.bf16.mxu0 %v8268_v44  ;;  %8279 = vmatpush1.bf16.msra.mxu1 %v8278_v7  ;;  %v5299_v10 = vmax.f32 %v4180_v58, 0.0 }
 0x36d   : > { %v5297_v18 = vmax.f32 %v4127_v51, 0.0  ;;  %v4131_v22 = vadd.f32 %v4130_v49, %v10372_v1  ;;  %v4186_v60 = vadd.f32 %v4185_v57, %v10372_v1  ;;  %v4132_v62 = vpop.f32.mrb[115].mxu0  ;;  %8271 = vmatpush1.bf16.msra.mxu0 %v8270_v24  ;;  %v5300_v43 = vmax.f32 %v4182_v35, 0.0 }
 0x36e   : > { %v5298_v38 = vmax.f32 %v4129_v6, 0.0  ;;  %v5347_v16 = vmax.f32 %v4184_v19, 0.0  ;;  %v4133_v12 = vadd.f32 %v4132_v62, %v10372_v1 }
 0x36f   : > { %v5345_v5 = vmax.f32 %v4131_v22, 0.0  ;;  %v5348_v63 = vmax.f32 %v4186_v60, 0.0 }
 0x370   : > { %v8282_v27 = vpack.c.bf16 %v5347_v16, %v5299_v10  ;;  %v5346_v0 = vmax.f32 %v4133_v12, 0.0 }
 0x371   : > { %v8274_v32 = vpack.c.bf16 %v5345_v5, %v5297_v18  ;;  %v8280_v50 = vpack.c.bf16 %v5348_v63, %v5300_v43  ;;  %v4275_v46 = vpop.f32.mrb[120].mxu1 }
 0x372   : > { %v8272_v28 = vpack.c.bf16 %v5346_v0, %v5298_v38  ;;  %v4276_v30 = vadd.f32 %v4275_v46, %v10362_v33  ;;  %v4222_v41 = vpop.f32.mrb[116].mxu0  ;;  %v4277_v11 = vpop.f32.mrb[121].mxu1 }
 0x373   : > { %8281 = vmatprep.subr.bf16.mxu1 %v8280_v50  ;;  %v4223_v56 = vadd.f32 %v4222_v41, %v10362_v33  ;;  %v4278_v3 = vadd.f32 %v4277_v11, %v10362_v33  ;;  %v4224_v14 = vpop.f32.mrb[117].mxu0  ;;  %v4279_v52 = vpop.f32.mrb[122].mxu1 }
 0x374   : > { %8273 = vmatprep.subr.bf16.mxu0 %v8272_v28  ;;  %8283 = vmatpush1.bf16.msra.mxu1 %v8282_v27  ;;  %v4225_v15 = vadd.f32 %v4224_v14, %v10362_v33  ;;  %v4280_v55 = vadd.f32 %v4279_v52, %v10364_v61  ;;  %v4226_v9 = vpop.f32.mrb[118].mxu0  ;;  %v4281_v2 = vpop.f32.mrb[123].mxu1  ;;  %v5207_v37 = vmax.f32 %v4276_v30, 0.0 }
 0x375   : > { %8275 = vmatpush1.bf16.msra.mxu0 %v8274_v32  ;;  %v5205_v36 = vmax.f32 %v4223_v56, 0.0  ;;  %v4227_v4 = vadd.f32 %v4226_v9, %v10364_v61  ;;  %v4282_v25 = vadd.f32 %v4281_v2, %v10364_v61  ;;  %v4228_v48 = vpop.f32.mrb[119].mxu0  ;;  %v5208_v20 = vmax.f32 %v4278_v3, 0.0 }
 0x376   : > { %v5206_v42 = vmax.f32 %v4225_v15, 0.0  ;;  %v5255_v13 = vmax.f32 %v4280_v55, 0.0  ;;  %v4229_v23 = vadd.f32 %v4228_v48, %v10364_v61 }
 0x377   : > { %8158 = vmatmul.mubr.msk.f32.vlgmr.msra.gmra.mrb[196].mxu1 %vm3916_vm4, %v10390_v47  ;;  %v5253_v59 = vmax.f32 %v4227_v4, 0.0  ;;  %v5256_v17 = vmax.f32 %v4282_v25, 0.0 }
 0x378   : > { %v8294_v29 = vpack.c.bf16 %v5255_v13, %v5207_v37  ;;  %8157 = vmatmul.mubr.msk.f32.vlgmr.msra.gmra.mrb[198].mxu0 %vm3916_vm4, %v10390_v47  ;;  %v5254_v40 = vmax.f32 %v4229_v23, 0.0  ;;  %5891 = vmatprep.mubr.f32.mxu1 %v11180_v45 }
 0x379   : > { %v8286_v7 = vpack.c.bf16 %v5253_v59, %v5205_v36  ;;  %v8292_v53 = vpack.c.bf16 %v5256_v17, %v5208_v20  ;;  %v4285_v24 = vpop.f32.mrb[124].mxu1  ;;  %5820 = vmatprep.mubr.f32.mxu0 %v11180_v45 }
 0x37a   : > { %v8284_v31 = vpack.c.bf16 %v5254_v40, %v5206_v42  ;;  %v4286_v8 = vadd.f32 %v4285_v24, %v10368_v21  ;;  %v4232_v44 = vpop.f32.mrb[120].mxu0  ;;  %v4287_v58 = vpop.f32.mrb[125].mxu1 }
 0x37b   : > { %v4233_v26 = vadd.f32 %v4232_v44, %v10368_v21  ;;  %v4288_v39 = vadd.f32 %v4287_v58, %v10368_v21  ;;  %v4234_v51 = vpop.f32.mrb[121].mxu0  ;;  %v4289_v35 = vpop.f32.mrb[126].mxu1  ;;  %8293 = vmatprep.subr.bf16.mxu1 %v8292_v53 }
 0x37c   : > { %v4235_v34 = vadd.f32 %v4234_v51, %v10368_v21  ;;  %v4290_v54 = vadd.f32 %v4289_v35, %v10372_v1  ;;  %v4236_v6 = vpop.f32.mrb[122].mxu0  ;;  %v4291_v19 = vpop.f32.mrb[127].mxu1  ;;  %8285 = vmatprep.subr.bf16.mxu0 %v8284_v31  ;;  %8295 = vmatpush1.bf16.msra.mxu1 %v8294_v29  ;;  %v5303_v60 = vmax.f32 %v4286_v8, 0.0 }
 0x37d   : > { %v5301_v49 = vmax.f32 %v4233_v26, 0.0  ;;  %v4237_v57 = vadd.f32 %v4236_v6, %v10372_v1  ;;  %v4292_v18 = vadd.f32 %v4291_v19, %v10372_v1  ;;  %v4238_v22 = vpop.f32.mrb[123].mxu0  ;;  %8287 = vmatpush1.bf16.msra.mxu0 %v8286_v7  ;;  %v5304_v16 = vmax.f32 %v4288_v39, 0.0 }
 0x37e   : > { %v5302_v62 = vmax.f32 %v4235_v34, 0.0  ;;  %v5351_v10 = vmax.f32 %v4290_v54, 0.0  ;;  %v4239_v38 = vadd.f32 %v4238_v22, %v10372_v1 }
 0x37f   : > { %v5349_v12 = vmax.f32 %v4237_v57, 0.0  ;;  %v5352_v43 = vmax.f32 %v4292_v18, 0.0 }
 0x380   : > { %v8298_v5 = vpack.c.bf16 %v5351_v10, %v5303_v60  ;;  %v5350_v63 = vmax.f32 %v4239_v38, 0.0 }
 0x381   : > { %v8290_v27 = vpack.c.bf16 %v5349_v12, %v5301_v49  ;;  %v8296_v0 = vpack.c.bf16 %v5352_v43, %v5304_v16  ;;  %v4381_v32 = vpop.f32.mrb[128].mxu1 }
 0x382   : > { %v8288_v50 = vpack.c.bf16 %v5350_v63, %v5302_v62  ;;  %v4382_v46 = vadd.f32 %v4381_v32, %v10362_v33  ;;  %v4328_v28 = vpop.f32.mrb[124].mxu0  ;;  %v4383_v30 = vpop.f32.mrb[129].mxu1 }
 0x383   : > { %8297 = vmatprep.subr.bf16.mxu1 %v8296_v0  ;;  %v4329_v41 = vadd.f32 %v4328_v28, %v10362_v33  ;;  %v4384_v11 = vadd.f32 %v4383_v30, %v10362_v33  ;;  %v4330_v56 = vpop.f32.mrb[125].mxu0  ;;  %v4385_v3 = vpop.f32.mrb[130].mxu1 }
 0x384   : > { %8289 = vmatprep.subr.bf16.mxu0 %v8288_v50  ;;  %8299 = vmatpush1.bf16.msra.mxu1 %v8298_v5  ;;  %v4331_v14 = vadd.f32 %v4330_v56, %v10362_v33  ;;  %v4386_v52 = vadd.f32 %v4385_v3, %v10364_v61  ;;  %v4332_v15 = vpop.f32.mrb[126].mxu0  ;;  %v4387_v55 = vpop.f32.mrb[131].mxu1  ;;  %v5211_v25 = vmax.f32 %v4382_v46, 0.0 }
 0x385   : > { %8291 = vmatpush1.bf16.msra.mxu0 %v8290_v27  ;;  %v5209_v9 = vmax.f32 %v4329_v41, 0.0  ;;  %v4333_v2 = vadd.f32 %v4332_v15, %v10364_v61  ;;  %v4388_v36 = vadd.f32 %v4387_v55, %v10364_v61  ;;  %v4334_v4 = vpop.f32.mrb[127].mxu0  ;;  %v5212_v13 = vmax.f32 %v4384_v11, 0.0 }
 0x386   : > { %v5210_v48 = vmax.f32 %v4331_v14, 0.0  ;;  %v5259_v37 = vmax.f32 %v4386_v52, 0.0  ;;  %v4335_v42 = vadd.f32 %v4334_v4, %v10364_v61 }
 0x387   : > { %8160 = vmatmul.mubr.msk.f32.vlgmr.msra.gmra.mrb[198].mxu1 %vm3916_vm4, %v10390_v47  ;;  %v5257_v23 = vmax.f32 %v4333_v2, 0.0  ;;  %v5260_v20 = vmax.f32 %v4388_v36, 0.0 }
 0x388   : > { %v8310_v59 = vpack.c.bf16 %v5259_v37, %v5211_v25  ;;  %8159 = vmatmul.mubr.msk.f32.vlgmr.msra.gmra.mrb[200].mxu0 %vm3916_vm4, %v10390_v47  ;;  %v5258_v17 = vmax.f32 %v4335_v42, 0.0  ;;  %6033 = vmatprep.mubr.f32.mxu1 %v11180_v45 }
 0x389   : > { %v8302_v29 = vpack.c.bf16 %v5257_v23, %v5209_v9  ;;  %v8308_v40 = vpack.c.bf16 %v5260_v20, %v5212_v13  ;;  %v4391_v7 = vpop.f32.mrb[132].mxu1  ;;  %5962 = vmatprep.mubr.f32.mxu0 %v11180_v45 }
 0x38a   : > { %v8300_v53 = vpack.c.bf16 %v5258_v17, %v5210_v48  ;;  %v4392_v24 = vadd.f32 %v4391_v7, %v10368_v21  ;;  %v4338_v31 = vpop.f32.mrb[128].mxu0  ;;  %v4393_v8 = vpop.f32.mrb[133].mxu1 }
 0x38b   : > { %v4339_v44 = vadd.f32 %v4338_v31, %v10368_v21  ;;  %v4394_v58 = vadd.f32 %v4393_v8, %v10368_v21  ;;  %v4340_v26 = vpop.f32.mrb[129].mxu0  ;;  %v4395_v39 = vpop.f32.mrb[134].mxu1  ;;  %8309 = vmatprep.subr.bf16.mxu1 %v8308_v40 }
 0x38c   : > { %v4341_v51 = vadd.f32 %v4340_v26, %v10368_v21  ;;  %v4396_v35 = vadd.f32 %v4395_v39, %v10372_v1  ;;  %v4342_v34 = vpop.f32.mrb[130].mxu0  ;;  %v4397_v54 = vpop.f32.mrb[135].mxu1  ;;  %8301 = vmatprep.subr.bf16.mxu0 %v8300_v53  ;;  %8311 = vmatpush1.bf16.msra.mxu1 %v8310_v59  ;;  %v5307_v18 = vmax.f32 %v4392_v24, 0.0 }
 0x38d   : > { %v5305_v6 = vmax.f32 %v4339_v44, 0.0  ;;  %v4343_v19 = vadd.f32 %v4342_v34, %v10372_v1  ;;  %v4398_v49 = vadd.f32 %v4397_v54, %v10372_v1  ;;  %v4344_v57 = vpop.f32.mrb[131].mxu0  ;;  %8303 = vmatpush1.bf16.msra.mxu0 %v8302_v29  ;;  %v5308_v10 = vmax.f32 %v4394_v58, 0.0 }
 0x38e   : > { %v5306_v22 = vmax.f32 %v4341_v51, 0.0  ;;  %v5355_v60 = vmax.f32 %v4396_v35, 0.0  ;;  %v4345_v62 = vadd.f32 %v4344_v57, %v10372_v1 }
 0x38f   : > { %v5353_v38 = vmax.f32 %v4343_v19, 0.0  ;;  %v5356_v16 = vmax.f32 %v4398_v49, 0.0 }
 0x390   : > { %v8314_v12 = vpack.c.bf16 %v5355_v60, %v5307_v18  ;;  %v5354_v43 = vmax.f32 %v4345_v62, 0.0 }
 0x391   : > { %v8306_v5 = vpack.c.bf16 %v5353_v38, %v5305_v6  ;;  %v8312_v63 = vpack.c.bf16 %v5356_v16, %v5308_v10  ;;  %v4487_v27 = vpop.f32.mrb[136].mxu1 }
 0x392   : > { %v8304_v0 = vpack.c.bf16 %v5354_v43, %v5306_v22  ;;  %v4488_v32 = vadd.f32 %v4487_v27, %v10362_v33  ;;  %v4434_v50 = vpop.f32.mrb[132].mxu0  ;;  %v4489_v46 = vpop.f32.mrb[137].mxu1 }
 0x393   : > { %8313 = vmatprep.subr.bf16.mxu1 %v8312_v63  ;;  %v4435_v28 = vadd.f32 %v4434_v50, %v10362_v33  ;;  %v4490_v30 = vadd.f32 %v4489_v46, %v10362_v33  ;;  %v4436_v41 = vpop.f32.mrb[133].mxu0  ;;  %v4491_v11 = vpop.f32.mrb[138].mxu1 }
 0x394   : > { %8305 = vmatprep.subr.bf16.mxu0 %v8304_v0  ;;  %8315 = vmatpush1.bf16.msra.mxu1 %v8314_v12  ;;  %v4437_v56 = vadd.f32 %v4436_v41, %v10362_v33  ;;  %v4492_v3 = vadd.f32 %v4491_v11, %v10364_v61  ;;  %v4438_v14 = vpop.f32.mrb[134].mxu0  ;;  %v4493_v52 = vpop.f32.mrb[139].mxu1  ;;  %v5215_v36 = vmax.f32 %v4488_v32, 0.0 }
 0x395   : > { %8307 = vmatpush1.bf16.msra.mxu0 %v8306_v5  ;;  %v5213_v15 = vmax.f32 %v4435_v28, 0.0  ;;  %v4439_v55 = vadd.f32 %v4438_v14, %v10364_v61  ;;  %v4494_v9 = vadd.f32 %v4493_v52, %v10364_v61  ;;  %v4440_v2 = vpop.f32.mrb[135].mxu0  ;;  %v5216_v37 = vmax.f32 %v4490_v30, 0.0 }
 0x396   : > { %v5214_v4 = vmax.f32 %v4437_v56, 0.0  ;;  %v5263_v25 = vmax.f32 %v4492_v3, 0.0  ;;  %v4441_v48 = vadd.f32 %v4440_v2, %v10364_v61 }
 0x397   : > { %8162 = vmatmul.mubr.msk.f32.vlgmr.msra.gmra.mrb[200].mxu1 %vm3916_vm4, %v10390_v47  ;;  %v5261_v42 = vmax.f32 %v4439_v55, 0.0  ;;  %v5264_v13 = vmax.f32 %v4494_v9, 0.0 }
 0x398   : > { %v8326_v23 = vpack.c.bf16 %v5263_v25, %v5215_v36  ;;  %8161 = vmatmul.mubr.msk.f32.vlgmr.msra.gmra.mrb[202].mxu0 %vm3916_vm4, %v10390_v47  ;;  %v5262_v20 = vmax.f32 %v4441_v48, 0.0  ;;  %6175 = vmatprep.mubr.f32.mxu1 %v11180_v45 }
 0x399   : > { %v8318_v59 = vpack.c.bf16 %v5261_v42, %v5213_v15  ;;  %v8324_v17 = vpack.c.bf16 %v5264_v13, %v5216_v37  ;;  %v4497_v29 = vpop.f32.mrb[140].mxu1  ;;  %6104 = vmatprep.mubr.f32.mxu0 %v11180_v45 }
 0x39a   : > { %v8316_v40 = vpack.c.bf16 %v5262_v20, %v5214_v4  ;;  %v4498_v7 = vadd.f32 %v4497_v29, %v10368_v21  ;;  %v4444_v53 = vpop.f32.mrb[136].mxu0  ;;  %v4499_v24 = vpop.f32.mrb[141].mxu1 }
 0x39b   : > { %v4445_v31 = vadd.f32 %v4444_v53, %v10368_v21  ;;  %v4500_v8 = vadd.f32 %v4499_v24, %v10368_v21  ;;  %v4446_v44 = vpop.f32.mrb[137].mxu0  ;;  %v4501_v58 = vpop.f32.mrb[142].mxu1  ;;  %8325 = vmatprep.subr.bf16.mxu1 %v8324_v17 }
 0x39c   : > { %v4447_v26 = vadd.f32 %v4446_v44, %v10368_v21  ;;  %v4502_v39 = vadd.f32 %v4501_v58, %v10372_v1  ;;  %v4448_v51 = vpop.f32.mrb[138].mxu0  ;;  %v4503_v35 = vpop.f32.mrb[143].mxu1  ;;  %8317 = vmatprep.subr.bf16.mxu0 %v8316_v40  ;;  %8327 = vmatpush1.bf16.msra.mxu1 %v8326_v23  ;;  %v5311_v49 = vmax.f32 %v4498_v7, 0.0 }
 0x39d   : > { %v5309_v34 = vmax.f32 %v4445_v31, 0.0  ;;  %v4449_v54 = vadd.f32 %v4448_v51, %v10372_v1  ;;  %v4504_v6 = vadd.f32 %v4503_v35, %v10372_v1  ;;  %v4450_v19 = vpop.f32.mrb[139].mxu0  ;;  %8319 = vmatpush1.bf16.msra.mxu0 %v8318_v59  ;;  %v5312_v60 = vmax.f32 %v4500_v8, 0.0 }
 0x39e   : > { %v5310_v57 = vmax.f32 %v4447_v26, 0.0  ;;  %v5359_v18 = vmax.f32 %v4502_v39, 0.0  ;;  %v4451_v22 = vadd.f32 %v4450_v19, %v10372_v1 }
 0x39f   : > { %v5357_v62 = vmax.f32 %v4449_v54, 0.0  ;;  %v5360_v10 = vmax.f32 %v4504_v6, 0.0 }
 0x3a0   : > { %v8330_v38 = vpack.c.bf16 %v5359_v18, %v5311_v49  ;;  %v5358_v16 = vmax.f32 %v4451_v22, 0.0 }
 0x3a1   : > { %v8322_v12 = vpack.c.bf16 %v5357_v62, %v5309_v34  ;;  %v8328_v43 = vpack.c.bf16 %v5360_v10, %v5312_v60  ;;  %v4593_v5 = vpop.f32.mrb[144].mxu1 }
 0x3a2   : > { %v8320_v63 = vpack.c.bf16 %v5358_v16, %v5310_v57  ;;  %v4594_v27 = vadd.f32 %v4593_v5, %v10362_v33  ;;  %v4540_v0 = vpop.f32.mrb[140].mxu0  ;;  %v4595_v32 = vpop.f32.mrb[145].mxu1 }
 0x3a3   : > { %v4541_v50 = vadd.f32 %v4540_v0, %v10362_v33  ;;  %v4596_v46 = vadd.f32 %v4595_v32, %v10362_v33  ;;  %v4542_v28 = vpop.f32.mrb[141].mxu0  ;;  %v4597_v30 = vpop.f32.mrb[146].mxu1  ;;  %8329 = vmatprep.subr.bf16.mxu1 %v8328_v43 }
 0x3a4   : > { %v4543_v41 = vadd.f32 %v4542_v28, %v10362_v33  ;;  %v4598_v11 = vadd.f32 %v4597_v30, %v10364_v61  ;;  %v4544_v56 = vpop.f32.mrb[142].mxu0  ;;  %v4599_v3 = vpop.f32.mrb[147].mxu1  ;;  %8321 = vmatprep.subr.bf16.mxu0 %v8320_v63  ;;  %8331 = vmatpush1.bf16.msra.mxu1 %v8330_v38  ;;  %v5219_v55 = vmax.f32 %v4594_v27, 0.0 }
 0x3a5   : > { %v4545_v14 = vadd.f32 %v4544_v56, %v10364_v61  ;;  %v4600_v52 = vadd.f32 %v4599_v3, %v10364_v61  ;;  %v4546_v15 = vpop.f32.mrb[143].mxu0  ;;  %8323 = vmatpush1.bf16.msra.mxu0 %v8322_v12  ;;  %v5217_v36 = vmax.f32 %v4541_v50, 0.0  ;;  %v5220_v4 = vmax.f32 %v4596_v46, 0.0 }
 0x3a6   : > { %v5267_v9 = vmax.f32 %v4598_v11, 0.0  ;;  %v4547_v2 = vadd.f32 %v4546_v15, %v10364_v61  ;;  %v5218_v37 = vmax.f32 %v4543_v41, 0.0 }
 0x3a7   : > { %v5265_v25 = vmax.f32 %v4545_v14, 0.0  ;;  %v5268_v48 = vmax.f32 %v4600_v52, 0.0  ;;  %8164 = vmatmul.mubr.msk.f32.vlgmr.msra.gmra.mrb[202].mxu1 %vm3916_vm4, %v10390_v47 }
 0x3a8   : > { %v8342_v42 = vpack.c.bf16 %v5267_v9, %v5219_v55  ;;  %v5266_v13 = vmax.f32 %v4547_v2, 0.0  ;;  %8163 = vmatmul.mubr.msk.f32.vlgmr.msra.gmra.mrb[204].mxu0 %vm3916_vm4, %v10390_v47  ;;  %6317 = vmatprep.mubr.f32.mxu1 %v11180_v45 }
 0x3a9   : > { %v8334_v23 = vpack.c.bf16 %v5265_v25, %v5217_v36  ;;  %v8340_v20 = vpack.c.bf16 %v5268_v48, %v5220_v4  ;;  %v4603_v59 = vpop.f32.mrb[148].mxu1  ;;  %6246 = vmatprep.mubr.f32.mxu0 %v11180_v45 }
 0x3aa   : > { %v8332_v17 = vpack.c.bf16 %v5266_v13, %v5218_v37  ;;  %v4604_v29 = vadd.f32 %v4603_v59, %v10368_v21  ;;  %v4550_v40 = vpop.f32.mrb[144].mxu0  ;;  %v4605_v7 = vpop.f32.mrb[149].mxu1 }
 0x3ab   : > { %v4551_v53 = vadd.f32 %v4550_v40, %v10368_v21  ;;  %v4606_v24 = vadd.f32 %v4605_v7, %v10368_v21  ;;  %v4552_v31 = vpop.f32.mrb[145].mxu0  ;;  %v4607_v8 = vpop.f32.mrb[150].mxu1  ;;  %8341 = vmatprep.subr.bf16.mxu1 %v8340_v20 }
 0x3ac   : > { %v4553_v44 = vadd.f32 %v4552_v31, %v10368_v21  ;;  %v4608_v58 = vadd.f32 %v4607_v8, %v10372_v1  ;;  %v4554_v26 = vpop.f32.mrb[146].mxu0  ;;  %v4609_v39 = vpop.f32.mrb[151].mxu1  ;;  %8333 = vmatprep.subr.bf16.mxu0 %v8332_v17  ;;  %8343 = vmatpush1.bf16.msra.mxu1 %v8342_v42  ;;  %v5315_v54 = vmax.f32 %v4604_v29, 0.0 }
 0x3ad   : > { %v4555_v51 = vadd.f32 %v4554_v26, %v10372_v1  ;;  %v4610_v35 = vadd.f32 %v4609_v39, %v10372_v1  ;;  %v4556_v34 = vpop.f32.mrb[147].mxu0  ;;  %8335 = vmatpush1.bf16.msra.mxu0 %v8334_v23  ;;  %v5313_v49 = vmax.f32 %v4551_v53, 0.0  ;;  %v5316_v57 = vmax.f32 %v4606_v24, 0.0 }
 0x3ae   : > { %v5363_v6 = vmax.f32 %v4608_v58, 0.0  ;;  %v4557_v19 = vadd.f32 %v4556_v34, %v10372_v1  ;;  %v5314_v60 = vmax.f32 %v4553_v44, 0.0 }
 0x3af   : > { %v5361_v18 = vmax.f32 %v4555_v51, 0.0  ;;  %v5364_v22 = vmax.f32 %v4610_v35, 0.0 }
 0x3b0   : > { %v8346_v62 = vpack.c.bf16 %v5363_v6, %v5315_v54  ;;  %v5362_v10 = vmax.f32 %v4557_v19, 0.0 }
 0x3b1   : > { %v8338_v38 = vpack.c.bf16 %v5361_v18, %v5313_v49  ;;  %v8344_v16 = vpack.c.bf16 %v5364_v22, %v5316_v57  ;;  %v4699_v12 = vpop.f32.mrb[152].mxu1 }
 0x3b2   : > { %v8336_v43 = vpack.c.bf16 %v5362_v10, %v5314_v60  ;;  %v4700_v5 = vadd.f32 %v4699_v12, %v10362_v33  ;;  %v4646_v63 = vpop.f32.mrb[148].mxu0  ;;  %v4701_v27 = vpop.f32.mrb[153].mxu1 }
 0x3b3   : > { %v4647_v0 = vadd.f32 %v4646_v63, %v10362_v33  ;;  %v4702_v32 = vadd.f32 %v4701_v27, %v10362_v33  ;;  %v4648_v50 = vpop.f32.mrb[149].mxu0  ;;  %v4703_v46 = vpop.f32.mrb[154].mxu1  ;;  %8345 = vmatprep.subr.bf16.mxu1 %v8344_v16 }
 0x3b4   : > { %v4649_v28 = vadd.f32 %v4648_v50, %v10362_v33  ;;  %v4704_v30 = vadd.f32 %v4703_v46, %v10364_v61  ;;  %v4650_v41 = vpop.f32.mrb[150].mxu0  ;;  %v4705_v11 = vpop.f32.mrb[155].mxu1  ;;  %8337 = vmatprep.subr.bf16.mxu0 %v8336_v43  ;;  %8347 = vmatpush1.bf16.msra.mxu1 %v8346_v62  ;;  %v5223_v52 = vmax.f32 %v4700_v5, 0.0 }
 0x3b5   : > { %v4651_v56 = vadd.f32 %v4650_v41, %v10364_v61  ;;  %v4706_v3 = vadd.f32 %v4705_v11, %v10364_v61  ;;  %v4652_v14 = vpop.f32.mrb[151].mxu0  ;;  %8339 = vmatpush1.bf16.msra.mxu0 %v8338_v38  ;;  %v5221_v9 = vmax.f32 %v4647_v0, 0.0  ;;  %v5224_v2 = vmax.f32 %v4702_v32, 0.0 }
 0x3b6   : > { %v5271_v15 = vmax.f32 %v4704_v30, 0.0  ;;  %v4653_v55 = vadd.f32 %v4652_v14, %v10364_v61  ;;  %v5222_v25 = vmax.f32 %v4649_v28, 0.0 }
 0x3b7   : > { %v5269_v36 = vmax.f32 %v4651_v56, 0.0  ;;  %v5272_v4 = vmax.f32 %v4706_v3, 0.0  ;;  %8166 = vmatmul.mubr.msk.f32.vlgmr.msra.gmra.mrb[204].mxu1 %vm3916_vm4, %v10390_v47 }
 0x3b8   : > { %v8358_v48 = vpack.c.bf16 %v5271_v15, %v5223_v52  ;;  %v5270_v37 = vmax.f32 %v4653_v55, 0.0  ;;  %8165 = vmatmul.mubr.msk.f32.vlgmr.msra.gmra.mrb[206].mxu0 %vm3916_vm4, %v10390_v47  ;;  %6459 = vmatprep.mubr.f32.mxu1 %v11180_v45 }
 0x3b9   : > { %v8350_v42 = vpack.c.bf16 %v5269_v36, %v5221_v9  ;;  %v8356_v13 = vpack.c.bf16 %v5272_v4, %v5224_v2  ;;  %6388 = vmatprep.mubr.f32.mxu0 %v11180_v45 }
 0x3ba   : > { %v4709_v23 = vpop.f32.mrb[156].mxu1  ;;  %v8348_v20 = vpack.c.bf16 %v5270_v37, %v5222_v25 }
 0x3bb   : > { %v4710_v59 = vadd.f32 %v4709_v23, %v10368_v21  ;;  %v4656_v17 = vpop.f32.mrb[152].mxu0  ;;  %v4711_v29 = vpop.f32.mrb[157].mxu1  ;;  %8357 = vmatprep.subr.bf16.mxu1 %v8356_v13 }
 0x3bc   : > { %v4657_v40 = vadd.f32 %v4656_v17, %v10368_v21  ;;  %v4712_v7 = vadd.f32 %v4711_v29, %v10368_v21  ;;  %v4658_v53 = vpop.f32.mrb[153].mxu0  ;;  %v4713_v24 = vpop.f32.mrb[158].mxu1  ;;  %8349 = vmatprep.subr.bf16.mxu0 %v8348_v20  ;;  %8359 = vmatpush1.bf16.msra.mxu1 %v8358_v48 }
 0x3bd   : > { %v4659_v31 = vadd.f32 %v4658_v53, %v10368_v21  ;;  %v4714_v8 = vadd.f32 %v4713_v24, %v10372_v1  ;;  %v4660_v44 = vpop.f32.mrb[154].mxu0  ;;  %v4715_v58 = vpop.f32.mrb[159].mxu1  ;;  %8351 = vmatpush1.bf16.msra.mxu0 %v8350_v42  ;;  %v5319_v35 = vmax.f32 %v4710_v59, 0.0 }
 0x3be   : > { %v4661_v26 = vadd.f32 %v4660_v44, %v10372_v1  ;;  %v4716_v39 = vadd.f32 %v4715_v58, %v10372_v1  ;;  %v4662_v51 = vpop.f32.mrb[155].mxu0  ;;  %v5317_v6 = vmax.f32 %v4657_v40, 0.0  ;;  %v5320_v19 = vmax.f32 %v4712_v7, 0.0 }
 0x3bf   : > { %v5367_v34 = vmax.f32 %v4714_v8, 0.0  ;;  %v4663_v54 = vadd.f32 %v4662_v51, %v10372_v1  ;;  %v5318_v18 = vmax.f32 %v4659_v31, 0.0 }
 0x3c0   : > { %v5365_v49 = vmax.f32 %v4661_v26, 0.0  ;;  %v5368_v57 = vmax.f32 %v4716_v39, 0.0 }
 0x3c1   : > { %v8362_v22 = vpack.c.bf16 %v5367_v34, %v5319_v35  ;;  %v5366_v60 = vmax.f32 %v4663_v54, 0.0 }
 0x3c2   : > { %v8354_v62 = vpack.c.bf16 %v5365_v49, %v5317_v6  ;;  %v8360_v10 = vpack.c.bf16 %v5368_v57, %v5320_v19  ;;  %v4805_v38 = vpop.f32.mrb[160].mxu1 }
 0x3c3   : > { %v8352_v16 = vpack.c.bf16 %v5366_v60, %v5318_v18  ;;  %v4806_v12 = vadd.f32 %v4805_v38, %v10362_v33  ;;  %v4752_v43 = vpop.f32.mrb[156].mxu0  ;;  %v4807_v5 = vpop.f32.mrb[161].mxu1 }
 0x3c4   : > { %v4753_v63 = vadd.f32 %v4752_v43, %v10362_v33  ;;  %v4808_v27 = vadd.f32 %v4807_v5, %v10362_v33  ;;  %v4754_v0 = vpop.f32.mrb[157].mxu0  ;;  %v4809_v32 = vpop.f32.mrb[162].mxu1  ;;  %8361 = vmatprep.subr.bf16.mxu1 %v8360_v10 }
 0x3c5   : > { %v4755_v50 = vadd.f32 %v4754_v0, %v10362_v33  ;;  %v4810_v46 = vadd.f32 %v4809_v32, %v10364_v61  ;;  %v4756_v28 = vpop.f32.mrb[158].mxu0  ;;  %v4811_v30 = vpop.f32.mrb[163].mxu1  ;;  %8353 = vmatprep.subr.bf16.mxu0 %v8352_v16  ;;  %8363 = vmatpush1.bf16.msra.mxu1 %v8362_v22  ;;  %v5227_v3 = vmax.f32 %v4806_v12, 0.0 }
 0x3c6   : > { %v4757_v41 = vadd.f32 %v4756_v28, %v10364_v61  ;;  %v4812_v11 = vadd.f32 %v4811_v30, %v10364_v61  ;;  %v4758_v56 = vpop.f32.mrb[159].mxu0  ;;  %8355 = vmatpush1.bf16.msra.mxu0 %v8354_v62  ;;  %v5225_v15 = vmax.f32 %v4753_v63, 0.0  ;;  %v5228_v55 = vmax.f32 %v4808_v27, 0.0 }
 0x3c7   : > { %v5275_v14 = vmax.f32 %v4810_v46, 0.0  ;;  %v4759_v52 = vadd.f32 %v4758_v56, %v10364_v61  ;;  %v5226_v36 = vmax.f32 %v4755_v50, 0.0 }
 0x3c8   : > { %v5273_v9 = vmax.f32 %v4757_v41, 0.0  ;;  %v5276_v2 = vmax.f32 %v4812_v11, 0.0  ;;  %8168 = vmatmul.mubr.msk.f32.vlgmr.msra.gmra.mrb[206].mxu1 %vm3916_vm4, %v10390_v47 }
 0x3c9   : > { %v8374_v4 = vpack.c.bf16 %v5275_v14, %v5227_v3  ;;  %v5274_v25 = vmax.f32 %v4759_v52, 0.0  ;;  %8167 = vmatmul.mubr.msk.f32.vlgmr.msra.gmra.mrb[208].mxu0 %vm3916_vm4, %v10390_v47  ;;  %6601 = vmatprep.mubr.f32.mxu1 %v11180_v45 }
 0x3ca   : > { %v8366_v48 = vpack.c.bf16 %v5273_v9, %v5225_v15  ;;  %v8372_v37 = vpack.c.bf16 %v5276_v2, %v5228_v55  ;;  %v4815_v42 = vpop.f32.mrb[164].mxu1  ;;  %6530 = vmatprep.mubr.f32.mxu0 %v11180_v45  ;;  %v10567_v55 = vld [vmem:[%s10844_s8] sm:$0x1] }
 0x3cb   : > { %v8364_v13 = vpack.c.bf16 %v5274_v25, %v5226_v36  ;;  %v4816_v23 = vadd.f32 %v4815_v42, %v10368_v21  ;;  %v4762_v20 = vpop.f32.mrb[160].mxu0  ;;  %v4817_v59 = vpop.f32.mrb[165].mxu1 }
 0x3cc   : > { %v4763_v17 = vadd.f32 %v4762_v20, %v10368_v21  ;;  %v4818_v29 = vadd.f32 %v4817_v59, %v10368_v21  ;;  %v4764_v40 = vpop.f32.mrb[161].mxu0  ;;  %v4819_v7 = vpop.f32.mrb[166].mxu1  ;;  %8373 = vmatprep.subr.bf16.mxu1 %v8372_v37 }
 0x3cd   : > { %v4765_v47 = vadd.f32 %v4764_v40, %v10368_v21  ;;  %v4820_v53 = vadd.f32 %v4819_v7, %v10372_v1  ;;  %v4766_v24 = vpop.f32.mrb[162].mxu0  ;;  %v4821_v31 = vpop.f32.mrb[167].mxu1  ;;  %8365 = vmatprep.subr.bf16.mxu0 %v8364_v13  ;;  %8375 = vmatpush1.bf16.msra.mxu1 %v8374_v4  ;;  %v5323_v26 = vmax.f32 %v4816_v23, 0.0 }
 0x3ce   : > { %v4767_v8 = vadd.f32 %v4766_v24, %v10372_v1  ;;  %v4822_v44 = vadd.f32 %v4821_v31, %v10372_v1  ;;  %v4768_v58 = vpop.f32.mrb[163].mxu0  ;;  %8367 = vmatpush1.bf16.msra.mxu0 %v8366_v48  ;;  %v5321_v35 = vmax.f32 %v4763_v17, 0.0  ;;  %v5324_v34 = vmax.f32 %v4818_v29, 0.0 }
 0x3cf   : > { %v5371_v39 = vmax.f32 %v4820_v53, 0.0  ;;  %v4769_v51 = vadd.f32 %v4768_v58, %v10372_v1  ;;  %v5322_v19 = vmax.f32 %v4765_v47, 0.0 }
 0x3d0   : > { %v5369_v54 = vmax.f32 %v4767_v8, 0.0  ;;  %v5372_v6 = vmax.f32 %v4822_v44, 0.0 }
 0x3d1   : > { %v8378_v49 = vpack.c.bf16 %v5371_v39, %v5323_v26  ;;  %v5370_v57 = vmax.f32 %v4769_v51, 0.0 }
 0x3d2   : > { %v8370_v18 = vpack.c.bf16 %v5369_v54, %v5321_v35  ;;  %v8376_v22 = vpack.c.bf16 %v5372_v6, %v5324_v34  ;;  %v4911_v60 = vpop.f32.mrb[168].mxu1 }
 0x3d3   : > { %v8368_v62 = vpack.c.bf16 %v5370_v57, %v5322_v19  ;;  %v4912_v10 = vadd.f32 %v4911_v60, %v10362_v33  ;;  %v4858_v38 = vpop.f32.mrb[164].mxu0  ;;  %v4913_v16 = vpop.f32.mrb[169].mxu1 }
 0x3d4   : > { %v4859_v12 = vadd.f32 %v4858_v38, %v10362_v33  ;;  %v4914_v43 = vadd.f32 %v4913_v16, %v10362_v33  ;;  %v4860_v5 = vpop.f32.mrb[165].mxu0  ;;  %v4915_v63 = vpop.f32.mrb[170].mxu1  ;;  %8377 = vmatprep.subr.bf16.mxu1 %v8376_v22 }
 0x3d5   : > { %v4861_v27 = vadd.f32 %v4860_v5, %v10362_v33  ;;  %v4916_v0 = vadd.f32 %v4915_v63, %v10364_v61  ;;  %v4862_v32 = vpop.f32.mrb[166].mxu0  ;;  %v4917_v50 = vpop.f32.mrb[171].mxu1  ;;  %8369 = vmatprep.subr.bf16.mxu0 %v8368_v62  ;;  %8379 = vmatpush1.bf16.msra.mxu1 %v8378_v49  ;;  %v5231_v41 = vmax.f32 %v4912_v10, 0.0 }
 0x3d6   : > { %v4863_v46 = vadd.f32 %v4862_v32, %v10364_v61  ;;  %v4918_v28 = vadd.f32 %v4917_v50, %v10364_v61  ;;  %v4864_v30 = vpop.f32.mrb[167].mxu0  ;;  %8371 = vmatpush1.bf16.msra.mxu0 %v8370_v18  ;;  %v5229_v3 = vmax.f32 %v4859_v12, 0.0  ;;  %v5232_v14 = vmax.f32 %v4914_v43, 0.0 }
 0x3d7   : > { %v5279_v11 = vmax.f32 %v4916_v0, 0.0  ;;  %v4865_v56 = vadd.f32 %v4864_v30, %v10364_v61  ;;  %v5230_v9 = vmax.f32 %v4861_v27, 0.0 }
 0x3d8   : > { %v5277_v52 = vmax.f32 %v4863_v46, 0.0  ;;  %v5280_v15 = vmax.f32 %v4918_v28, 0.0  ;;  %8170 = vmatmul.mubr.msk.f32.vlgmr.msra.gmra.mrb[208].mxu1 %vm3916_vm4, %v10567_v55 }
 0x3d9   : > { %v8390_v2 = vpack.c.bf16 %v5279_v11, %v5231_v41  ;;  %v5278_v36 = vmax.f32 %v4865_v56, 0.0  ;;  %8169 = vmatmul.mubr.msk.f32.vlgmr.msra.gmra.mrb[210].mxu0 %vm3916_vm4, %v10567_v55  ;;  %6743 = vmatprep.mubr.f32.mxu1 %v11180_v45 }
 0x3da   : > { %v8382_v4 = vpack.c.bf16 %v5277_v52, %v5229_v3  ;;  %v8388_v25 = vpack.c.bf16 %v5280_v15, %v5232_v14  ;;  %v4921_v48 = vpop.f32.mrb[172].mxu1  ;;  %6672 = vmatprep.mubr.f32.mxu0 %v11180_v45 }
 0x3db   : > { %v8380_v37 = vpack.c.bf16 %v5278_v36, %v5230_v9  ;;  %v4922_v42 = vadd.f32 %v4921_v48, %v10368_v21  ;;  %v4868_v13 = vpop.f32.mrb[168].mxu0  ;;  %v4923_v23 = vpop.f32.mrb[173].mxu1 }
 0x3dc   : > { %v4869_v20 = vadd.f32 %v4868_v13, %v10368_v21  ;;  %v4924_v59 = vadd.f32 %v4923_v23, %v10368_v21  ;;  %v4870_v17 = vpop.f32.mrb[169].mxu0  ;;  %v4925_v29 = vpop.f32.mrb[174].mxu1  ;;  %8389 = vmatprep.subr.bf16.mxu1 %v8388_v25 }
 0x3dd   : > { %v4871_v40 = vadd.f32 %v4870_v17, %v10368_v21  ;;  %v4926_v7 = vadd.f32 %v4925_v29, %v10372_v1  ;;  %v4872_v47 = vpop.f32.mrb[170].mxu0  ;;  %v4927_v53 = vpop.f32.mrb[175].mxu1  ;;  %8381 = vmatprep.subr.bf16.mxu0 %v8380_v37  ;;  %8391 = vmatpush1.bf16.msra.mxu1 %v8390_v2  ;;  %v5327_v44 = vmax.f32 %v4922_v42, 0.0 }
 0x3de   : > { %v4873_v24 = vadd.f32 %v4872_v47, %v10372_v1  ;;  %v4928_v31 = vadd.f32 %v4927_v53, %v10372_v1  ;;  %v4874_v8 = vpop.f32.mrb[171].mxu0  ;;  %8383 = vmatpush1.bf16.msra.mxu0 %v8382_v4  ;;  %v5325_v39 = vmax.f32 %v4869_v20, 0.0  ;;  %v5328_v51 = vmax.f32 %v4924_v59, 0.0 }
 0x3df   : > { %v5375_v58 = vmax.f32 %v4926_v7, 0.0  ;;  %v4875_v26 = vadd.f32 %v4874_v8, %v10372_v1  ;;  %v5326_v54 = vmax.f32 %v4871_v40, 0.0 }
 0x3e0   : > { %v5373_v35 = vmax.f32 %v4873_v24, 0.0  ;;  %v5376_v34 = vmax.f32 %v4928_v31, 0.0 }
 0x3e1   : > { %v8394_v6 = vpack.c.bf16 %v5375_v58, %v5327_v44  ;;  %v5374_v19 = vmax.f32 %v4875_v26, 0.0 }
 0x3e2   : > { %v8386_v49 = vpack.c.bf16 %v5373_v35, %v5325_v39  ;;  %v8392_v57 = vpack.c.bf16 %v5376_v34, %v5328_v51  ;;  %v5017_v18 = vpop.f32.mrb[176].mxu1 }
 0x3e3   : > { %v8384_v22 = vpack.c.bf16 %v5374_v19, %v5326_v54  ;;  %v5018_v60 = vadd.f32 %v5017_v18, %v10362_v33  ;;  %v4964_v62 = vpop.f32.mrb[172].mxu0  ;;  %v5019_v10 = vpop.f32.mrb[177].mxu1 }
 0x3e4   : > { %v4965_v38 = vadd.f32 %v4964_v62, %v10362_v33  ;;  %v5020_v16 = vadd.f32 %v5019_v10, %v10362_v33  ;;  %v4966_v12 = vpop.f32.mrb[173].mxu0  ;;  %v5021_v43 = vpop.f32.mrb[178].mxu1  ;;  %8393 = vmatprep.subr.bf16.mxu1 %v8392_v57 }
 0x3e5   : > { %v4967_v5 = vadd.f32 %v4966_v12, %v10362_v33  ;;  %v5022_v63 = vadd.f32 %v5021_v43, %v10364_v61  ;;  %v4968_v27 = vpop.f32.mrb[174].mxu0  ;;  %v5023_v0 = vpop.f32.mrb[179].mxu1  ;;  %8385 = vmatprep.subr.bf16.mxu0 %v8384_v22  ;;  %8395 = vmatpush1.bf16.msra.mxu1 %v8394_v6  ;;  %v5235_v28 = vmax.f32 %v5018_v60, 0.0 }
 0x3e6   : > { %v4969_v32 = vadd.f32 %v4968_v27, %v10364_v61  ;;  %v5024_v50 = vadd.f32 %v5023_v0, %v10364_v61  ;;  %v4970_v46 = vpop.f32.mrb[175].mxu0  ;;  %8387 = vmatpush1.bf16.msra.mxu0 %v8386_v49  ;;  %v5233_v11 = vmax.f32 %v4965_v38, 0.0  ;;  %v5236_v56 = vmax.f32 %v5020_v16, 0.0 }
 0x3e7   : > { %v5283_v30 = vmax.f32 %v5022_v63, 0.0  ;;  %v4971_v41 = vadd.f32 %v4970_v46, %v10364_v61  ;;  %v5234_v52 = vmax.f32 %v4967_v5, 0.0 }
 0x3e8   : > { %v5281_v3 = vmax.f32 %v4969_v32, 0.0  ;;  %v5284_v14 = vmax.f32 %v5024_v50, 0.0  ;;  %8172 = vmatmul.mubr.msk.f32.vlgmr.msra.gmra.mrb[210].mxu1 %vm3916_vm4, %v10567_v55 }
 0x3e9   : > { %v8406_v15 = vpack.c.bf16 %v5283_v30, %v5235_v28  ;;  %v5282_v9 = vmax.f32 %v4971_v41, 0.0  ;;  %8171 = vmatmul.mubr.msk.f32.vlgmr.msra.gmra.mrb[212].mxu0 %vm3916_vm4, %v10567_v55  ;;  %6885 = vmatprep.mubr.f32.mxu1 %v11180_v45 }
 0x3ea   : > { %v8398_v2 = vpack.c.bf16 %v5281_v3, %v5233_v11  ;;  %v8404_v36 = vpack.c.bf16 %v5284_v14, %v5236_v56  ;;  %v5027_v4 = vpop.f32.mrb[180].mxu1  ;;  %6814 = vmatprep.mubr.f32.mxu0 %v11180_v45 }
 0x3eb   : > { %v8396_v25 = vpack.c.bf16 %v5282_v9, %v5234_v52  ;;  %v5028_v48 = vadd.f32 %v5027_v4, %v10368_v21  ;;  %v4974_v37 = vpop.f32.mrb[176].mxu0  ;;  %v5029_v42 = vpop.f32.mrb[181].mxu1 }
 0x3ec   : > { %v4975_v13 = vadd.f32 %v4974_v37, %v10368_v21  ;;  %v5030_v23 = vadd.f32 %v5029_v42, %v10368_v21  ;;  %v4976_v20 = vpop.f32.mrb[177].mxu0  ;;  %v5031_v59 = vpop.f32.mrb[182].mxu1  ;;  %8405 = vmatprep.subr.bf16.mxu1 %v8404_v36 }
 0x3ed   : > { %v4977_v17 = vadd.f32 %v4976_v20, %v10368_v21  ;;  %v5032_v29 = vadd.f32 %v5031_v59, %v10372_v1  ;;  %v4978_v40 = vpop.f32.mrb[178].mxu0  ;;  %v5033_v7 = vpop.f32.mrb[183].mxu1  ;;  %8397 = vmatprep.subr.bf16.mxu0 %v8396_v25  ;;  %8407 = vmatpush1.bf16.msra.mxu1 %v8406_v15  ;;  %v5331_v31 = vmax.f32 %v5028_v48, 0.0 }
 0x3ee   : > { %v4979_v47 = vadd.f32 %v4978_v40, %v10372_v1  ;;  %v5034_v53 = vadd.f32 %v5033_v7, %v10372_v1  ;;  %v4980_v24 = vpop.f32.mrb[179].mxu0  ;;  %8399 = vmatpush1.bf16.msra.mxu0 %v8398_v2  ;;  %v5329_v58 = vmax.f32 %v4975_v13, 0.0  ;;  %v5332_v26 = vmax.f32 %v5030_v23, 0.0 }
 0x3ef   : > { %v5379_v8 = vmax.f32 %v5032_v29, 0.0  ;;  %v4981_v44 = vadd.f32 %v4980_v24, %v10372_v1  ;;  %v5330_v35 = vmax.f32 %v4977_v17, 0.0 }
 0x3f0   : > { %v5377_v39 = vmax.f32 %v4979_v47, 0.0  ;;  %v5380_v51 = vmax.f32 %v5034_v53, 0.0 }
 0x3f1   : > { %v8410_v34 = vpack.c.bf16 %v5379_v8, %v5331_v31  ;;  %v5378_v54 = vmax.f32 %v4981_v44, 0.0 }
 0x3f2   : > { %v8402_v6 = vpack.c.bf16 %v5377_v39, %v5329_v58  ;;  %v8408_v19 = vpack.c.bf16 %v5380_v51, %v5332_v26  ;;  %v5123_v49 = vpop.f32.mrb[184].mxu1 }
 0x3f3   : > { %v8400_v57 = vpack.c.bf16 %v5378_v54, %v5330_v35  ;;  %v5124_v18 = vadd.f32 %v5123_v49, %v10362_v33  ;;  %v5070_v22 = vpop.f32.mrb[180].mxu0  ;;  %v5125_v60 = vpop.f32.mrb[185].mxu1  ;;  %v7540_v49 = vld [vmem:[%s10846_s10] sm:$0xf] }
 0x3f4   : > { %v5071_v62 = vadd.f32 %v5070_v22, %v10362_v33  ;;  %v5126_v10 = vadd.f32 %v5125_v60, %v10362_v33  ;;  %v5072_v38 = vpop.f32.mrb[181].mxu0  ;;  %v5127_v16 = vpop.f32.mrb[186].mxu1  ;;  %8409 = vmatprep.subr.bf16.mxu1 %v8408_v19 }
 0x3f5   : > { %v5073_v12 = vadd.f32 %v5072_v38, %v10362_v33  ;;  %v5128_v43 = vadd.f32 %v5127_v16, %v10364_v61  ;;  %v5074_v5 = vpop.f32.mrb[182].mxu0  ;;  %v5129_v63 = vpop.f32.mrb[187].mxu1  ;;  %8401 = vmatprep.subr.bf16.mxu0 %v8400_v57  ;;  %8411 = vmatpush1.bf16.msra.mxu1 %v8410_v34  ;;  %v5239_v50 = vmax.f32 %v5124_v18, 0.0  ;;  %v7538_v16 = vld [vmem:[%s564_s29] sm:$0xff] }
 0x3f6   : > { %v5075_v27 = vadd.f32 %v5074_v5, %v10364_v61  ;;  %v5130_v0 = vadd.f32 %v5129_v63, %v10364_v61  ;;  %v5076_v32 = vpop.f32.mrb[183].mxu0  ;;  %8403 = vmatpush1.bf16.msra.mxu0 %v8402_v6  ;;  %v5237_v30 = vmax.f32 %v5071_v62, 0.0  ;;  %v5240_v41 = vmax.f32 %v5126_v10, 0.0 }
 0x3f7   : > { %v5287_v46 = vmax.f32 %v5128_v43, 0.0  ;;  %v5077_v28 = vadd.f32 %v5076_v32, %v10364_v61  ;;  %v5238_v3 = vmax.f32 %v5073_v12, 0.0 }
 0x3f8   : > { %v5285_v11 = vmax.f32 %v5075_v27, 0.0  ;;  %v5288_v56 = vmax.f32 %v5130_v0, 0.0  ;;  %8174 = vmatmul.mubr.msk.f32.vlgmr.msra.gmra.mrb[212].mxu1 %vm3916_vm4, %v10567_v55 }
 0x3f9   : > { %v8422_v14 = vpack.c.bf16 %v5287_v46, %v5239_v50  ;;  %v5286_v52 = vmax.f32 %v5077_v28, 0.0  ;;  %8173 = vmatmul.mubr.msk.f32.vlgmr.msra.gmra.mrb[214].mxu0 %vm3916_vm4, %v10567_v55  ;;  %7027 = vmatprep.mubr.f32.mxu1 %v11180_v45 }
 0x3fa   : > { %v8414_v15 = vpack.c.bf16 %v5285_v11, %v5237_v30  ;;  %v8420_v9 = vpack.c.bf16 %v5288_v56, %v5240_v41  ;;  %v5133_v2 = vpop.f32.mrb[188].mxu1  ;;  %6956 = vmatprep.mubr.f32.mxu0 %v11180_v45 }
 0x3fb   : > { %v8412_v36 = vpack.c.bf16 %v5286_v52, %v5238_v3  ;;  %v5134_v4 = vadd.f32 %v5133_v2, %v10368_v21  ;;  %v5080_v25 = vpop.f32.mrb[184].mxu0  ;;  %v5135_v48 = vpop.f32.mrb[189].mxu1 }
 0x3fc   : > { %v5081_v37 = vadd.f32 %v5080_v25, %v10368_v21  ;;  %v5136_v42 = vadd.f32 %v5135_v48, %v10368_v21  ;;  %v5082_v13 = vpop.f32.mrb[185].mxu0  ;;  %v5137_v23 = vpop.f32.mrb[190].mxu1  ;;  %8421 = vmatprep.subr.bf16.mxu1 %v8420_v9 }
 0x3fd   : > { %v5083_v20 = vadd.f32 %v5082_v13, %v10368_v21  ;;  %v5138_v59 = vadd.f32 %v5137_v23, %v10372_v1  ;;  %v5084_v17 = vpop.f32.mrb[186].mxu0  ;;  %v5139_v29 = vpop.f32.mrb[191].mxu1  ;;  %8413 = vmatprep.subr.bf16.mxu0 %v8412_v36  ;;  %8423 = vmatpush1.bf16.msra.mxu1 %v8422_v14  ;;  %v5335_v53 = vmax.f32 %v5134_v4, 0.0  ;;  %v11182_v36 = vld [vmem:[#allocation9_spill] sm:$0xff] }
 0x3fe   : > { %v5085_v40 = vadd.f32 %v5084_v17, %v10372_v1  ;;  %v5140_v7 = vadd.f32 %v5139_v29, %v10372_v1  ;;  %v5086_v47 = vpop.f32.mrb[187].mxu0  ;;  %8415 = vmatpush1.bf16.msra.mxu0 %v8414_v15  ;;  %v5333_v8 = vmax.f32 %v5081_v37, 0.0  ;;  %v5336_v44 = vmax.f32 %v5136_v42, 0.0 }
 0x3ff   : > { %v5383_v24 = vmax.f32 %v5138_v59, 0.0  ;;  %v5087_v31 = vadd.f32 %v5086_v47, %v10372_v1  ;;  %v5334_v39 = vmax.f32 %v5083_v20, 0.0 }
 0x400   : > { %v5381_v58 = vmax.f32 %v5085_v40, 0.0  ;;  %v5384_v26 = vmax.f32 %v5140_v7, 0.0 }
 0x401   : > { %v8426_v51 = vpack.c.bf16 %v5383_v24, %v5335_v53  ;;  %v5382_v35 = vmax.f32 %v5087_v31, 0.0 }
 0x402   : > { %v8418_v34 = vpack.c.bf16 %v5381_v58, %v5333_v8  ;;  %v8424_v54 = vpack.c.bf16 %v5384_v26, %v5336_v44 }
 0x403   : > { %v8416_v6 = vpack.c.bf16 %v5382_v35, %v5334_v39  ;;  %v5176_v19 = vpop.f32.mrb[188].mxu0 }
 0x404   : > { %v5177_v57 = vadd.f32 %v5176_v19, %v10362_v33  ;;  %v5178_v18 = vpop.f32.mrb[189].mxu0  ;;  %8425 = vmatprep.subr.bf16.mxu1 %v8424_v54 }
 0x405   : > { %v5179_v22 = vadd.f32 %v5178_v18, %v10362_v33  ;;  %v5180_v60 = vpop.f32.mrb[190].mxu0  ;;  %8417 = vmatprep.subr.bf16.mxu0 %v8416_v6  ;;  %8427 = vmatpush1.bf16.msra.mxu1 %v8426_v51  ;;  %v7539_v33 = vld [vmem:[%s564_s29 + $0x8] sm:$0xff]  ;;  %s574_s29 = scalar_lea.vmem %s10851_s15, %s7951_s9 }
 0x406   : > { %v5181_v62 = vadd.f32 %v5180_v60, %v10364_v61  ;;  %v5182_v10 = vpop.f32.mrb[191].mxu0  ;;  %8419 = vmatpush1.bf16.msra.mxu0 %v8418_v34  ;;  %8217 = vmatprep.subr.msk.mxu1 %vm3049_vm2, %v7540_v49  ;;  %v5241_v12 = vmax.f32 %v5177_v57, 0.0 }
 0x407   : > { %v5183_v38 = vadd.f32 %v5182_v10, %v10364_v61  ;;  %v5242_v5 = vmax.f32 %v5179_v22, 0.0 }
 0x408   : > { %v5289_v43 = vmax.f32 %v5181_v62, 0.0  ;;  %8176 = vmatmul.mubr.msk.f32.vlgmr.msra.gmra.mrb[214].mxu1 %vm3916_vm4, %v10567_v55 }
 0x409   : > { %v5290_v63 = vmax.f32 %v5183_v38, 0.0  ;;  %8175 = vmatmul.mubr.msk.f32.vlgmr.msra.gmra.mrb[216].mxu0 %vm3916_vm4, %v10567_v55  ;;  %8218 = vmatpush3.msk.msra.mxu1 %vm3049_vm2, %v7540_v49 }
 0x40a   : > { %v8430_v27 = vpack.c.bf16 %v5289_v43, %v5241_v12  ;;  %8219 = vmatprep.mubr.msk.f32.mxu1 %vm3036_vm3, %v7538_v16  ;;  %7098 = vmatprep.mubr.f32.mxu0 %v11180_v45 }
 0x40b   : > { %v8428_v61 = vpack.c.bf16 %v5290_v63, %v5242_v5  ;;  %v5186_v0 = vpop.f32.mrb[192].mxu0 }
 0x40c   : > { %v5187_v32 = vadd.f32 %v5186_v0, %v10368_v21  ;;  %v5188_v50 = vpop.f32.mrb[193].mxu0  ;;  %8220 = vmatmul.mubr.msk.f32.vlgmr.msra.gmra.mrb[216].mxu1 %vm3036_vm3, %v7539_v33 }
 0x40d   : > { %v5189_v46 = vadd.f32 %v5188_v50, %v10368_v21  ;;  %v5190_v28 = vpop.f32.mrb[194].mxu0  ;;  %8429 = vmatprep.subr.bf16.mxu0 %v8428_v61  ;;  %v5392_v21 = vpop.permute.xlu0 %5391 }
 0x40e   : > { %v5191_v30 = vadd.f32 %v5190_v28, %v10372_v1  ;;  %v5192_v41 = vpop.f32.mrb[195].mxu0  ;;  %8431 = vmatpush1.bf16.msra.mxu0 %v8430_v27  ;;  %v5337_v56 = vmax.f32 %v5187_v32, 0.0  ;;  %v10669_v4 = vrot.slane %v5392_v21, %v11182_v36 }
 0x40f   : > { %v5193_v11 = vadd.f32 %v5192_v41, %v10372_v1  ;;  %v5338_v45 = vmax.f32 %v5189_v46, 0.0 }
 0x410   : > { %v5385_v3 = vmax.f32 %v5191_v30, 0.0 }
 0x411   : > { %v5386_v14 = vmax.f32 %v5193_v11, 0.0 }
 0x412   : > { %v8434_v52 = vpack.c.bf16 %v5385_v3, %v5337_v56 }
 0x413   : > { %v8432_v15 = vpack.c.bf16 %v5386_v14, %v5338_v45 }
 0x415   : > { %8433 = vmatprep.subr.bf16.mxu0 %v8432_v15 }
 0x416   : > { %8435 = vmatpush1.bf16.msra.mxu0 %v8434_v52 }
 0x419   : > { %8177 = vmatmul.mubr.msk.f32.vlgmr.msra.gmra.mrb[218].mxu0 %vm3916_vm4, %v10567_v55 }
 0x42a   : > { %v5467_v9 = vpop.f32.mrb[192].mxu1 }
 0x42b   : > { %v5469_v2 = vpop.f32.mrb[193].mxu1  ;;  %v5468_v25 = vadd.f32 %v5467_v9, %v10669_v4 }
 0x42c   : > { %v5470_v48 = vadd.f32 %v5469_v2, %v10669_v4 }
 0x42d   : > { %v7153_v1 = vmin.f32 %v5468_v25, 0.0  ;;  %v7105_v34 = vmax.f32 %v5468_v25, 0.0 }
 0x42e   : > { %v7154_v59 = vmin.f32 %v5470_v48, 0.0  ;;  %v7106_v5 = vmax.f32 %v5470_v48, 0.0 }
 0x42f   : > { %v7201_v20 = vmul.f32 1.442695, %v7153_v1 }
 0x430   : > { %v7203_v7 = vmul.f32 1.442695, %v7154_v59  ;;  %v7628_v59 = vld [vmem:[%s10847_s11 + $0x8] sm:$0xff] }
 0x431   : > { %8560 = vpow2.f32 %v7201_v20  ;;  %v7627_v20 = vld [vmem:[%s10847_s11] sm:$0xff] }
 0x433   : > { %v5538_v37 = vpop.f32.mrb[196].mxu0 }
 0x434   : > { %v5539_v42 = vadd.f32 %v5538_v37, %v10669_v4  ;;  %v5540_v13 = vpop.f32.mrb[197].mxu0 }
 0x435   : > { %v5541_v23 = vadd.f32 %v5540_v13, %v10669_v4 }
 0x436   : > { %v7155_v17 = vmin.f32 %v5539_v42, 0.0  ;;  %v7107_v0 = vmax.f32 %v5539_v42, 0.0 }
 0x437   : > { %v7156_v55 = vmin.f32 %v5541_v23, 0.0  ;;  %v7108_v51 = vmax.f32 %v5541_v23, 0.0 }
 0x438   : > { %v7205_v24 = vmul.f32 1.442695, %v7155_v17 }
 0x439   : > { %v7207_v29 = vmul.f32 1.442695, %v7156_v55 }
 0x43a   : > { %v5609_v40 = vpop.f32.mrb[194].mxu1 }
 0x43b   : > { %8562 = vpow2.f32 %v7207_v29  ;;  %v5610_v47 = vadd.f32 %v5609_v40, %v10669_v4  ;;  %v5611_v53 = vpop.f32.mrb[195].mxu1  ;;  %v8561_v39 = vpop.eup %8560 }
 0x43c   : > { %v5612_v31 = vadd.f32 %v5611_v53, %v10669_v4  ;;  %8564 = vpow2.f32 %v7203_v7  ;;  %v7297_v6 = vadd.f32 %v8561_v39, %v7105_v34 }
 0x43d   : > { %v7157_v8 = vmin.f32 %v5610_v47, 0.0  ;;  %8566 = vpow2.f32 %v7205_v24  ;;  %v7109_v22 = vmax.f32 %v5610_v47, 0.0  ;;  %v8436_v47 = vpack.c.bf16 %v7628_v59, %v7627_v20 }
 0x43e   : > { %v7158_v44 = vmin.f32 %v5612_v31, 0.0  ;;  %v7110_v10 = vmax.f32 %v5612_v31, 0.0 }
 0x43f   : > { %v7209_v58 = vmul.f32 1.442695, %v7157_v8  ;;  %8437 = vmatprep.subr.bf16.mxu1 %v8436_v47 }
 0x440   : > { %v7211_v26 = vmul.f32 1.442695, %v7158_v44  ;;  %8439 = vmatpush3.bf16.msra.mxu1 %v8436_v47 }
 0x441   : > { %8568 = vpow2.f32 %v7209_v58 }
 0x442   : > { %8570 = vpow2.f32 %v7211_v26 }
 0x445   : > { %v8563_v35 = vpop.eup %8562 }
 0x446   : > { %v7300_v54 = vadd.f32 %v8563_v35, %v7108_v51  ;;  %v8565_v49 = vpop.eup %8564 }
 0x447   : > { %v8567_v57 = vpop.eup %8566  ;;  %v7298_v28 = vadd.f32 %v8565_v49, %v7106_v5 }
 0x448   : > { %v7348_v19 = vrot.slane %v7300_v54, 7  ;;  %v7299_v11 = vadd.f32 %v8567_v57, %v7107_v0 }
 0x44a   : > { %v10678_v18 = vsel %vm798_vm0, %v7297_v6, %v7348_v19  ;;  %v5751_v60 = vpop.f32.mrb[196].mxu1 }
 0x44b   : > { %v8569_v62 = vpop.eup %8568  ;;  %v5752_v38 = vadd.f32 %v5751_v60, %v10669_v4  ;;  %v5680_v16 = vpop.f32.mrb[198].mxu0  ;;  %v7630_v60 = vld [vmem:[%s10847_s11 + $0x18] sm:$0xff] }
 0x44c   : > { %v5753_v12 = vpop.f32.mrb[197].mxu1  ;;  %v8571_v43 = vpop.eup %8570  ;;  %v7301_v63 = vadd.f32 %v8569_v62, %v7109_v22  ;;  %v5681_v33 = vadd.f32 %v5680_v16, %v10669_v4  ;;  %v7629_v22 = vld [vmem:[%s10847_s11 + $0x10] sm:$0xff] }
 0x44d   : > { %v5754_v27 = vadd.f32 %v5753_v12, %v10669_v4  ;;  %v5682_v61 = vpop.f32.mrb[199].mxu0  ;;  %v7302_v32 = vadd.f32 %v8571_v43, %v7110_v10  ;;  %v7161_v50 = vmin.f32 %v5752_v38, 0.0  ;;  %v7113_v36 = vmax.f32 %v5752_v38, 0.0 }
 0x44e   : > { %v5683_v46 = vadd.f32 %v5682_v61, %v10669_v4  ;;  %v7349_v30 = vrot.slane %v7301_v63, 7  ;;  %v7159_v41 = vmin.f32 %v5681_v33, 0.0  ;;  %v7111_v48 = vmax.f32 %v5681_v33, 0.0 }
 0x44f   : > { %v7350_v56 = vrot.slane %v7302_v32, 7  ;;  %v7217_v3 = vmul.f32 1.442695, %v7161_v50  ;;  %v7162_v45 = vmin.f32 %v5754_v27, 0.0  ;;  %v7114_v37 = vmax.f32 %v5754_v27, 0.0 }
 0x450   : > { %v7472_v14 = vsel %vm798_vm0, %v7298_v28, %v7349_v30  ;;  %v7213_v52 = vmul.f32 1.442695, %v7159_v41  ;;  %v7160_v15 = vmin.f32 %v5683_v46, 0.0  ;;  %v7112_v31 = vmax.f32 %v5683_v46, 0.0 }
 0x451   : > { %v7473_v21 = vsel %vm798_vm0, %v7299_v11, %v7350_v56  ;;  %8572 = vpow2.f32 %v7217_v3  ;;  %v7219_v9 = vmul.f32 1.442695, %v7162_v45  ;;  %v8440_v5 = vpack.c.bf16 %v7630_v60, %v7629_v22 }
 0x452   : > { %8574 = vpow2.f32 %v7213_v52  ;;  %v7215_v2 = vmul.f32 1.442695, %v7160_v15 }
 0x453   : > { %8576 = vpow2.f32 %v7219_v9  ;;  %8441 = vmatprep.subr.bf16.mxu1 %v8440_v5 }
 0x454   : > { %8578 = vpow2.f32 %v7215_v2  ;;  %8443 = vmatpush3.bf16.msra.mxu1 %v8440_v5 }
 0x45a   : > { %v5893_v25 = vpop.f32.mrb[198].mxu1 }
 0x45b   : > { %v8573_v1 = vpop.eup %8572  ;;  %v5894_v42 = vadd.f32 %v5893_v25, %v10669_v4  ;;  %v5822_v13 = vpop.f32.mrb[200].mxu0 }
 0x45c   : > { %v5895_v23 = vpop.f32.mrb[199].mxu1  ;;  %v8575_v55 = vpop.eup %8574  ;;  %v7305_v17 = vadd.f32 %v8573_v1, %v7113_v36  ;;  %v5823_v29 = vadd.f32 %v5822_v13, %v10669_v4 }
 0x45d   : > { %v5896_v40 = vadd.f32 %v5895_v23, %v10669_v4  ;;  %v5824_v7 = vpop.f32.mrb[201].mxu0  ;;  %v8577_v53 = vpop.eup %8576  ;;  %v7303_v24 = vadd.f32 %v8575_v55, %v7111_v48  ;;  %v7165_v8 = vmin.f32 %v5894_v42, 0.0  ;;  %v7117_v33 = vmax.f32 %v5894_v42, 0.0 }
 0x45e   : > { %v8579_v44 = vpop.eup %8578  ;;  %v7359_v58 = vrot.slane %v7305_v17, 6  ;;  %v7306_v26 = vadd.f32 %v8577_v53, %v7114_v37  ;;  %v7163_v39 = vmin.f32 %v5823_v29, 0.0  ;;  %v5825_v51 = vadd.f32 %v5824_v7, %v10669_v4 }
 0x45f   : > { %v7357_v35 = vrot.slane %v7303_v24, 6  ;;  %v7304_v34 = vadd.f32 %v8579_v44, %v7112_v31  ;;  %v7225_v54 = vmul.f32 1.442695, %v7165_v8  ;;  %v7166_v57 = vmin.f32 %v5896_v40, 0.0 }
 0x460   : > { %v7477_v6 = vsel %vm7474_vm5, %v7473_v21, %v7359_v58  ;;  %v7366_v19 = vrot.slane %v7306_v26, 5  ;;  %v7221_v49 = vmul.f32 1.442695, %v7163_v39  ;;  %v7164_v12 = vmin.f32 %v5825_v51, 0.0 }
 0x461   : > { %v7475_v62 = vsel %vm7474_vm5, %v10678_v18, %v7357_v35  ;;  %v7358_v10 = vrot.slane %v7304_v34, 6  ;;  %8580 = vpow2.f32 %v7225_v54  ;;  %v7227_v16 = vmul.f32 1.442695, %v7166_v57 }
 0x462   : > { %v7479_v38 = vsel %vm7478_vm6, %v7475_v62, %v7366_v19  ;;  %8582 = vpow2.f32 %v7221_v49  ;;  %v7223_v63 = vmul.f32 1.442695, %v7164_v12  ;;  %v7115_v0 = vmax.f32 %v5823_v29, 0.0 }
 0x463   : > { %v7476_v43 = vsel %vm7474_vm5, %v7472_v14, %v7358_v10  ;;  %8584 = vpow2.f32 %v7227_v16  ;;  %v7118_v3 = vmax.f32 %v5896_v40, 0.0  ;;  %v7116_v21 = vmax.f32 %v5825_v51, 0.0 }
 0x464   : > { %8586 = vpow2.f32 %v7223_v63 }
 0x46a   : > { %v6035_v27 = vpop.f32.mrb[200].mxu1 }
 0x46b   : > { %v8581_v61 = vpop.eup %8580  ;;  %v6036_v18 = vadd.f32 %v6035_v27, %v10669_v4  ;;  %v5964_v32 = vpop.f32.mrb[202].mxu0 }
 0x46c   : > { %v6037_v50 = vpop.f32.mrb[201].mxu1  ;;  %v8583_v46 = vpop.eup %8582  ;;  %v7309_v28 = vadd.f32 %v8581_v61, %v7117_v33  ;;  %v5965_v30 = vadd.f32 %v5964_v32, %v10669_v4 }
 0x46d   : > { %v6038_v41 = vadd.f32 %v6037_v50, %v10669_v4  ;;  %v5966_v11 = vpop.f32.mrb[203].mxu0  ;;  %v7307_v56 = vadd.f32 %v8583_v46, %v7115_v0  ;;  %v7169_v45 = vmin.f32 %v6036_v18, 0.0  ;;  %v8585_v52 = vpop.eup %8584  ;;  %v7121_v47 = vmax.f32 %v6036_v18, 0.0 }
 0x46e   : > { %v5967_v14 = vadd.f32 %v5966_v11, %v10669_v4  ;;  %v7375_v15 = vrot.slane %v7309_v28, 4  ;;  %v7167_v9 = vmin.f32 %v5965_v30, 0.0  ;;  %v7310_v36 = vadd.f32 %v8585_v52, %v7118_v3  ;;  %v8587_v48 = vpop.eup %8586 }
 0x46f   : > { %v7367_v2 = vrot.slane %v7307_v56, 5  ;;  %v7233_v25 = vmul.f32 1.442695, %v7169_v45  ;;  %v7170_v1 = vmin.f32 %v6038_v41, 0.0  ;;  %v7308_v59 = vadd.f32 %v8587_v48, %v7116_v21 }
 0x470   : > { %v7482_v37 = vsel %vm3049_vm2, %v7479_v38, %v7375_v15  ;;  %v7229_v42 = vmul.f32 1.442695, %v7167_v9  ;;  %v7168_v13 = vmin.f32 %v5967_v14, 0.0  ;;  %v7376_v20 = vrot.slane %v7310_v36, 4 }
 0x471   : > { %v7480_v23 = vsel %vm7478_vm6, %v7476_v43, %v7367_v2  ;;  %8588 = vpow2.f32 %v7233_v25  ;;  %v7235_v55 = vmul.f32 1.442695, %v7170_v1  ;;  %v7368_v40 = vrot.slane %v7308_v59, 5 }
 0x472   : > { %8590 = vpow2.f32 %v7229_v42  ;;  %v7231_v17 = vmul.f32 1.442695, %v7168_v13  ;;  %v7483_v29 = vsel %vm3049_vm2, %v7480_v23, %v7376_v20  ;;  %v7119_v31 = vmax.f32 %v5965_v30, 0.0 }
 0x473   : > { %8592 = vpow2.f32 %v7235_v55  ;;  %v7481_v7 = vsel %vm7478_vm6, %v7477_v6, %v7368_v40  ;;  %v7122_v19 = vmax.f32 %v6038_v41, 0.0  ;;  %v7120_v22 = vmax.f32 %v5967_v14, 0.0 }
 0x474   : > { %8594 = vpow2.f32 %v7231_v17 }
 0x47a   : > { %v6177_v53 = vpop.f32.mrb[202].mxu1 }
 0x47b   : > { %v8589_v24 = vpop.eup %8588  ;;  %v6178_v8 = vadd.f32 %v6177_v53, %v10669_v4  ;;  %v6106_v44 = vpop.f32.mrb[204].mxu0 }
 0x47c   : > { %v6179_v58 = vpop.f32.mrb[203].mxu1  ;;  %v8591_v26 = vpop.eup %8590  ;;  %v7313_v39 = vadd.f32 %v8589_v24, %v7121_v47  ;;  %v6107_v51 = vadd.f32 %v6106_v44, %v10669_v4 }
 0x47d   : > { %v6180_v35 = vadd.f32 %v6179_v58, %v10669_v4  ;;  %v6108_v34 = vpop.f32.mrb[205].mxu0  ;;  %v7311_v54 = vadd.f32 %v8591_v26, %v7119_v31  ;;  %v7173_v6 = vmin.f32 %v6178_v8, 0.0  ;;  %v8593_v49 = vpop.eup %8592  ;;  %v7125_v30 = vmax.f32 %v6178_v8, 0.0 }
 0x47e   : > { %v7385_v57 = vrot.slane %v7313_v39, 3  ;;  %v7171_v60 = vmin.f32 %v6107_v51, 0.0  ;;  %v6109_v62 = vadd.f32 %v6108_v34, %v10669_v4  ;;  %v8595_v10 = vpop.eup %8594  ;;  %v7314_v16 = vadd.f32 %v8593_v49, %v7122_v19 }
 0x47f   : > { %v7377_v38 = vrot.slane %v7311_v54, 4  ;;  %v7241_v12 = vmul.f32 1.442695, %v7173_v6  ;;  %v7174_v43 = vmin.f32 %v6180_v35, 0.0  ;;  %v7312_v63 = vadd.f32 %v8595_v10, %v7120_v22 }
 0x480   : > { %v7487_v5 = vsel %vm7485_vm7, %v7483_v29, %v7385_v57  ;;  %v7237_v33 = vmul.f32 1.442695, %v7171_v60  ;;  %v7386_v61 = vrot.slane %v7314_v16, 3  ;;  %v7172_v32 = vmin.f32 %v6109_v62, 0.0 }
 0x481   : > { %v7484_v27 = vsel %vm3049_vm2, %v7481_v7, %v7377_v38  ;;  %8596 = vpow2.f32 %v7241_v12  ;;  %v7243_v0 = vmul.f32 1.442695, %v7174_v43  ;;  %v7384_v18 = vrot.slane %v7312_v63, 3 }
 0x482   : > { %8598 = vpow2.f32 %v7237_v33  ;;  %v7488_v50 = vsel %vm7485_vm7, %v7484_v27, %v7386_v61  ;;  %v7239_v28 = vmul.f32 1.442695, %v7172_v32  ;;  %v7123_v56 = vmax.f32 %v6107_v51, 0.0  ;;  %v7518_v27 = vld [vmem:[%s8920_s25] sm:$0xff]  ;;  %v7519_v61 = vld [vmem:[%s8920_s25 + $0x8] sm:$0xff] }
 0x483   : > { %8600 = vpow2.f32 %v7243_v0  ;;  %v7486_v46 = vsel %vm7485_vm7, %v7482_v37, %v7384_v18  ;;  %v7126_v15 = vmax.f32 %v6180_v35, 0.0  ;;  %v7124_v13 = vmax.f32 %v6109_v62, 0.0 }
 0x484   : > { %8602 = vpow2.f32 %v7239_v28  ;;  %v7520_v28 = vld [vmem:[%s8920_s25 + $0x10] sm:$0xff] }
 0x48a   : > { %v6319_v41 = vpop.f32.mrb[204].mxu1 }
 0x48b   : > { %v8597_v11 = vpop.eup %8596  ;;  %v6248_v3 = vpop.f32.mrb[206].mxu0  ;;  %v10726_v29 = vadd.f32 %v6319_v41, %v10669_v4 }
 0x48c   : > { %v6321_v45 = vpop.f32.mrb[205].mxu1  ;;  %v8599_v14 = vpop.eup %8598  ;;  %v7317_v52 = vadd.f32 %v8597_v11, %v7125_v30  ;;  %v6249_v21 = vadd.f32 %v6248_v3, %v10669_v4 }
 0x48d   : > { %v6250_v9 = vpop.f32.mrb[207].mxu0  ;;  %v8601_v2 = vpop.eup %8600  ;;  %v7315_v36 = vadd.f32 %v8599_v14, %v7123_v56  ;;  %v10732_v31 = vadd.f32 %v6321_v45, %v10669_v4  ;;  %v7177_v44 = vmin.f32 %v10726_v29, 0.0 }
 0x48e   : > { %v6251_v25 = vadd.f32 %v6250_v9, %v10669_v4  ;;  %v7395_v1 = vrot.slane %v7317_v52, 2  ;;  %v7318_v48 = vadd.f32 %v8601_v2, %v7126_v15  ;;  %v7175_v37 = vmin.f32 %v6249_v21, 0.0  ;;  %v8603_v23 = vpop.eup %8602 }
 0x48f   : > { %v7393_v42 = vrot.slane %v7315_v36, 2  ;;  %v7316_v17 = vadd.f32 %v8603_v23, %v7124_v13  ;;  %v7178_v58 = vmin.f32 %v10732_v31, 0.0  ;;  %v7249_v26 = vmul.f32 1.442695, %v7177_v44 }
 0x490   : > { %v7402_v20 = vrot.slane %v7318_v48, 1  ;;  %v7245_v59 = vmul.f32 1.442695, %v7175_v37  ;;  %v7176_v55 = vmin.f32 %v6251_v25, 0.0  ;;  %v7492_v47 = vsel %vm7489_vm8, %v7488_v50, %v7395_v1 }
 0x491   : > { %v7490_v40 = vsel %vm7489_vm8, %v7486_v46, %v7393_v42  ;;  %v7394_v24 = vrot.slane %v7316_v17, 2  ;;  %v7127_v51 = vmax.f32 %v6249_v21, 0.0  ;;  %v7251_v6 = vmul.f32 1.442695, %v7178_v58 }
 0x492   : > { %8604 = vpow2.f32 %v7245_v59  ;;  %v7247_v7 = vmul.f32 1.442695, %v7176_v55  ;;  %v7494_v53 = vsel %vm7493_vm9, %v7490_v40, %v7402_v20  ;;  %v7128_v62 = vmax.f32 %v6251_v25, 0.0 }
 0x493   : > { %v7491_v8 = vsel %vm7489_vm8, %v7487_v5, %v7394_v24  ;;  %v7524_v41 = vmul.f32 %v7518_v27, %v7494_v53  ;;  %v7129_v36 = vmax.f32 %v10726_v29, 0.0  ;;  %v7130_v25 = vmax.f32 %v10732_v31, 0.0 }
 0x494   : > { %8606 = vpow2.f32 %v7247_v7 }
 0x495   : > { %8608 = vpow2.f32 %v7249_v26 }
 0x496   : > { %8610 = vpow2.f32 %v7251_v6 }
 0x49b   : > { %v6461_v39 = vpop.f32.mrb[206].mxu1 }
 0x49c   : > { %v6462_v35 = vadd.f32 %v6461_v39, %v10669_v4  ;;  %v6390_v34 = vpop.f32.mrb[208].mxu0  ;;  %v6463_v54 = vpop.f32.mrb[207].mxu1 }
 0x49d   : > { %v8605_v19 = vpop.eup %8604  ;;  %v10739_v49 = vadd.f32 %v6390_v34, %v10669_v4  ;;  %v6464_v57 = vadd.f32 %v6463_v54, %v10669_v4  ;;  %v6392_v22 = vpop.f32.mrb[209].mxu0 }
 0x49e   : > { %v7319_v60 = vadd.f32 %v8605_v19, %v7127_v51  ;;  %v7181_v10 = vmin.f32 %v6462_v35, 0.0  ;;  %v6393_v38 = vadd.f32 %v6392_v22, %v10669_v4  ;;  %v8607_v16 = vpop.eup %8606  ;;  %v7133_v21 = vmax.f32 %v6462_v35, 0.0 }
 0x49f   : > { %v7179_v12 = vmin.f32 %v10739_v49, 0.0  ;;  %v7320_v5 = vadd.f32 %v8607_v16, %v7128_v62  ;;  %v7182_v33 = vmin.f32 %v6464_v57, 0.0  ;;  %v8609_v52 = vpop.eup %8608  ;;  %v7134_v23 = vmax.f32 %v6464_v57, 0.0 }
 0x4a0   : > { %v7403_v43 = vrot.slane %v7319_v60, 1  ;;  %v7257_v63 = vmul.f32 1.442695, %v7181_v10  ;;  %v7180_v18 = vmin.f32 %v6393_v38, 0.0  ;;  %v8611_v15 = vpop.eup %8610  ;;  %v7132_v7 = vmax.f32 %v6393_v38, 0.0 }
 0x4a1   : > { %v7253_v0 = vmul.f32 1.442695, %v7179_v12  ;;  %v7404_v32 = vrot.slane %v7320_v5, 1  ;;  %v7259_v50 = vmul.f32 1.442695, %v7182_v33  ;;  %v7322_v40 = vadd.f32 %v8611_v15, %v7130_v25 }
 0x4a2   : > { %8612 = vpow2.f32 %v7257_v63  ;;  %v7495_v46 = vsel %vm7493_vm9, %v7491_v8, %v7403_v43  ;;  %v7255_v30 = vmul.f32 1.442695, %v7180_v18  ;;  %v7131_v31 = vmax.f32 %v10739_v49, 0.0 }
 0x4a3   : > { %8614 = vpow2.f32 %v7253_v0  ;;  %v7525_v11 = vmul.f32 %v7519_v61, %v7495_v46  ;;  %v7496_v56 = vsel %vm7493_vm9, %v7492_v47, %v7404_v32  ;;  %v7321_v58 = vadd.f32 %v8609_v52, %v7129_v36 }
 0x4a4   : > { %8616 = vpow2.f32 %v7259_v50  ;;  %v7526_v3 = vmul.f32 %v7520_v28, %v7496_v56 }
 0x4a5   : > { %8618 = vpow2.f32 %v7255_v30  ;;  %v7530_v45 = vadd.f32 %v7525_v11, %v7524_v41 }
 0x4a7   : > { %v7531_v14 = vadd.f32 %v7530_v45, %v7526_v3 }
 0x4a9   : > { %7532 = vadd.xlane.f32.xlu1 %v7531_v14 }
 0x4ab   : > { %v6603_v9 = vpop.f32.mrb[208].mxu1 }
 0x4ac   : > { %v8613_v2 = vpop.eup %8612  ;;  %v6604_v1 = vadd.f32 %v6603_v9, %v10669_v4  ;;  %v6532_v48 = vpop.f32.mrb[210].mxu0 }
 0x4ad   : > { %v6605_v37 = vpop.f32.mrb[209].mxu1  ;;  %v8615_v42 = vpop.eup %8614  ;;  %v7325_v13 = vadd.f32 %v8613_v2, %v7133_v21  ;;  %v6533_v20 = vadd.f32 %v6532_v48, %v10669_v4 }
 0x4ae   : > { %v6606_v59 = vadd.f32 %v6605_v37, %v10669_v4  ;;  %v6534_v55 = vpop.f32.mrb[211].mxu0  ;;  %v8617_v17 = vpop.eup %8616  ;;  %v7185_v47 = vmin.f32 %v6604_v1, 0.0  ;;  %v7323_v34 = vadd.f32 %v8615_v42, %v7131_v31  ;;  %v7137_v10 = vmax.f32 %v6604_v1, 0.0 }
 0x4af   : > { %v6535_v29 = vadd.f32 %v6534_v55, %v10669_v4  ;;  %v8619_v53 = vpop.eup %8618  ;;  %v7412_v24 = vrot.slane %v7325_v13, 7  ;;  %v7326_v8 = vadd.f32 %v8617_v17, %v7134_v23  ;;  %v7183_v44 = vmin.f32 %v6533_v20, 0.0 }
 0x4b0   : > { %v7324_v26 = vadd.f32 %v8619_v53, %v7132_v7  ;;  %v7265_v39 = vmul.f32 1.442695, %v7185_v47  ;;  %v7186_v51 = vmin.f32 %v6606_v59, 0.0  ;;  %v7135_v12 = vmax.f32 %v6533_v20, 0.0 }
 0x4b1   : > { %v7498_v35 = vsel %vm798_vm0, %v7322_v40, %v7412_v24  ;;  %v7413_v54 = vrot.slane %v7326_v8, 7  ;;  %v7261_v19 = vmul.f32 1.442695, %v7183_v44  ;;  %v7184_v22 = vmin.f32 %v6535_v29, 0.0 }
 0x4b2   : > { %v7411_v6 = vrot.slane %v7324_v26, 7  ;;  %8620 = vpow2.f32 %v7265_v39  ;;  %v7267_v57 = vmul.f32 1.442695, %v7186_v51  ;;  %v7138_v61 = vmax.f32 %v6606_v59, 0.0 }
 0x4b3   : > { %v7499_v60 = vsel %vm798_vm0, %v7323_v34, %v7413_v54  ;;  %8622 = vpow2.f32 %v7261_v19  ;;  %v7263_v62 = vmul.f32 1.442695, %v7184_v22  ;;  %v7136_v28 = vmax.f32 %v6535_v29, 0.0 }
 0x4b4   : > { %v7497_v49 = vsel %vm798_vm0, %v7321_v58, %v7411_v6  ;;  %8624 = vpow2.f32 %v7267_v57 }
 0x4b5   : > { %8626 = vpow2.f32 %v7263_v62 }
 0x4bb   : > { %v6745_v38 = vpop.f32.mrb[210].mxu1 }
 0x4bc   : > { %v8621_v16 = vpop.eup %8620  ;;  %v6746_v43 = vadd.f32 %v6745_v38, %v10669_v4  ;;  %v6674_v5 = vpop.f32.mrb[212].mxu0 }
 0x4bd   : > { %v6747_v63 = vpop.f32.mrb[211].mxu1  ;;  %v8623_v33 = vpop.eup %8622  ;;  %v7329_v27 = vadd.f32 %v8621_v16, %v7137_v10  ;;  %v6675_v0 = vadd.f32 %v6674_v5, %v10669_v4 }
 0x4be   : > { %v6748_v18 = vadd.f32 %v6747_v63, %v10669_v4  ;;  %v6676_v32 = vpop.f32.mrb[213].mxu0  ;;  %v8625_v50 = vpop.eup %8624  ;;  %v7327_v46 = vadd.f32 %v8623_v33, %v7135_v12  ;;  %v7189_v30 = vmin.f32 %v6746_v43, 0.0  ;;  %v7141_v20 = vmax.f32 %v6746_v43, 0.0 }
 0x4bf   : > { %v7422_v41 = vrot.slane %v7329_v27, 6  ;;  %v7330_v11 = vadd.f32 %v8625_v50, %v7138_v61  ;;  %v7187_v56 = vmin.f32 %v6675_v0, 0.0  ;;  %v6677_v3 = vadd.f32 %v6676_v32, %v10669_v4  ;;  %v8627_v45 = vpop.eup %8626 }
 0x4c0   : > { %v7420_v14 = vrot.slane %v7327_v46, 6  ;;  %v7273_v52 = vmul.f32 1.442695, %v7189_v30  ;;  %v7190_v15 = vmin.f32 %v6748_v18, 0.0  ;;  %v7328_v2 = vadd.f32 %v8627_v45, %v7136_v28 }
 0x4c1   : > { %v7502_v21 = vsel %vm7474_vm5, %v7499_v60, %v7422_v41  ;;  %v7429_v9 = vrot.slane %v7330_v11, 5  ;;  %v7269_v36 = vmul.f32 1.442695, %v7187_v56  ;;  %v7188_v42 = vmin.f32 %v6677_v3, 0.0 }
 0x4c2   : > { %v7500_v25 = vsel %vm7474_vm5, %v7497_v49, %v7420_v14  ;;  %8628 = vpow2.f32 %v7273_v52  ;;  %v7275_v1 = vmul.f32 1.442695, %v7190_v15  ;;  %v7421_v37 = vrot.slane %v7328_v2, 6 }
 0x4c3   : > { %v7503_v48 = vsel %vm7478_vm6, %v7500_v25, %v7429_v9  ;;  %8630 = vpow2.f32 %v7269_v36  ;;  %v7271_v23 = vmul.f32 1.442695, %v7188_v42  ;;  %v7139_v17 = vmax.f32 %v6675_v0, 0.0 }
 0x4c4   : > { %8632 = vpow2.f32 %v7275_v1  ;;  %v7501_v13 = vsel %vm7474_vm5, %v7498_v35, %v7421_v37  ;;  %v7142_v24 = vmax.f32 %v6748_v18, 0.0  ;;  %v7140_v6 = vmax.f32 %v6677_v3, 0.0 }
 0x4c5   : > { %8634 = vpow2.f32 %v7271_v23 }
 0x4cb   : > { %v6887_v59 = vpop.f32.mrb[212].mxu1 }
 0x4cc   : > { %v8629_v55 = vpop.eup %8628  ;;  %v6888_v40 = vadd.f32 %v6887_v59, %v10669_v4  ;;  %v6816_v7 = vpop.f32.mrb[214].mxu0 }
 0x4cd   : > { %v6889_v47 = vpop.f32.mrb[213].mxu1  ;;  %v8631_v29 = vpop.eup %8630  ;;  %v7333_v53 = vadd.f32 %v8629_v55, %v7141_v20  ;;  %v6817_v31 = vadd.f32 %v6816_v7, %v10669_v4 }
 0x4ce   : > { %v6890_v8 = vadd.f32 %v6889_v47, %v10669_v4  ;;  %v6818_v44 = vpop.f32.mrb[215].mxu0  ;;  %v8633_v58 = vpop.eup %8632  ;;  %v7331_v26 = vadd.f32 %v8631_v29, %v7139_v17  ;;  %v7193_v39 = vmin.f32 %v6888_v40, 0.0  ;;  %v7145_v61 = vmax.f32 %v6888_v40, 0.0 }
 0x4cf   : > { %v7438_v51 = vrot.slane %v7333_v53, 4  ;;  %v7334_v35 = vadd.f32 %v8633_v58, %v7142_v24  ;;  %v7191_v34 = vmin.f32 %v6817_v31, 0.0  ;;  %v6819_v54 = vadd.f32 %v6818_v44, %v10669_v4  ;;  %v8635_v60 = vpop.eup %8634 }
 0x4d0   : > { %v7430_v19 = vrot.slane %v7331_v26, 5  ;;  %v7281_v57 = vmul.f32 1.442695, %v7193_v39  ;;  %v7194_v22 = vmin.f32 %v6890_v8, 0.0  ;;  %v7332_v16 = vadd.f32 %v8635_v60, %v7140_v6 }
 0x4d1   : > { %v7506_v49 = vsel %vm3049_vm2, %v7503_v48, %v7438_v51  ;;  %v7439_v62 = vrot.slane %v7334_v35, 4  ;;  %v7277_v10 = vmul.f32 1.442695, %v7191_v34  ;;  %v7192_v5 = vmin.f32 %v6819_v54, 0.0 }
 0x4d2   : > { %v7504_v38 = vsel %vm7478_vm6, %v7501_v13, %v7430_v19  ;;  %8636 = vpow2.f32 %v7281_v57  ;;  %v7283_v12 = vmul.f32 1.442695, %v7194_v22  ;;  %v7431_v63 = vrot.slane %v7332_v16, 5 }
 0x4d3   : > { %v7507_v43 = vsel %vm3049_vm2, %v7504_v38, %v7439_v62  ;;  %8638 = vpow2.f32 %v7277_v10  ;;  %v7279_v33 = vmul.f32 1.442695, %v7192_v5  ;;  %v7143_v32 = vmax.f32 %v6817_v31, 0.0 }
 0x4d4   : > { %8640 = vpow2.f32 %v7283_v12  ;;  %v7505_v27 = vsel %vm7478_vm6, %v7502_v21, %v7431_v63  ;;  %v7146_v11 = vmax.f32 %v6890_v8, 0.0  ;;  %v7144_v48 = vmax.f32 %v6819_v54, 0.0 }
 0x4d5   : > { %8642 = vpow2.f32 %v7279_v33 }
 0x4db   : > { %v7029_v0 = vpop.f32.mrb[214].mxu1 }
 0x4dc   : > { %v8637_v18 = vpop.eup %8636  ;;  %v7030_v50 = vadd.f32 %v7029_v0, %v10669_v4  ;;  %v6958_v46 = vpop.f32.mrb[216].mxu0 }
 0x4dd   : > { %v7031_v28 = vpop.f32.mrb[215].mxu1  ;;  %v8639_v30 = vpop.eup %8638  ;;  %v7337_v41 = vadd.f32 %v8637_v18, %v7145_v61  ;;  %v6959_v56 = vadd.f32 %v6958_v46, %v10669_v4 }
 0x4de   : > { %v7032_v3 = vadd.f32 %v7031_v28, %v10669_v4  ;;  %v6960_v45 = vpop.f32.mrb[217].mxu0  ;;  %v8641_v14 = vpop.eup %8640  ;;  %v7335_v52 = vadd.f32 %v8639_v30, %v7143_v32  ;;  %v7197_v15 = vmin.f32 %v7030_v50, 0.0  ;;  %v7149_v58 = vmax.f32 %v7030_v50, 0.0 }
 0x4df   : > { %v7448_v21 = vrot.slane %v7337_v41, 3  ;;  %v7338_v9 = vadd.f32 %v8641_v14, %v7146_v11  ;;  %v7195_v2 = vmin.f32 %v6959_v56, 0.0  ;;  %v6961_v36 = vadd.f32 %v6960_v45, %v10669_v4  ;;  %v8221_v25 = vpop.f32.mrb[216].mxu1  ;;  %v8643_v23 = vpop.eup %8642  ;;  %v7522_v45 = vld [vmem:[%s8920_s25 + $0x20] sm:$0xff] }
 0x4e0   : > { %v7440_v1 = vrot.slane %v7335_v52, 4  ;;  %v7289_v37 = vmul.f32 1.442695, %v7197_v15  ;;  %v7198_v42 = vmin.f32 %v7032_v3, 0.0  ;;  %v7616_v13 = vpop.f32.mrb[217].mxu1  ;;  %v7336_v40 = vadd.f32 %v8643_v23, %v7144_v48  ;;  %v7523_v52 = vld [vmem:[%s8920_s25 + $0x28] sm:$0xff] }
 0x4e1   : > { %v7510_v20 = vsel %vm7485_vm7, %v7507_v43, %v7448_v21  ;;  %v7449_v59 = vrot.slane %v7338_v9, 3  ;;  %v7285_v55 = vmul.f32 1.442695, %v7195_v2  ;;  %v7196_v47 = vmin.f32 %v6961_v36, 0.0  ;;  %v7721_v48 = vld [vmem:[%s10849_s13] sm:$0xff]  ;;  %v7724_v23 = vld [vmem:[%s10849_s13 + $0x18] sm:$0xff] }
 0x4e2   : > { %v7508_v17 = vsel %vm3049_vm2, %v7505_v27, %v7440_v1  ;;  %8644 = vpow2.f32 %v7289_v37  ;;  %v7291_v7 = vmul.f32 1.442695, %v7198_v42  ;;  %v7625_v29 = vmax.f32 %v7616_v13, 0.0  ;;  %v7722_v37 = vld [vmem:[%s10849_s13 + $0x8] sm:$0xff]  ;;  %v7723_v13 = vld [vmem:[%s10849_s13 + $0x10] sm:$0xff] }
 0x4e3   : > { %8646 = vpow2.f32 %v7285_v55  ;;  %v7447_v53 = vrot.slane %v7336_v40, 3  ;;  %v7626_v24 = vmax.f32 %v8221_v25, 0.0  ;;  %v7511_v31 = vsel %vm7485_vm7, %v7508_v17, %v7449_v59  ;;  %v8181_v59 = vld [vmem:[%s10848_s12] ss:$0 sm:$0xff] }
 0x4e4   : > { %8648 = vpow2.f32 %v7291_v7  ;;  %v7287_v8 = vmul.f32 1.442695, %v7196_v47  ;;  %8230 = vmatprep.mubr.msk.f32.mxu1 %vm3916_vm4, %v7625_v29  ;;  %v7147_v39 = vmax.f32 %v6959_v56, 0.0  ;;  %v7150_v54 = vmax.f32 %v7032_v3, 0.0  ;;  %v7521_v3 = vld [vmem:[%s8920_s25 + $0x18] sm:$0xff] }
 0x4e5   : > { %v7509_v44 = vsel %vm7485_vm7, %v7506_v49, %v7447_v53  ;;  %8231 = vmatmul.mubr.msk.f32.vlgmr.msra.gmra.mrb[218].mxu1 %vm3916_vm4, %v7626_v24  ;;  %v7148_v16 = vmax.f32 %v6961_v36, 0.0  ;;  %v8444_v42 = vpack.c.bf16 %v7722_v37, %v7721_v48  ;;  %v8184_v53 = vld [vmem:[%s10850_s14] ss:$0 sm:$0xff] }
 0x4e6   : > { %8650 = vpow2.f32 %v7287_v8 }
 0x4e7   : > { %8445 = vmatprep.subr.bf16.mxu0 %v8444_v42 }
 0x4e8   : > { %8447 = vmatpush3.bf16.msra.mxu0 %v8444_v42 }
 0x4ec   : > { %v8645_v26 = vpop.eup %8644  ;;  %v7100_v51 = vpop.f32.mrb[218].mxu0 }
 0x4ed   : > { %v8647_v35 = vpop.eup %8646  ;;  %v7341_v34 = vadd.f32 %v8645_v26, %v7149_v58  ;;  %v7101_v19 = vadd.f32 %v7100_v51, %v10669_v4  ;;  %v7102_v6 = vpop.f32.mrb[219].mxu0 }
 0x4ee   : > { %v8649_v57 = vpop.eup %8648  ;;  %v7339_v22 = vadd.f32 %v8647_v35, %v7147_v39  ;;  %v7103_v60 = vadd.f32 %v7102_v6, %v10669_v4 }
 0x4ef   : > { %v7458_v62 = vrot.slane %v7341_v34, 2  ;;  %v7342_v10 = vadd.f32 %v8649_v57, %v7150_v54  ;;  %v7199_v49 = vmin.f32 %v7101_v19, 0.0  ;;  %v7151_v50 = vmax.f32 %v7101_v19, 0.0 }
 0x4f0   : > { %v7456_v38 = vrot.slane %v7339_v22, 2  ;;  %v7200_v12 = vmin.f32 %v7103_v60, 0.0  ;;  %v8651_v43 = vpop.eup %8650  ;;  %v7152_v28 = vmax.f32 %v7103_v60, 0.0 }
 0x4f1   : > { %v7465_v5 = vrot.slane %v7342_v10, 1  ;;  %v7293_v63 = vmul.f32 1.442695, %v7199_v49  ;;  %v7514_v33 = vsel %vm7489_vm8, %v7511_v31, %v7458_v62  ;;  %v7340_v27 = vadd.f32 %v8651_v43, %v7148_v16 }
 0x4f2   : > { %v7295_v61 = vmul.f32 1.442695, %v7200_v12  ;;  %v7512_v0 = vsel %vm7489_vm8, %v7509_v44, %v7456_v38 }
 0x4f3   : > { %8652 = vpow2.f32 %v7293_v63  ;;  %v7515_v4 = vsel %vm7493_vm9, %v7512_v0, %v7465_v5  ;;  %v7457_v18 = vrot.slane %v7340_v27, 2 }
 0x4f4   : > { %8654 = vpow2.f32 %v7295_v61  ;;  %v7527_v9 = vmul.f32 %v7521_v3, %v7515_v4 }
 0x4f5   : > { %v7513_v32 = vsel %vm7489_vm8, %v7510_v20, %v7457_v18  ;;  %v8448_v20 = vpack.c.bf16 %v7724_v23, %v7723_v13 }
 0x4f7   : > { %8449 = vmatprep.subr.bf16.mxu0 %v8448_v20 }
 0x4f8   : > { %8451 = vmatpush3.bf16.msra.mxu0 %v8448_v20 }
 0x4fd   : > { %v8653_v46 = vpop.eup %8652 }
 0x4fe   : > { %v8655_v30 = vpop.eup %8654  ;;  %v7343_v41 = vadd.f32 %v8653_v46, %v7151_v50 }
 0x4ff   : > { %v7344_v11 = vadd.f32 %v8655_v30, %v7152_v28 }
 0x500   : > { %v7466_v56 = vrot.slane %v7343_v41, 1 }
 0x501   : > { %v7467_v14 = vrot.slane %v7344_v11, 1 }
 0x502   : > { %v7516_v15 = vsel %vm7493_vm9, %v7513_v32, %v7466_v56 }
 0x503   : > { %v7517_v21 = vsel %vm7493_vm9, %v7514_v33, %v7467_v14  ;;  %v7528_v2 = vmul.f32 %v7522_v45, %v7516_v15 }
 0x504   : > { %v7529_v36 = vmul.f32 %v7523_v52, %v7517_v21 }
 0x505   : > { %v7534_v25 = vadd.f32 %v7528_v2, %v7527_v9 }
 0x507   : > { %v7535_v1 = vadd.f32 %v7534_v25, %v7529_v36 }
 0x509   : > { %7536 = vadd.xlane.f32.xlu0 %v7535_v1 }
 0x536   : > { %v7533_v51 = vpop.xlane.xlu1 %7532 }
 0x596   : > { %v7537_v34 = vpop.xlane.xlu0 %7536 }
 0x5b8   : > { %v8232_v55 = vpop.f32.mrb[218].mxu1 }
 0x5b9   : > { %v7716_v17 = vadd.f32 %v8232_v55, %v8181_v59  ;;  %v7710_v40 = vpop.f32.mrb[219].mxu1 }
 0x5ba   : > { %v7711_v7 = vadd.f32 %v8181_v59, %v7710_v40 }
 0x5bb   : > { %v7720_v29 = vmax.f32 %v7716_v17, 0.0 }
 0x5bc   : > { %v7719_v47 = vmax.f32 %v7711_v7, 0.0 }
 0x5be   : > { %8241 = vmatprep.mubr.msk.f32.mxu0 %vm3916_vm4, %v7719_v47 }
 0x5bf   : > { %8242 = vmatmul.mubr.msk.f32.vlgmr.msra.gmra.mrb[220].mxu0 %vm3916_vm4, %v7720_v29 }
 0x692   : > { %v8243_v24 = vpop.f32.mrb[220].mxu0 }
 0x693   : > { %v7810_v31 = vadd.f32 %v8243_v24, %v8184_v53  ;;  %v7804_v8 = vpop.f32.mrb[221].mxu0 }
 0x694   : > { %v7805_v44 = vadd.f32 %v8184_v53, %v7804_v8 }
 0x695   : > { %7823 = vrot.lane.b32.xlu1 %v7810_v31, %s8749_s22  ;;  %v7815_v58 = vmul.f32 1.442695, %v7810_v31 }
 0x696   : > { %7821 = vrot.lane.b32.xlu0 %v7805_v44, %s8749_s22  ;;  %v7813_v26 = vmul.f32 1.442695, %v7805_v44 }
 0x697   : > { %8656 = vpow2.f32 %v7815_v58 }
 0x698   : > { %8658 = vpow2.f32 %v7813_v26 }
 0x6a1   : > { %v8657_v39 = vpop.eup %8656 }
 0x6a2   : > { %v8659_v35 = vpop.eup %8658  ;;  %v7818_v54 = vmul.f32 %v8657_v39, %v7537_v34 }
 0x6a3   : > { %v7817_v6 = vmul.f32 %v8659_v35, %v7533_v51 }
 0x707   : > { %v7824_v19 = vpop.permute.xlu1 %7823 }
 0x708   : > { %v7828_v57 = vadd.f32 %v7824_v19, %v7818_v54  ;;  %v7822_v22 = vpop.permute.xlu0 %7821 }
 0x709   : > { %v7827_v60 = vadd.f32 %v7822_v22, %v7817_v6 }
 0x70a   : > { %7833 = vrot.lane.b32.xlu0 %v7828_v57, %s8750_s18 }
 0x70b   : > { %7831 = vrot.lane.b32.xlu1 %v7827_v60, %s8750_s18 }
 0x77c   : > { %v7834_v10 = vpop.permute.xlu0 %7833 }
 0x77d   : > { %v7832_v62 = vpop.permute.xlu1 %7831  ;;  %7838 = vst.msk [vmem:[%s574_s29 + $0x8] sm:$0xff] %vm785_vm1, %v7834_v10 }
 0x77e   : > { %7837 = vst.msk [vmem:[%s574_s29] sm:$0xff] %vm785_vm1, %v7832_v62 }
 0x77f PF: > { %s11183_s23 = sld [smem:[#allocation7_spill]]  ;;  %s11184_s25 = sld [smem:[#allocation6_spill]] }
 0x780   : > { %s11185_s22 = sld [smem:[#allocation8_spill]]  ;;  %s11186_s20 = smov %s8719_s21 }
 0x785   : > { %p27_p8 = scmp.ge.s32.totalorder %s11183_s23, 4   ;;  %s11187_s21 = smov %s11184_s25 }
 0x787   :  { %29 = sbr.rel (!%p27_p8) target bundleno = 6 (0x6), region = 129 }
 0x78e   :  { %7861 = vsyncpa [#allocation4], 1 }
 0x78f   :  { %7863 = vsyncpa [#allocation4 + $0x1], 1 }

</bundles_post_ra>
